<compile_context>
chip_gen: v7x
topology: tpu7x:2x2x1
jax: 0.10.0
libtpu: 0.0.40
codegen_flags: <defaults>
</compile_context>

<pallas_src>
import numpy as np
import jax
import jax.numpy as jnp
from jax import lax
from jax.experimental import pallas as pl
from jax.experimental.pallas import tpu as pltpu

CH = 4            # hidden channels of the stand-in denoiser
CIN = 2           # input channels of the stand-in denoiser: [x, sigma-map]
SIGMA = 7.1e-07


# ----------------------------------------------------------------------------
# Fused kernel: all niter HQS iterations (FFT step as DFT matmuls + denoiser)
# ----------------------------------------------------------------------------
def _make_fused_hqs_kernel(niter, B, H, W):
    M = B * H
    W2 = 2 * W
    offsets = [(dy, dx) for dy in (-1, 0, 1) for dx in (-1, 0, 1)]

    def kernel(alpha_ref, sigma_ref, w1_ref, b1_ref, w2_ref, b2_ref,   # SMEM
               dirty_ref, bcat_ref, dcat_ref,                          # VMEM slabs
               fwcat_ref, gwcat_ref, fhr_ref, fhi_ref,                 # DFT matrices
               out_ref):
        # ---------------- hoisted loop invariants ----------------------
        fwcat = fwcat_ref[...]        # (W, 2W)  forward W-DFT  [FWr | FWi]
        gwcat = gwcat_ref[...]        # (2W, 2W) inverse W-DFT, 1/(H*W) folded in
        fhr = fhr_ref[...]            # (M, M)   block-diag Re(FH) over batch
        fhi = fhi_ref[...]            # (M, M)   block-diag Im(FH) over batch
        bcat = bcat_ref[...]          # (M, 2W)  [Re(conj(fpsf)*Fdirty) | Im(...)]
        dcat = dcat_ref[...]          # (M, 2W)  [|fpsf|^2 | |fpsf|^2]
        dirty = dirty_ref[...]        # (M, W)

        # sign pattern for recombining the H-side complex product: [-1 | +1]
        lane2 = lax.broadcasted_iota(jnp.int32, (M, W2), 1)
        sgn_fwd = jnp.where(lane2 < W, -1.0, 1.0).astype(jnp.float32)

        # per-image zero-padding masks for the 3x3 convs (9 masks, computed once)
        ri = lax.broadcasted_iota(jnp.int32, (M, W), 0) % H
        ci = lax.broadcasted_iota(jnp.int32, (M, W), 1)
        masks = []
        for dy, dx in offsets:
            valid = ((ri + dy >= 0) & (ri + dy < H) &
                     (ci + dx >= 0) & (ci + dx < W))
            masks.append(valid.astype(jnp.float32))

        # denoiser weights: read SMEM scalars once, outside the iteration loop
        w1 = [w1_ref[k] for k in range(CH * CIN * 9)]
        b1 = [b1_ref[c] for c in range(CH)]
        w2 = [w2_ref[k] for k in range(CH * 9)]
        b2s = b2_ref[0]

        # sigma channel is a constant map -> its conv1 contribution is sigma * S1[co]
        s1 = []
        for co in range(CH):
            acc = jnp.zeros((M, W), jnp.float32)
            for k in range(9):
                acc = acc + w1[(co * CIN + 1) * 9 + k] * masks[k]
            s1.append(acc)

        def shift(a, k):
            # result[i, j] = a[i+dy, j+dx] with zero padding per image
            dy, dx = offsets[k]
            if dy == 0 and dx == 0:
                return a
            out = a
            if dy != 0:
                out = pltpu.roll(out, shift=(-dy) % M, axis=0)
            if dx != 0:
                out = pltpu.roll(out, shift=(-dx) % W, axis=1)
            return out * masks[k]

        def dot(a, b):
            return jnp.dot(a, b, preferred_element_type=jnp.float32)

        # ---------------- HQS iterations -------------------------------
        def body(i, z):
            alpha = alpha_ref[i]
            sigma = sigma_ref[i]

            # --- data-fidelity step: fft2/ifft2 as concatenated DFT matmuls ---
            t = dot(z, fwcat)                                  # [z@FWr | z@FWi]
            p = dot(fhr, t)                                    # [FHr@tr | FHr@ti]
            q = dot(fhi, t)                                    # [FHi@tr | FHi@ti]
            zcat = p + pltpu.roll(q, shift=W, axis=1) * sgn_fwd  # [zr | zi] = fft2(z)
            ncat = bcat + alpha * zcat                         # numerator [Re|Im]
            inv_den = pl.reciprocal(dcat + alpha, approx=True)
            xcat = ncat * inv_den                              # [Xr | Xi]
            acat = dot(xcat, gwcat)                            # [Ar | Ai] (pre-scaled)
            x = dot(fhr, acat[:, :W]) + dot(fhi, acat[:, W:])  # Re(ifft2), (M, W)

            # --- stand-in residual denoiser (2-layer 3x3 conv, zero padding) ---
            x_sh = [shift(x, k) for k in range(9)]
            hidden = []
            for co in range(CH):
                acc = b1[co] + sigma * s1[co]
                for k in range(9):
                    acc = acc + w1[(co * CIN + 0) * 9 + k] * x_sh[k]
                hidden.append(jnp.maximum(acc, 0.0))
            out = jnp.full((M, W), b2s, jnp.float32)
            for cih in range(CH):
                for k in range(9):
                    out = out + w2[cih * 9 + k] * shift(hidden[cih], k)
            return x + out

        out_ref[...] = lax.fori_loop(0, niter, body, dirty)

    return kernel


# ----------------------------------------------------------------------------
# Host-side precompute + wrapper
# ----------------------------------------------------------------------------
def _dft_mats(n):
    k = np.arange(n)
    ang = 2.0 * np.pi * np.outer(k, k) / n
    # F[k, m] = exp(-2*pi*i*k*m/n) = cos(.) - i*sin(.)
    return np.cos(ang).astype(np.float32), (-np.sin(ang)).astype(np.float32)


def make_denoiser_params():
    key = jax.random.PRNGKey(0)
    k1, k2 = jax.random.split(key)
    w1 = (0.05 * jax.random.normal(k1, (CH * CIN * 9,))).astype(jnp.float32)
    b1 = jnp.zeros((CH,), jnp.float32)
    w2 = (0.05 * jax.random.normal(k2, (CH * 9,))).astype(jnp.float32)
    b2 = jnp.zeros((1,), jnp.float32)
    return w1, b1, w2, b2


def hqs_pnp_forward(im, niter, f1, f2, falpha, denoiser_params, sigma0=SIGMA):
    # im: (B, 2, H, W) float, NCHW (channel 0 = dirty, channel 1 = psf)
    im = im.astype(jnp.float32)
    B, _, H, W = im.shape
    M, W2 = B * H, 2 * W
    dirty = im[:, 0]                  # (B, H, W)
    psf = im[:, 1]                    # (B, H, W)

    sigma_k = np.geomspace(f1 * sigma0, f2 * sigma0, niter)[::-1].copy()
    alpha_k = falpha * sigma0 ** 2 / sigma_k ** 2
    alpha_arr = jnp.asarray(alpha_k, jnp.float32)
    sigma_arr = jnp.asarray(sigma_k, jnp.float32)

    # one-time FFT precompute (plain-JAX glue, outside the per-iteration hot path)
    fpsf = jnp.fft.fft2(jnp.fft.ifftshift(psf, axes=(-2, -1)))
    fd = jnp.fft.fft2(dirty)
    bc = jnp.conj(fpsf) * fd
    br = jnp.real(bc).astype(jnp.float32).reshape(M, W)
    bi = jnp.imag(bc).astype(jnp.float32).reshape(M, W)
    d0 = (jnp.abs(fpsf) ** 2).astype(jnp.float32).reshape(M, W)
    bcat = jnp.concatenate([br, bi], axis=1)          # (M, 2W)
    dcat = jnp.concatenate([d0, d0], axis=1)          # (M, 2W)

    # DFT matrices (host): lane-concatenated forward W, inverse W with 1/(H*W)
    # folded in, block-diagonal-over-batch H matrices so a single (B*H, *) matmul
    # performs the per-image H-transform.
    fhr, fhi = _dft_mats(H)
    fwr, fwi = _dft_mats(W)
    fwcat = np.concatenate([fwr, fwi], axis=1)                    # (W, 2W)
    gwcat = (np.block([[fwr, -fwi], [fwi, fwr]]) / float(H * W)).astype(np.float32)
    eye_b = np.eye(B, dtype=np.float32)
    fhr_blk = np.kron(eye_b, fhr).astype(np.float32)              # (M, M)
    fhi_blk = np.kron(eye_b, fhi).astype(np.float32)              # (M, M)

    w1, b1, w2, b2 = denoiser_params
    kernel = _make_fused_hqs_kernel(niter, B, H, W)

    smem = pl.BlockSpec(memory_space=pltpu.MemorySpace.SMEM)

    def vspec(shape):
        return pl.BlockSpec(shape, lambda i, _s=shape: (0,) * len(_s))

    out = pl.pallas_call(
        kernel,
        out_shape=jax.ShapeDtypeStruct((M, W), jnp.float32),
        grid=(1,),
        in_specs=[smem, smem, smem, smem, smem, smem,
                  vspec((M, W)), vspec((M, W2)), vspec((M, W2)),
                  vspec((W, W2)), vspec((W2, W2)), vspec((M, M)), vspec((M, M))],
        out_specs=vspec((M, W)),
        compiler_params=pltpu.CompilerParams(dimension_semantics=("arbitrary",)),
    )(alpha_arr, sigma_arr, w1, b1, w2, b2,
      dirty.reshape(M, W), bcat, dcat,
      jnp.asarray(fwcat), jnp.asarray(gwcat),
      jnp.asarray(fhr_blk), jnp.asarray(fhi_blk))

    return out.reshape(B, 1, H, W)    # same layout as the torch module


if __name__ == "__main__":
    B, H, W = 2, 16, 16
    niter = 5
    f1, f2, falpha = 0.0528, 0.3391, 2.8647

    key = jax.random.PRNGKey(0)
    kd, kp = jax.random.split(key)
    dirty = jax.random.normal(kd, (B, H, W), jnp.float32)
    psf = jax.random.normal(kp, (B, H, W), jnp.float32) * 0.1
    psf = psf.at[:, H // 2, W // 2].add(1.0)          # peaked psf
    im = jnp.stack([dirty, psf], axis=1)              # (B, 2, H, W)

    params = make_denoiser_params()
    out = hqs_pnp_forward(im, niter, f1, f2, falpha, params)
    out = jax.block_until_ready(out)
    assert out.shape == (B, 1, H, W) and bool(jnp.all(jnp.isfinite(out)))
    print("KERNEL_OK")
</pallas_src>

<mosaic_0001>
module attributes {stable_mosaic.version = 11 : i64} {
  func.func @kernel(%arg0: i32, %arg1: memref<5xf32, #tpu.memory_space<smem>>, %arg2: memref<5xf32, #tpu.memory_space<smem>>, %arg3: memref<72xf32, #tpu.memory_space<smem>>, %arg4: memref<4xf32, #tpu.memory_space<smem>>, %arg5: memref<36xf32, #tpu.memory_space<smem>>, %arg6: memref<1xf32, #tpu.memory_space<smem>>, %arg7: memref<32x16xf32, #tpu.memory_space<vmem>>, %arg8: memref<32x32xf32, #tpu.memory_space<vmem>>, %arg9: memref<32x32xf32, #tpu.memory_space<vmem>>, %arg10: memref<16x32xf32, #tpu.memory_space<vmem>>, %arg11: memref<32x32xf32, #tpu.memory_space<vmem>>, %arg12: memref<32x32xf32, #tpu.memory_space<vmem>>, %arg13: memref<32x32xf32, #tpu.memory_space<vmem>>, %arg14: memref<32x16xf32, #tpu.memory_space<vmem>>) attributes {dimension_semantics = [#tpu.dimension_semantics<arbitrary>], iteration_bounds = array<i64: 1>, scalar_prefetch = 0 : i64, scratch_operands = 0 : i64, tpu.core_type = #tpu.core_type<tc>, window_params = [{transform_indices = @transform_0, window_bounds = array<i64: 5>}, {transform_indices = @transform_1, window_bounds = array<i64: 5>}, {transform_indices = @transform_2, window_bounds = array<i64: 72>}, {transform_indices = @transform_3, window_bounds = array<i64: 4>}, {transform_indices = @transform_4, window_bounds = array<i64: 36>}, {transform_indices = @transform_5, window_bounds = array<i64: 1>}, {pipeline_mode = #tpu.pipeline_mode<synchronous>, transform_indices = @transform_6, window_bounds = array<i64: 32, 16>}, {pipeline_mode = #tpu.pipeline_mode<synchronous>, transform_indices = @transform_7, window_bounds = array<i64: 32, 32>}, {pipeline_mode = #tpu.pipeline_mode<synchronous>, transform_indices = @transform_8, window_bounds = array<i64: 32, 32>}, {pipeline_mode = #tpu.pipeline_mode<synchronous>, transform_indices = @transform_9, window_bounds = array<i64: 16, 32>}, {pipeline_mode = #tpu.pipeline_mode<synchronous>, transform_indices = @transform_10, window_bounds = array<i64: 32, 32>}, {pipeline_mode = #tpu.pipeline_mode<synchronous>, transform_indices = @transform_11, window_bounds = array<i64: 32, 32>}, {pipeline_mode = #tpu.pipeline_mode<synchronous>, transform_indices = @transform_12, window_bounds = array<i64: 32, 32>}, {pipeline_mode = #tpu.pipeline_mode<synchronous>, transform_indices = @transform_13, window_bounds = array<i64: 32, 16>}]} {
    %c0 = arith.constant 0 : index
    %c0_0 = arith.constant 0 : index
    %0 = vector.load %arg10[%c0, %c0_0] : memref<16x32xf32, #tpu.memory_space<vmem>>, vector<16x32xf32>
    %c0_1 = arith.constant 0 : index
    %c0_2 = arith.constant 0 : index
    %1 = vector.load %arg11[%c0_1, %c0_2] : memref<32x32xf32, #tpu.memory_space<vmem>>, vector<32x32xf32>
    %c0_3 = arith.constant 0 : index
    %c0_4 = arith.constant 0 : index
    %2 = vector.load %arg12[%c0_3, %c0_4] : memref<32x32xf32, #tpu.memory_space<vmem>>, vector<32x32xf32>
    %c0_5 = arith.constant 0 : index
    %c0_6 = arith.constant 0 : index
    %3 = vector.load %arg13[%c0_5, %c0_6] : memref<32x32xf32, #tpu.memory_space<vmem>>, vector<32x32xf32>
    %c0_7 = arith.constant 0 : index
    %c0_8 = arith.constant 0 : index
    %4 = vector.load %arg8[%c0_7, %c0_8] : memref<32x32xf32, #tpu.memory_space<vmem>>, vector<32x32xf32>
    %c0_9 = arith.constant 0 : index
    %c0_10 = arith.constant 0 : index
    %5 = vector.load %arg9[%c0_9, %c0_10] : memref<32x32xf32, #tpu.memory_space<vmem>>, vector<32x32xf32>
    %c0_11 = arith.constant 0 : index
    %c0_12 = arith.constant 0 : index
    %6 = vector.load %arg7[%c0_11, %c0_12] : memref<32x16xf32, #tpu.memory_space<vmem>>, vector<32x16xf32>
    %7 = tpu.iota {dimensions = array<i32: 1>} : vector<32x32xi32>
    %c16_i32 = arith.constant 16 : i32
    %8 = vector.broadcast %c16_i32 : i32 to vector<32x32xi32>
    %9 = arith.cmpi slt, %7, %8 : vector<32x32xi32>
    %cst = arith.constant -1.000000e+00 : f32
    %cst_13 = arith.constant 1.000000e+00 : f32
    %10 = vector.broadcast %cst : f32 to vector<32x32xf32>
    %11 = vector.broadcast %cst_13 : f32 to vector<32x32xf32>
    %12 = arith.select %9, %10, %11 : vector<32x32xi1>, vector<32x32xf32>
    %13 = tpu.iota {dimensions = array<i32: 0>} : vector<32x16xi32>
    %c16_i32_14 = arith.constant 16 : i32
    %c0_i32 = arith.constant 0 : i32
    %14 = arith.cmpi eq, %c16_i32_14, %c0_i32 : i32
    %c1_i32 = arith.constant 1 : i32
    %15 = arith.select %14, %c1_i32, %c16_i32_14 : i32
    %16 = vector.broadcast %15 : i32 to vector<32x16xi32>
    %17 = arith.remsi %13, %16 : vector<32x16xi32>
    %c0_i32_15 = arith.constant 0 : i32
    %18 = vector.broadcast %c0_i32_15 : i32 to vector<32x16xi32>
    %19 = arith.cmpi ne, %17, %18 : vector<32x16xi32>
    %c0_i32_16 = arith.constant 0 : i32
    %20 = vector.broadcast %c0_i32_16 : i32 to vector<32x16xi32>
    %21 = arith.cmpi slt, %17, %20 : vector<32x16xi32>
    %c0_i32_17 = arith.constant 0 : i32
    %22 = arith.cmpi slt, %15, %c0_i32_17 : i32
    %23 = vector.broadcast %22 : i1 to vector<32x16xi1>
    %24 = vector.broadcast %23 : vector<32x16xi1> to vector<32x16xi1>
    %25 = arith.xori %21, %24 : vector<32x16xi1>
    %26 = arith.andi %25, %19 : vector<32x16xi1>
    %27 = vector.broadcast %15 : i32 to vector<32x16xi32>
    %28 = arith.addi %17, %27 : vector<32x16xi32>
    %29 = arith.select %26, %28, %17 : vector<32x16xi1>, vector<32x16xi32>
    %30 = tpu.iota {dimensions = array<i32: 1>} : vector<32x16xi32>
    %c-1_i32 = arith.constant -1 : i32
    %31 = vector.broadcast %c-1_i32 : i32 to vector<32x16xi32>
    %32 = arith.addi %29, %31 : vector<32x16xi32>
    %c0_i32_18 = arith.constant 0 : i32
    %33 = vector.broadcast %c0_i32_18 : i32 to vector<32x16xi32>
    %34 = arith.cmpi sge, %32, %33 : vector<32x16xi32>
    %c-1_i32_19 = arith.constant -1 : i32
    %35 = vector.broadcast %c-1_i32_19 : i32 to vector<32x16xi32>
    %36 = arith.addi %29, %35 : vector<32x16xi32>
    %c16_i32_20 = arith.constant 16 : i32
    %37 = vector.broadcast %c16_i32_20 : i32 to vector<32x16xi32>
    %38 = arith.cmpi slt, %36, %37 : vector<32x16xi32>
    %39 = arith.andi %34, %38 : vector<32x16xi1>
    %c-1_i32_21 = arith.constant -1 : i32
    %40 = vector.broadcast %c-1_i32_21 : i32 to vector<32x16xi32>
    %41 = arith.addi %30, %40 : vector<32x16xi32>
    %c0_i32_22 = arith.constant 0 : i32
    %42 = vector.broadcast %c0_i32_22 : i32 to vector<32x16xi32>
    %43 = arith.cmpi sge, %41, %42 : vector<32x16xi32>
    %44 = arith.andi %39, %43 : vector<32x16xi1>
    %c-1_i32_23 = arith.constant -1 : i32
    %45 = vector.broadcast %c-1_i32_23 : i32 to vector<32x16xi32>
    %46 = arith.addi %30, %45 : vector<32x16xi32>
    %c16_i32_24 = arith.constant 16 : i32
    %47 = vector.broadcast %c16_i32_24 : i32 to vector<32x16xi32>
    %48 = arith.cmpi slt, %46, %47 : vector<32x16xi32>
    %49 = arith.andi %44, %48 : vector<32x16xi1>
    %50 = arith.extui %49 : vector<32x16xi1> to vector<32x16xi32>
    %51 = arith.sitofp %50 : vector<32x16xi32> to vector<32x16xf32>
    %c-1_i32_25 = arith.constant -1 : i32
    %52 = vector.broadcast %c-1_i32_25 : i32 to vector<32x16xi32>
    %53 = arith.addi %29, %52 : vector<32x16xi32>
    %c0_i32_26 = arith.constant 0 : i32
    %54 = vector.broadcast %c0_i32_26 : i32 to vector<32x16xi32>
    %55 = arith.cmpi sge, %53, %54 : vector<32x16xi32>
    %c-1_i32_27 = arith.constant -1 : i32
    %56 = vector.broadcast %c-1_i32_27 : i32 to vector<32x16xi32>
    %57 = arith.addi %29, %56 : vector<32x16xi32>
    %c16_i32_28 = arith.constant 16 : i32
    %58 = vector.broadcast %c16_i32_28 : i32 to vector<32x16xi32>
    %59 = arith.cmpi slt, %57, %58 : vector<32x16xi32>
    %60 = arith.andi %55, %59 : vector<32x16xi1>
    %c0_i32_29 = arith.constant 0 : i32
    %61 = vector.broadcast %c0_i32_29 : i32 to vector<32x16xi32>
    %62 = arith.addi %30, %61 : vector<32x16xi32>
    %c0_i32_30 = arith.constant 0 : i32
    %63 = vector.broadcast %c0_i32_30 : i32 to vector<32x16xi32>
    %64 = arith.cmpi sge, %62, %63 : vector<32x16xi32>
    %65 = arith.andi %60, %64 : vector<32x16xi1>
    %c0_i32_31 = arith.constant 0 : i32
    %66 = vector.broadcast %c0_i32_31 : i32 to vector<32x16xi32>
    %67 = arith.addi %30, %66 : vector<32x16xi32>
    %c16_i32_32 = arith.constant 16 : i32
    %68 = vector.broadcast %c16_i32_32 : i32 to vector<32x16xi32>
    %69 = arith.cmpi slt, %67, %68 : vector<32x16xi32>
    %70 = arith.andi %65, %69 : vector<32x16xi1>
    %71 = arith.extui %70 : vector<32x16xi1> to vector<32x16xi32>
    %72 = arith.sitofp %71 : vector<32x16xi32> to vector<32x16xf32>
    %c-1_i32_33 = arith.constant -1 : i32
    %73 = vector.broadcast %c-1_i32_33 : i32 to vector<32x16xi32>
    %74 = arith.addi %29, %73 : vector<32x16xi32>
    %c0_i32_34 = arith.constant 0 : i32
    %75 = vector.broadcast %c0_i32_34 : i32 to vector<32x16xi32>
    %76 = arith.cmpi sge, %74, %75 : vector<32x16xi32>
    %c-1_i32_35 = arith.constant -1 : i32
    %77 = vector.broadcast %c-1_i32_35 : i32 to vector<32x16xi32>
    %78 = arith.addi %29, %77 : vector<32x16xi32>
    %c16_i32_36 = arith.constant 16 : i32
    %79 = vector.broadcast %c16_i32_36 : i32 to vector<32x16xi32>
    %80 = arith.cmpi slt, %78, %79 : vector<32x16xi32>
    %81 = arith.andi %76, %80 : vector<32x16xi1>
    %c1_i32_37 = arith.constant 1 : i32
    %82 = vector.broadcast %c1_i32_37 : i32 to vector<32x16xi32>
    %83 = arith.addi %30, %82 : vector<32x16xi32>
    %c0_i32_38 = arith.constant 0 : i32
    %84 = vector.broadcast %c0_i32_38 : i32 to vector<32x16xi32>
    %85 = arith.cmpi sge, %83, %84 : vector<32x16xi32>
    %86 = arith.andi %81, %85 : vector<32x16xi1>
    %c1_i32_39 = arith.constant 1 : i32
    %87 = vector.broadcast %c1_i32_39 : i32 to vector<32x16xi32>
    %88 = arith.addi %30, %87 : vector<32x16xi32>
    %c16_i32_40 = arith.constant 16 : i32
    %89 = vector.broadcast %c16_i32_40 : i32 to vector<32x16xi32>
    %90 = arith.cmpi slt, %88, %89 : vector<32x16xi32>
    %91 = arith.andi %86, %90 : vector<32x16xi1>
    %92 = arith.extui %91 : vector<32x16xi1> to vector<32x16xi32>
    %93 = arith.sitofp %92 : vector<32x16xi32> to vector<32x16xf32>
    %c0_i32_41 = arith.constant 0 : i32
    %94 = vector.broadcast %c0_i32_41 : i32 to vector<32x16xi32>
    %95 = arith.addi %29, %94 : vector<32x16xi32>
    %c0_i32_42 = arith.constant 0 : i32
    %96 = vector.broadcast %c0_i32_42 : i32 to vector<32x16xi32>
    %97 = arith.cmpi sge, %95, %96 : vector<32x16xi32>
    %c0_i32_43 = arith.constant 0 : i32
    %98 = vector.broadcast %c0_i32_43 : i32 to vector<32x16xi32>
    %99 = arith.addi %29, %98 : vector<32x16xi32>
    %c16_i32_44 = arith.constant 16 : i32
    %100 = vector.broadcast %c16_i32_44 : i32 to vector<32x16xi32>
    %101 = arith.cmpi slt, %99, %100 : vector<32x16xi32>
    %102 = arith.andi %97, %101 : vector<32x16xi1>
    %c-1_i32_45 = arith.constant -1 : i32
    %103 = vector.broadcast %c-1_i32_45 : i32 to vector<32x16xi32>
    %104 = arith.addi %30, %103 : vector<32x16xi32>
    %c0_i32_46 = arith.constant 0 : i32
    %105 = vector.broadcast %c0_i32_46 : i32 to vector<32x16xi32>
    %106 = arith.cmpi sge, %104, %105 : vector<32x16xi32>
    %107 = arith.andi %102, %106 : vector<32x16xi1>
    %c-1_i32_47 = arith.constant -1 : i32
    %108 = vector.broadcast %c-1_i32_47 : i32 to vector<32x16xi32>
    %109 = arith.addi %30, %108 : vector<32x16xi32>
    %c16_i32_48 = arith.constant 16 : i32
    %110 = vector.broadcast %c16_i32_48 : i32 to vector<32x16xi32>
    %111 = arith.cmpi slt, %109, %110 : vector<32x16xi32>
    %112 = arith.andi %107, %111 : vector<32x16xi1>
    %113 = arith.extui %112 : vector<32x16xi1> to vector<32x16xi32>
    %114 = arith.sitofp %113 : vector<32x16xi32> to vector<32x16xf32>
    %c0_i32_49 = arith.constant 0 : i32
    %115 = vector.broadcast %c0_i32_49 : i32 to vector<32x16xi32>
    %116 = arith.addi %29, %115 : vector<32x16xi32>
    %c0_i32_50 = arith.constant 0 : i32
    %117 = vector.broadcast %c0_i32_50 : i32 to vector<32x16xi32>
    %118 = arith.cmpi sge, %116, %117 : vector<32x16xi32>
    %c0_i32_51 = arith.constant 0 : i32
    %119 = vector.broadcast %c0_i32_51 : i32 to vector<32x16xi32>
    %120 = arith.addi %29, %119 : vector<32x16xi32>
    %c16_i32_52 = arith.constant 16 : i32
    %121 = vector.broadcast %c16_i32_52 : i32 to vector<32x16xi32>
    %122 = arith.cmpi slt, %120, %121 : vector<32x16xi32>
    %123 = arith.andi %118, %122 : vector<32x16xi1>
    %c0_i32_53 = arith.constant 0 : i32
    %124 = vector.broadcast %c0_i32_53 : i32 to vector<32x16xi32>
    %125 = arith.addi %30, %124 : vector<32x16xi32>
    %c0_i32_54 = arith.constant 0 : i32
    %126 = vector.broadcast %c0_i32_54 : i32 to vector<32x16xi32>
    %127 = arith.cmpi sge, %125, %126 : vector<32x16xi32>
    %128 = arith.andi %123, %127 : vector<32x16xi1>
    %c0_i32_55 = arith.constant 0 : i32
    %129 = vector.broadcast %c0_i32_55 : i32 to vector<32x16xi32>
    %130 = arith.addi %30, %129 : vector<32x16xi32>
    %c16_i32_56 = arith.constant 16 : i32
    %131 = vector.broadcast %c16_i32_56 : i32 to vector<32x16xi32>
    %132 = arith.cmpi slt, %130, %131 : vector<32x16xi32>
    %133 = arith.andi %128, %132 : vector<32x16xi1>
    %134 = arith.extui %133 : vector<32x16xi1> to vector<32x16xi32>
    %135 = arith.sitofp %134 : vector<32x16xi32> to vector<32x16xf32>
    %c0_i32_57 = arith.constant 0 : i32
    %136 = vector.broadcast %c0_i32_57 : i32 to vector<32x16xi32>
    %137 = arith.addi %29, %136 : vector<32x16xi32>
    %c0_i32_58 = arith.constant 0 : i32
    %138 = vector.broadcast %c0_i32_58 : i32 to vector<32x16xi32>
    %139 = arith.cmpi sge, %137, %138 : vector<32x16xi32>
    %c0_i32_59 = arith.constant 0 : i32
    %140 = vector.broadcast %c0_i32_59 : i32 to vector<32x16xi32>
    %141 = arith.addi %29, %140 : vector<32x16xi32>
    %c16_i32_60 = arith.constant 16 : i32
    %142 = vector.broadcast %c16_i32_60 : i32 to vector<32x16xi32>
    %143 = arith.cmpi slt, %141, %142 : vector<32x16xi32>
    %144 = arith.andi %139, %143 : vector<32x16xi1>
    %c1_i32_61 = arith.constant 1 : i32
    %145 = vector.broadcast %c1_i32_61 : i32 to vector<32x16xi32>
    %146 = arith.addi %30, %145 : vector<32x16xi32>
    %c0_i32_62 = arith.constant 0 : i32
    %147 = vector.broadcast %c0_i32_62 : i32 to vector<32x16xi32>
    %148 = arith.cmpi sge, %146, %147 : vector<32x16xi32>
    %149 = arith.andi %144, %148 : vector<32x16xi1>
    %c1_i32_63 = arith.constant 1 : i32
    %150 = vector.broadcast %c1_i32_63 : i32 to vector<32x16xi32>
    %151 = arith.addi %30, %150 : vector<32x16xi32>
    %c16_i32_64 = arith.constant 16 : i32
    %152 = vector.broadcast %c16_i32_64 : i32 to vector<32x16xi32>
    %153 = arith.cmpi slt, %151, %152 : vector<32x16xi32>
    %154 = arith.andi %149, %153 : vector<32x16xi1>
    %155 = arith.extui %154 : vector<32x16xi1> to vector<32x16xi32>
    %156 = arith.sitofp %155 : vector<32x16xi32> to vector<32x16xf32>
    %c1_i32_65 = arith.constant 1 : i32
    %157 = vector.broadcast %c1_i32_65 : i32 to vector<32x16xi32>
    %158 = arith.addi %29, %157 : vector<32x16xi32>
    %c0_i32_66 = arith.constant 0 : i32
    %159 = vector.broadcast %c0_i32_66 : i32 to vector<32x16xi32>
    %160 = arith.cmpi sge, %158, %159 : vector<32x16xi32>
    %c1_i32_67 = arith.constant 1 : i32
    %161 = vector.broadcast %c1_i32_67 : i32 to vector<32x16xi32>
    %162 = arith.addi %29, %161 : vector<32x16xi32>
    %c16_i32_68 = arith.constant 16 : i32
    %163 = vector.broadcast %c16_i32_68 : i32 to vector<32x16xi32>
    %164 = arith.cmpi slt, %162, %163 : vector<32x16xi32>
    %165 = arith.andi %160, %164 : vector<32x16xi1>
    %c-1_i32_69 = arith.constant -1 : i32
    %166 = vector.broadcast %c-1_i32_69 : i32 to vector<32x16xi32>
    %167 = arith.addi %30, %166 : vector<32x16xi32>
    %c0_i32_70 = arith.constant 0 : i32
    %168 = vector.broadcast %c0_i32_70 : i32 to vector<32x16xi32>
    %169 = arith.cmpi sge, %167, %168 : vector<32x16xi32>
    %170 = arith.andi %165, %169 : vector<32x16xi1>
    %c-1_i32_71 = arith.constant -1 : i32
    %171 = vector.broadcast %c-1_i32_71 : i32 to vector<32x16xi32>
    %172 = arith.addi %30, %171 : vector<32x16xi32>
    %c16_i32_72 = arith.constant 16 : i32
    %173 = vector.broadcast %c16_i32_72 : i32 to vector<32x16xi32>
    %174 = arith.cmpi slt, %172, %173 : vector<32x16xi32>
    %175 = arith.andi %170, %174 : vector<32x16xi1>
    %176 = arith.extui %175 : vector<32x16xi1> to vector<32x16xi32>
    %177 = arith.sitofp %176 : vector<32x16xi32> to vector<32x16xf32>
    %c1_i32_73 = arith.constant 1 : i32
    %178 = vector.broadcast %c1_i32_73 : i32 to vector<32x16xi32>
    %179 = arith.addi %29, %178 : vector<32x16xi32>
    %c0_i32_74 = arith.constant 0 : i32
    %180 = vector.broadcast %c0_i32_74 : i32 to vector<32x16xi32>
    %181 = arith.cmpi sge, %179, %180 : vector<32x16xi32>
    %c1_i32_75 = arith.constant 1 : i32
    %182 = vector.broadcast %c1_i32_75 : i32 to vector<32x16xi32>
    %183 = arith.addi %29, %182 : vector<32x16xi32>
    %c16_i32_76 = arith.constant 16 : i32
    %184 = vector.broadcast %c16_i32_76 : i32 to vector<32x16xi32>
    %185 = arith.cmpi slt, %183, %184 : vector<32x16xi32>
    %186 = arith.andi %181, %185 : vector<32x16xi1>
    %c0_i32_77 = arith.constant 0 : i32
    %187 = vector.broadcast %c0_i32_77 : i32 to vector<32x16xi32>
    %188 = arith.addi %30, %187 : vector<32x16xi32>
    %c0_i32_78 = arith.constant 0 : i32
    %189 = vector.broadcast %c0_i32_78 : i32 to vector<32x16xi32>
    %190 = arith.cmpi sge, %188, %189 : vector<32x16xi32>
    %191 = arith.andi %186, %190 : vector<32x16xi1>
    %c0_i32_79 = arith.constant 0 : i32
    %192 = vector.broadcast %c0_i32_79 : i32 to vector<32x16xi32>
    %193 = arith.addi %30, %192 : vector<32x16xi32>
    %c16_i32_80 = arith.constant 16 : i32
    %194 = vector.broadcast %c16_i32_80 : i32 to vector<32x16xi32>
    %195 = arith.cmpi slt, %193, %194 : vector<32x16xi32>
    %196 = arith.andi %191, %195 : vector<32x16xi1>
    %197 = arith.extui %196 : vector<32x16xi1> to vector<32x16xi32>
    %198 = arith.sitofp %197 : vector<32x16xi32> to vector<32x16xf32>
    %c1_i32_81 = arith.constant 1 : i32
    %199 = vector.broadcast %c1_i32_81 : i32 to vector<32x16xi32>
    %200 = arith.addi %29, %199 : vector<32x16xi32>
    %c0_i32_82 = arith.constant 0 : i32
    %201 = vector.broadcast %c0_i32_82 : i32 to vector<32x16xi32>
    %202 = arith.cmpi sge, %200, %201 : vector<32x16xi32>
    %c1_i32_83 = arith.constant 1 : i32
    %203 = vector.broadcast %c1_i32_83 : i32 to vector<32x16xi32>
    %204 = arith.addi %29, %203 : vector<32x16xi32>
    %c16_i32_84 = arith.constant 16 : i32
    %205 = vector.broadcast %c16_i32_84 : i32 to vector<32x16xi32>
    %206 = arith.cmpi slt, %204, %205 : vector<32x16xi32>
    %207 = arith.andi %202, %206 : vector<32x16xi1>
    %c1_i32_85 = arith.constant 1 : i32
    %208 = vector.broadcast %c1_i32_85 : i32 to vector<32x16xi32>
    %209 = arith.addi %30, %208 : vector<32x16xi32>
    %c0_i32_86 = arith.constant 0 : i32
    %210 = vector.broadcast %c0_i32_86 : i32 to vector<32x16xi32>
    %211 = arith.cmpi sge, %209, %210 : vector<32x16xi32>
    %212 = arith.andi %207, %211 : vector<32x16xi1>
    %c1_i32_87 = arith.constant 1 : i32
    %213 = vector.broadcast %c1_i32_87 : i32 to vector<32x16xi32>
    %214 = arith.addi %30, %213 : vector<32x16xi32>
    %c16_i32_88 = arith.constant 16 : i32
    %215 = vector.broadcast %c16_i32_88 : i32 to vector<32x16xi32>
    %216 = arith.cmpi slt, %214, %215 : vector<32x16xi32>
    %217 = arith.andi %212, %216 : vector<32x16xi1>
    %218 = arith.extui %217 : vector<32x16xi1> to vector<32x16xi32>
    %219 = arith.sitofp %218 : vector<32x16xi32> to vector<32x16xf32>
    %c0_89 = arith.constant 0 : index
    %220 = memref.load %arg3[%c0_89] : memref<72xf32, #tpu.memory_space<smem>>
    %c1 = arith.constant 1 : index
    %221 = memref.load %arg3[%c1] : memref<72xf32, #tpu.memory_space<smem>>
    %c2 = arith.constant 2 : index
    %222 = memref.load %arg3[%c2] : memref<72xf32, #tpu.memory_space<smem>>
    %c3 = arith.constant 3 : index
    %223 = memref.load %arg3[%c3] : memref<72xf32, #tpu.memory_space<smem>>
    %c4 = arith.constant 4 : index
    %224 = memref.load %arg3[%c4] : memref<72xf32, #tpu.memory_space<smem>>
    %c5 = arith.constant 5 : index
    %225 = memref.load %arg3[%c5] : memref<72xf32, #tpu.memory_space<smem>>
    %c6 = arith.constant 6 : index
    %226 = memref.load %arg3[%c6] : memref<72xf32, #tpu.memory_space<smem>>
    %c7 = arith.constant 7 : index
    %227 = memref.load %arg3[%c7] : memref<72xf32, #tpu.memory_space<smem>>
    %c8 = arith.constant 8 : index
    %228 = memref.load %arg3[%c8] : memref<72xf32, #tpu.memory_space<smem>>
    %c9 = arith.constant 9 : index
    %229 = memref.load %arg3[%c9] : memref<72xf32, #tpu.memory_space<smem>>
    %c10 = arith.constant 10 : index
    %230 = memref.load %arg3[%c10] : memref<72xf32, #tpu.memory_space<smem>>
    %c11 = arith.constant 11 : index
    %231 = memref.load %arg3[%c11] : memref<72xf32, #tpu.memory_space<smem>>
    %c12 = arith.constant 12 : index
    %232 = memref.load %arg3[%c12] : memref<72xf32, #tpu.memory_space<smem>>
    %c13 = arith.constant 13 : index
    %233 = memref.load %arg3[%c13] : memref<72xf32, #tpu.memory_space<smem>>
    %c14 = arith.constant 14 : index
    %234 = memref.load %arg3[%c14] : memref<72xf32, #tpu.memory_space<smem>>
    %c15 = arith.constant 15 : index
    %235 = memref.load %arg3[%c15] : memref<72xf32, #tpu.memory_space<smem>>
    %c16 = arith.constant 16 : index
    %236 = memref.load %arg3[%c16] : memref<72xf32, #tpu.memory_space<smem>>
    %c17 = arith.constant 17 : index
    %237 = memref.load %arg3[%c17] : memref<72xf32, #tpu.memory_space<smem>>
    %c18 = arith.constant 18 : index
    %238 = memref.load %arg3[%c18] : memref<72xf32, #tpu.memory_space<smem>>
    %c19 = arith.constant 19 : index
    %239 = memref.load %arg3[%c19] : memref<72xf32, #tpu.memory_space<smem>>
    %c20 = arith.constant 20 : index
    %240 = memref.load %arg3[%c20] : memref<72xf32, #tpu.memory_space<smem>>
    %c21 = arith.constant 21 : index
    %241 = memref.load %arg3[%c21] : memref<72xf32, #tpu.memory_space<smem>>
    %c22 = arith.constant 22 : index
    %242 = memref.load %arg3[%c22] : memref<72xf32, #tpu.memory_space<smem>>
    %c23 = arith.constant 23 : index
    %243 = memref.load %arg3[%c23] : memref<72xf32, #tpu.memory_space<smem>>
    %c24 = arith.constant 24 : index
    %244 = memref.load %arg3[%c24] : memref<72xf32, #tpu.memory_space<smem>>
    %c25 = arith.constant 25 : index
    %245 = memref.load %arg3[%c25] : memref<72xf32, #tpu.memory_space<smem>>
    %c26 = arith.constant 26 : index
    %246 = memref.load %arg3[%c26] : memref<72xf32, #tpu.memory_space<smem>>
    %c27 = arith.constant 27 : index
    %247 = memref.load %arg3[%c27] : memref<72xf32, #tpu.memory_space<smem>>
    %c28 = arith.constant 28 : index
    %248 = memref.load %arg3[%c28] : memref<72xf32, #tpu.memory_space<smem>>
    %c29 = arith.constant 29 : index
    %249 = memref.load %arg3[%c29] : memref<72xf32, #tpu.memory_space<smem>>
    %c30 = arith.constant 30 : index
    %250 = memref.load %arg3[%c30] : memref<72xf32, #tpu.memory_space<smem>>
    %c31 = arith.constant 31 : index
    %251 = memref.load %arg3[%c31] : memref<72xf32, #tpu.memory_space<smem>>
    %c32 = arith.constant 32 : index
    %252 = memref.load %arg3[%c32] : memref<72xf32, #tpu.memory_space<smem>>
    %c33 = arith.constant 33 : index
    %253 = memref.load %arg3[%c33] : memref<72xf32, #tpu.memory_space<smem>>
    %c34 = arith.constant 34 : index
    %254 = memref.load %arg3[%c34] : memref<72xf32, #tpu.memory_space<smem>>
    %c35 = arith.constant 35 : index
    %255 = memref.load %arg3[%c35] : memref<72xf32, #tpu.memory_space<smem>>
    %c36 = arith.constant 36 : index
    %256 = memref.load %arg3[%c36] : memref<72xf32, #tpu.memory_space<smem>>
    %c37 = arith.constant 37 : index
    %257 = memref.load %arg3[%c37] : memref<72xf32, #tpu.memory_space<smem>>
    %c38 = arith.constant 38 : index
    %258 = memref.load %arg3[%c38] : memref<72xf32, #tpu.memory_space<smem>>
    %c39 = arith.constant 39 : index
    %259 = memref.load %arg3[%c39] : memref<72xf32, #tpu.memory_space<smem>>
    %c40 = arith.constant 40 : index
    %260 = memref.load %arg3[%c40] : memref<72xf32, #tpu.memory_space<smem>>
    %c41 = arith.constant 41 : index
    %261 = memref.load %arg3[%c41] : memref<72xf32, #tpu.memory_space<smem>>
    %c42 = arith.constant 42 : index
    %262 = memref.load %arg3[%c42] : memref<72xf32, #tpu.memory_space<smem>>
    %c43 = arith.constant 43 : index
    %263 = memref.load %arg3[%c43] : memref<72xf32, #tpu.memory_space<smem>>
    %c44 = arith.constant 44 : index
    %264 = memref.load %arg3[%c44] : memref<72xf32, #tpu.memory_space<smem>>
    %c45 = arith.constant 45 : index
    %265 = memref.load %arg3[%c45] : memref<72xf32, #tpu.memory_space<smem>>
    %c46 = arith.constant 46 : index
    %266 = memref.load %arg3[%c46] : memref<72xf32, #tpu.memory_space<smem>>
    %c47 = arith.constant 47 : index
    %267 = memref.load %arg3[%c47] : memref<72xf32, #tpu.memory_space<smem>>
    %c48 = arith.constant 48 : index
    %268 = memref.load %arg3[%c48] : memref<72xf32, #tpu.memory_space<smem>>
    %c49 = arith.constant 49 : index
    %269 = memref.load %arg3[%c49] : memref<72xf32, #tpu.memory_space<smem>>
    %c50 = arith.constant 50 : index
    %270 = memref.load %arg3[%c50] : memref<72xf32, #tpu.memory_space<smem>>
    %c51 = arith.constant 51 : index
    %271 = memref.load %arg3[%c51] : memref<72xf32, #tpu.memory_space<smem>>
    %c52 = arith.constant 52 : index
    %272 = memref.load %arg3[%c52] : memref<72xf32, #tpu.memory_space<smem>>
    %c53 = arith.constant 53 : index
    %273 = memref.load %arg3[%c53] : memref<72xf32, #tpu.memory_space<smem>>
    %c54 = arith.constant 54 : index
    %274 = memref.load %arg3[%c54] : memref<72xf32, #tpu.memory_space<smem>>
    %c55 = arith.constant 55 : index
    %275 = memref.load %arg3[%c55] : memref<72xf32, #tpu.memory_space<smem>>
    %c56 = arith.constant 56 : index
    %276 = memref.load %arg3[%c56] : memref<72xf32, #tpu.memory_space<smem>>
    %c57 = arith.constant 57 : index
    %277 = memref.load %arg3[%c57] : memref<72xf32, #tpu.memory_space<smem>>
    %c58 = arith.constant 58 : index
    %278 = memref.load %arg3[%c58] : memref<72xf32, #tpu.memory_space<smem>>
    %c59 = arith.constant 59 : index
    %279 = memref.load %arg3[%c59] : memref<72xf32, #tpu.memory_space<smem>>
    %c60 = arith.constant 60 : index
    %280 = memref.load %arg3[%c60] : memref<72xf32, #tpu.memory_space<smem>>
    %c61 = arith.constant 61 : index
    %281 = memref.load %arg3[%c61] : memref<72xf32, #tpu.memory_space<smem>>
    %c62 = arith.constant 62 : index
    %282 = memref.load %arg3[%c62] : memref<72xf32, #tpu.memory_space<smem>>
    %c63 = arith.constant 63 : index
    %283 = memref.load %arg3[%c63] : memref<72xf32, #tpu.memory_space<smem>>
    %c64 = arith.constant 64 : index
    %284 = memref.load %arg3[%c64] : memref<72xf32, #tpu.memory_space<smem>>
    %c65 = arith.constant 65 : index
    %285 = memref.load %arg3[%c65] : memref<72xf32, #tpu.memory_space<smem>>
    %c66 = arith.constant 66 : index
    %286 = memref.load %arg3[%c66] : memref<72xf32, #tpu.memory_space<smem>>
    %c67 = arith.constant 67 : index
    %287 = memref.load %arg3[%c67] : memref<72xf32, #tpu.memory_space<smem>>
    %c68 = arith.constant 68 : index
    %288 = memref.load %arg3[%c68] : memref<72xf32, #tpu.memory_space<smem>>
    %c69 = arith.constant 69 : index
    %289 = memref.load %arg3[%c69] : memref<72xf32, #tpu.memory_space<smem>>
    %c70 = arith.constant 70 : index
    %290 = memref.load %arg3[%c70] : memref<72xf32, #tpu.memory_space<smem>>
    %c71 = arith.constant 71 : index
    %291 = memref.load %arg3[%c71] : memref<72xf32, #tpu.memory_space<smem>>
    %c0_90 = arith.constant 0 : index
    %292 = memref.load %arg4[%c0_90] : memref<4xf32, #tpu.memory_space<smem>>
    %c1_91 = arith.constant 1 : index
    %293 = memref.load %arg4[%c1_91] : memref<4xf32, #tpu.memory_space<smem>>
    %c2_92 = arith.constant 2 : index
    %294 = memref.load %arg4[%c2_92] : memref<4xf32, #tpu.memory_space<smem>>
    %c3_93 = arith.constant 3 : index
    %295 = memref.load %arg4[%c3_93] : memref<4xf32, #tpu.memory_space<smem>>
    %c0_94 = arith.constant 0 : index
    %296 = memref.load %arg5[%c0_94] : memref<36xf32, #tpu.memory_space<smem>>
    %c1_95 = arith.constant 1 : index
    %297 = memref.load %arg5[%c1_95] : memref<36xf32, #tpu.memory_space<smem>>
    %c2_96 = arith.constant 2 : index
    %298 = memref.load %arg5[%c2_96] : memref<36xf32, #tpu.memory_space<smem>>
    %c3_97 = arith.constant 3 : index
    %299 = memref.load %arg5[%c3_97] : memref<36xf32, #tpu.memory_space<smem>>
    %c4_98 = arith.constant 4 : index
    %300 = memref.load %arg5[%c4_98] : memref<36xf32, #tpu.memory_space<smem>>
    %c5_99 = arith.constant 5 : index
    %301 = memref.load %arg5[%c5_99] : memref<36xf32, #tpu.memory_space<smem>>
    %c6_100 = arith.constant 6 : index
    %302 = memref.load %arg5[%c6_100] : memref<36xf32, #tpu.memory_space<smem>>
    %c7_101 = arith.constant 7 : index
    %303 = memref.load %arg5[%c7_101] : memref<36xf32, #tpu.memory_space<smem>>
    %c8_102 = arith.constant 8 : index
    %304 = memref.load %arg5[%c8_102] : memref<36xf32, #tpu.memory_space<smem>>
    %c9_103 = arith.constant 9 : index
    %305 = memref.load %arg5[%c9_103] : memref<36xf32, #tpu.memory_space<smem>>
    %c10_104 = arith.constant 10 : index
    %306 = memref.load %arg5[%c10_104] : memref<36xf32, #tpu.memory_space<smem>>
    %c11_105 = arith.constant 11 : index
    %307 = memref.load %arg5[%c11_105] : memref<36xf32, #tpu.memory_space<smem>>
    %c12_106 = arith.constant 12 : index
    %308 = memref.load %arg5[%c12_106] : memref<36xf32, #tpu.memory_space<smem>>
    %c13_107 = arith.constant 13 : index
    %309 = memref.load %arg5[%c13_107] : memref<36xf32, #tpu.memory_space<smem>>
    %c14_108 = arith.constant 14 : index
    %310 = memref.load %arg5[%c14_108] : memref<36xf32, #tpu.memory_space<smem>>
    %c15_109 = arith.constant 15 : index
    %311 = memref.load %arg5[%c15_109] : memref<36xf32, #tpu.memory_space<smem>>
    %c16_110 = arith.constant 16 : index
    %312 = memref.load %arg5[%c16_110] : memref<36xf32, #tpu.memory_space<smem>>
    %c17_111 = arith.constant 17 : index
    %313 = memref.load %arg5[%c17_111] : memref<36xf32, #tpu.memory_space<smem>>
    %c18_112 = arith.constant 18 : index
    %314 = memref.load %arg5[%c18_112] : memref<36xf32, #tpu.memory_space<smem>>
    %c19_113 = arith.constant 19 : index
    %315 = memref.load %arg5[%c19_113] : memref<36xf32, #tpu.memory_space<smem>>
    %c20_114 = arith.constant 20 : index
    %316 = memref.load %arg5[%c20_114] : memref<36xf32, #tpu.memory_space<smem>>
    %c21_115 = arith.constant 21 : index
    %317 = memref.load %arg5[%c21_115] : memref<36xf32, #tpu.memory_space<smem>>
    %c22_116 = arith.constant 22 : index
    %318 = memref.load %arg5[%c22_116] : memref<36xf32, #tpu.memory_space<smem>>
    %c23_117 = arith.constant 23 : index
    %319 = memref.load %arg5[%c23_117] : memref<36xf32, #tpu.memory_space<smem>>
    %c24_118 = arith.constant 24 : index
    %320 = memref.load %arg5[%c24_118] : memref<36xf32, #tpu.memory_space<smem>>
    %c25_119 = arith.constant 25 : index
    %321 = memref.load %arg5[%c25_119] : memref<36xf32, #tpu.memory_space<smem>>
    %c26_120 = arith.constant 26 : index
    %322 = memref.load %arg5[%c26_120] : memref<36xf32, #tpu.memory_space<smem>>
    %c27_121 = arith.constant 27 : index
    %323 = memref.load %arg5[%c27_121] : memref<36xf32, #tpu.memory_space<smem>>
    %c28_122 = arith.constant 28 : index
    %324 = memref.load %arg5[%c28_122] : memref<36xf32, #tpu.memory_space<smem>>
    %c29_123 = arith.constant 29 : index
    %325 = memref.load %arg5[%c29_123] : memref<36xf32, #tpu.memory_space<smem>>
    %c30_124 = arith.constant 30 : index
    %326 = memref.load %arg5[%c30_124] : memref<36xf32, #tpu.memory_space<smem>>
    %c31_125 = arith.constant 31 : index
    %327 = memref.load %arg5[%c31_125] : memref<36xf32, #tpu.memory_space<smem>>
    %c32_126 = arith.constant 32 : index
    %328 = memref.load %arg5[%c32_126] : memref<36xf32, #tpu.memory_space<smem>>
    %c33_127 = arith.constant 33 : index
    %329 = memref.load %arg5[%c33_127] : memref<36xf32, #tpu.memory_space<smem>>
    %c34_128 = arith.constant 34 : index
    %330 = memref.load %arg5[%c34_128] : memref<36xf32, #tpu.memory_space<smem>>
    %c35_129 = arith.constant 35 : index
    %331 = memref.load %arg5[%c35_129] : memref<36xf32, #tpu.memory_space<smem>>
    %c0_130 = arith.constant 0 : index
    %332 = memref.load %arg6[%c0_130] : memref<1xf32, #tpu.memory_space<smem>>
    %cst_131 = arith.constant 0.000000e+00 : f32
    %333 = vector.broadcast %cst_131 : f32 to vector<32x16xf32>
    %334 = vector.broadcast %229 : f32 to vector<32x16xf32>
    %335 = arith.mulf %334, %51 : vector<32x16xf32>
    %336 = arith.addf %333, %335 : vector<32x16xf32>
    %337 = vector.broadcast %230 : f32 to vector<32x16xf32>
    %338 = arith.mulf %337, %72 : vector<32x16xf32>
    %339 = arith.addf %336, %338 : vector<32x16xf32>
    %340 = vector.broadcast %231 : f32 to vector<32x16xf32>
    %341 = arith.mulf %340, %93 : vector<32x16xf32>
    %342 = arith.addf %339, %341 : vector<32x16xf32>
    %343 = vector.broadcast %232 : f32 to vector<32x16xf32>
    %344 = arith.mulf %343, %114 : vector<32x16xf32>
    %345 = arith.addf %342, %344 : vector<32x16xf32>
    %346 = vector.broadcast %233 : f32 to vector<32x16xf32>
    %347 = arith.mulf %346, %135 : vector<32x16xf32>
    %348 = arith.addf %345, %347 : vector<32x16xf32>
    %349 = vector.broadcast %234 : f32 to vector<32x16xf32>
    %350 = arith.mulf %349, %156 : vector<32x16xf32>
    %351 = arith.addf %348, %350 : vector<32x16xf32>
    %352 = vector.broadcast %235 : f32 to vector<32x16xf32>
    %353 = arith.mulf %352, %177 : vector<32x16xf32>
    %354 = arith.addf %351, %353 : vector<32x16xf32>
    %355 = vector.broadcast %236 : f32 to vector<32x16xf32>
    %356 = arith.mulf %355, %198 : vector<32x16xf32>
    %357 = arith.addf %354, %356 : vector<32x16xf32>
    %358 = vector.broadcast %237 : f32 to vector<32x16xf32>
    %359 = arith.mulf %358, %219 : vector<32x16xf32>
    %360 = arith.addf %357, %359 : vector<32x16xf32>
    %cst_132 = arith.constant 0.000000e+00 : f32
    %361 = vector.broadcast %cst_132 : f32 to vector<32x16xf32>
    %362 = vector.broadcast %247 : f32 to vector<32x16xf32>
    %363 = arith.mulf %362, %51 : vector<32x16xf32>
    %364 = arith.addf %361, %363 : vector<32x16xf32>
    %365 = vector.broadcast %248 : f32 to vector<32x16xf32>
    %366 = arith.mulf %365, %72 : vector<32x16xf32>
    %367 = arith.addf %364, %366 : vector<32x16xf32>
    %368 = vector.broadcast %249 : f32 to vector<32x16xf32>
    %369 = arith.mulf %368, %93 : vector<32x16xf32>
    %370 = arith.addf %367, %369 : vector<32x16xf32>
    %371 = vector.broadcast %250 : f32 to vector<32x16xf32>
    %372 = arith.mulf %371, %114 : vector<32x16xf32>
    %373 = arith.addf %370, %372 : vector<32x16xf32>
    %374 = vector.broadcast %251 : f32 to vector<32x16xf32>
    %375 = arith.mulf %374, %135 : vector<32x16xf32>
    %376 = arith.addf %373, %375 : vector<32x16xf32>
    %377 = vector.broadcast %252 : f32 to vector<32x16xf32>
    %378 = arith.mulf %377, %156 : vector<32x16xf32>
    %379 = arith.addf %376, %378 : vector<32x16xf32>
    %380 = vector.broadcast %253 : f32 to vector<32x16xf32>
    %381 = arith.mulf %380, %177 : vector<32x16xf32>
    %382 = arith.addf %379, %381 : vector<32x16xf32>
    %383 = vector.broadcast %254 : f32 to vector<32x16xf32>
    %384 = arith.mulf %383, %198 : vector<32x16xf32>
    %385 = arith.addf %382, %384 : vector<32x16xf32>
    %386 = vector.broadcast %255 : f32 to vector<32x16xf32>
    %387 = arith.mulf %386, %219 : vector<32x16xf32>
    %388 = arith.addf %385, %387 : vector<32x16xf32>
    %cst_133 = arith.constant 0.000000e+00 : f32
    %389 = vector.broadcast %cst_133 : f32 to vector<32x16xf32>
    %390 = vector.broadcast %265 : f32 to vector<32x16xf32>
    %391 = arith.mulf %390, %51 : vector<32x16xf32>
    %392 = arith.addf %389, %391 : vector<32x16xf32>
    %393 = vector.broadcast %266 : f32 to vector<32x16xf32>
    %394 = arith.mulf %393, %72 : vector<32x16xf32>
    %395 = arith.addf %392, %394 : vector<32x16xf32>
    %396 = vector.broadcast %267 : f32 to vector<32x16xf32>
    %397 = arith.mulf %396, %93 : vector<32x16xf32>
    %398 = arith.addf %395, %397 : vector<32x16xf32>
    %399 = vector.broadcast %268 : f32 to vector<32x16xf32>
    %400 = arith.mulf %399, %114 : vector<32x16xf32>
    %401 = arith.addf %398, %400 : vector<32x16xf32>
    %402 = vector.broadcast %269 : f32 to vector<32x16xf32>
    %403 = arith.mulf %402, %135 : vector<32x16xf32>
    %404 = arith.addf %401, %403 : vector<32x16xf32>
    %405 = vector.broadcast %270 : f32 to vector<32x16xf32>
    %406 = arith.mulf %405, %156 : vector<32x16xf32>
    %407 = arith.addf %404, %406 : vector<32x16xf32>
    %408 = vector.broadcast %271 : f32 to vector<32x16xf32>
    %409 = arith.mulf %408, %177 : vector<32x16xf32>
    %410 = arith.addf %407, %409 : vector<32x16xf32>
    %411 = vector.broadcast %272 : f32 to vector<32x16xf32>
    %412 = arith.mulf %411, %198 : vector<32x16xf32>
    %413 = arith.addf %410, %412 : vector<32x16xf32>
    %414 = vector.broadcast %273 : f32 to vector<32x16xf32>
    %415 = arith.mulf %414, %219 : vector<32x16xf32>
    %416 = arith.addf %413, %415 : vector<32x16xf32>
    %cst_134 = arith.constant 0.000000e+00 : f32
    %417 = vector.broadcast %cst_134 : f32 to vector<32x16xf32>
    %418 = vector.broadcast %283 : f32 to vector<32x16xf32>
    %419 = arith.mulf %418, %51 : vector<32x16xf32>
    %420 = arith.addf %417, %419 : vector<32x16xf32>
    %421 = vector.broadcast %284 : f32 to vector<32x16xf32>
    %422 = arith.mulf %421, %72 : vector<32x16xf32>
    %423 = arith.addf %420, %422 : vector<32x16xf32>
    %424 = vector.broadcast %285 : f32 to vector<32x16xf32>
    %425 = arith.mulf %424, %93 : vector<32x16xf32>
    %426 = arith.addf %423, %425 : vector<32x16xf32>
    %427 = vector.broadcast %286 : f32 to vector<32x16xf32>
    %428 = arith.mulf %427, %114 : vector<32x16xf32>
    %429 = arith.addf %426, %428 : vector<32x16xf32>
    %430 = vector.broadcast %287 : f32 to vector<32x16xf32>
    %431 = arith.mulf %430, %135 : vector<32x16xf32>
    %432 = arith.addf %429, %431 : vector<32x16xf32>
    %433 = vector.broadcast %288 : f32 to vector<32x16xf32>
    %434 = arith.mulf %433, %156 : vector<32x16xf32>
    %435 = arith.addf %432, %434 : vector<32x16xf32>
    %436 = vector.broadcast %289 : f32 to vector<32x16xf32>
    %437 = arith.mulf %436, %177 : vector<32x16xf32>
    %438 = arith.addf %435, %437 : vector<32x16xf32>
    %439 = vector.broadcast %290 : f32 to vector<32x16xf32>
    %440 = arith.mulf %439, %198 : vector<32x16xf32>
    %441 = arith.addf %438, %440 : vector<32x16xf32>
    %442 = vector.broadcast %291 : f32 to vector<32x16xf32>
    %443 = arith.mulf %442, %219 : vector<32x16xf32>
    %444 = arith.addf %441, %443 : vector<32x16xf32>
    %c0_i32_135 = arith.constant 0 : i32
    %c5_i32 = arith.constant 5 : i32
    %445 = arith.addi %c0_i32_135, %c5_i32 : i32
    %c1_i32_136 = arith.constant 1 : i32
    %446 = scf.for %arg15 = %c0_i32_135 to %445 step %c1_i32_136 iter_args(%arg16 = %6) -> (vector<32x16xf32>)  : i32 {
      %448 = arith.index_cast %arg15 : i32 to index
      %449 = memref.load %arg1[%448] : memref<5xf32, #tpu.memory_space<smem>>
      %450 = arith.index_cast %arg15 : i32 to index
      %451 = memref.load %arg2[%450] : memref<5xf32, #tpu.memory_space<smem>>
      %cst_140 = arith.constant dense<0.000000e+00> : vector<32x32xf32>
      %452 = tpu.matmul %arg16, %0, %cst_140 {dimension_numbers = #tpu.dot_dimension_numbers<[1], [0], [0], [1], [0, 0, 1, 1], [], []>} : vector<32x16xf32>, vector<16x32xf32>, vector<32x32xf32> -> vector<32x32xf32>
      %cst_141 = arith.constant dense<0.000000e+00> : vector<32x32xf32>
      %453 = tpu.matmul %2, %452, %cst_141 {dimension_numbers = #tpu.dot_dimension_numbers<[1], [0], [0], [1], [0, 0, 1, 1], [], []>} : vector<32x32xf32>, vector<32x32xf32>, vector<32x32xf32> -> vector<32x32xf32>
      %cst_142 = arith.constant dense<0.000000e+00> : vector<32x32xf32>
      %454 = tpu.matmul %3, %452, %cst_142 {dimension_numbers = #tpu.dot_dimension_numbers<[1], [0], [0], [1], [0, 0, 1, 1], [], []>} : vector<32x32xf32>, vector<32x32xf32>, vector<32x32xf32> -> vector<32x32xf32>
      %c16_i32_143 = arith.constant 16 : i32
      %455 = tpu.dynamic_rotate %454 by %c16_i32_143 dim 1 : vector<32x32xf32>, i32 -> vector<32x32xf32>
      %456 = arith.mulf %455, %12 : vector<32x32xf32>
      %457 = arith.addf %453, %456 : vector<32x32xf32>
      %458 = vector.broadcast %449 : f32 to vector<32x32xf32>
      %459 = arith.mulf %458, %457 : vector<32x32xf32>
      %460 = arith.addf %4, %459 : vector<32x32xf32>
      %461 = vector.broadcast %449 : f32 to vector<32x32xf32>
      %462 = arith.addf %5, %461 : vector<32x32xf32>
      %463 = tpu.reciprocal %462 {approx = true} : vector<32x32xf32> -> vector<32x32xf32>
      %464 = arith.mulf %460, %463 : vector<32x32xf32>
      %cst_144 = arith.constant dense<0.000000e+00> : vector<32x32xf32>
      %465 = tpu.matmul %464, %1, %cst_144 {dimension_numbers = #tpu.dot_dimension_numbers<[1], [0], [0], [1], [0, 0, 1, 1], [], []>} : vector<32x32xf32>, vector<32x32xf32>, vector<32x32xf32> -> vector<32x32xf32>
      %466 = vector.extract_strided_slice %465 {offsets = [0, 0], sizes = [32, 16], strides = [1, 1]} : vector<32x32xf32> to vector<32x16xf32>
      %cst_145 = arith.constant dense<0.000000e+00> : vector<32x16xf32>
      %467 = tpu.matmul %2, %466, %cst_145 {dimension_numbers = #tpu.dot_dimension_numbers<[1], [0], [0], [1], [0, 0, 1, 1], [], []>} : vector<32x32xf32>, vector<32x16xf32>, vector<32x16xf32> -> vector<32x16xf32>
      %468 = vector.extract_strided_slice %465 {offsets = [0, 16], sizes = [32, 16], strides = [1, 1]} : vector<32x32xf32> to vector<32x16xf32>
      %cst_146 = arith.constant dense<0.000000e+00> : vector<32x16xf32>
      %469 = tpu.matmul %3, %468, %cst_146 {dimension_numbers = #tpu.dot_dimension_numbers<[1], [0], [0], [1], [0, 0, 1, 1], [], []>} : vector<32x32xf32>, vector<32x16xf32>, vector<32x16xf32> -> vector<32x16xf32>
      %470 = arith.addf %467, %469 : vector<32x16xf32>
      %c1_i32_147 = arith.constant 1 : i32
      %471 = tpu.dynamic_rotate %470 by %c1_i32_147 dim 0 : vector<32x16xf32>, i32 -> vector<32x16xf32>
      %c1_i32_148 = arith.constant 1 : i32
      %472 = tpu.dynamic_rotate %471 by %c1_i32_148 dim 1 : vector<32x16xf32>, i32 -> vector<32x16xf32>
      %473 = arith.mulf %472, %51 : vector<32x16xf32>
      %c1_i32_149 = arith.constant 1 : i32
      %474 = tpu.dynamic_rotate %470 by %c1_i32_149 dim 0 : vector<32x16xf32>, i32 -> vector<32x16xf32>
      %475 = arith.mulf %474, %72 : vector<32x16xf32>
      %c1_i32_150 = arith.constant 1 : i32
      %476 = tpu.dynamic_rotate %470 by %c1_i32_150 dim 0 : vector<32x16xf32>, i32 -> vector<32x16xf32>
      %c15_i32 = arith.constant 15 : i32
      %477 = tpu.dynamic_rotate %476 by %c15_i32 dim 1 : vector<32x16xf32>, i32 -> vector<32x16xf32>
      %478 = arith.mulf %477, %93 : vector<32x16xf32>
      %c1_i32_151 = arith.constant 1 : i32
      %479 = tpu.dynamic_rotate %470 by %c1_i32_151 dim 1 : vector<32x16xf32>, i32 -> vector<32x16xf32>
      %480 = arith.mulf %479, %114 : vector<32x16xf32>
      %c15_i32_152 = arith.constant 15 : i32
      %481 = tpu.dynamic_rotate %470 by %c15_i32_152 dim 1 : vector<32x16xf32>, i32 -> vector<32x16xf32>
      %482 = arith.mulf %481, %156 : vector<32x16xf32>
      %c31_i32 = arith.constant 31 : i32
      %483 = tpu.dynamic_rotate %470 by %c31_i32 dim 0 : vector<32x16xf32>, i32 -> vector<32x16xf32>
      %c1_i32_153 = arith.constant 1 : i32
      %484 = tpu.dynamic_rotate %483 by %c1_i32_153 dim 1 : vector<32x16xf32>, i32 -> vector<32x16xf32>
      %485 = arith.mulf %484, %177 : vector<32x16xf32>
      %c31_i32_154 = arith.constant 31 : i32
      %486 = tpu.dynamic_rotate %470 by %c31_i32_154 dim 0 : vector<32x16xf32>, i32 -> vector<32x16xf32>
      %487 = arith.mulf %486, %198 : vector<32x16xf32>
      %c31_i32_155 = arith.constant 31 : i32
      %488 = tpu.dynamic_rotate %470 by %c31_i32_155 dim 0 : vector<32x16xf32>, i32 -> vector<32x16xf32>
      %c15_i32_156 = arith.constant 15 : i32
      %489 = tpu.dynamic_rotate %488 by %c15_i32_156 dim 1 : vector<32x16xf32>, i32 -> vector<32x16xf32>
      %490 = arith.mulf %489, %219 : vector<32x16xf32>
      %491 = vector.broadcast %451 : f32 to vector<32x16xf32>
      %492 = arith.mulf %491, %360 : vector<32x16xf32>
      %493 = vector.broadcast %292 : f32 to vector<32x16xf32>
      %494 = arith.addf %493, %492 : vector<32x16xf32>
      %495 = vector.broadcast %220 : f32 to vector<32x16xf32>
      %496 = arith.mulf %495, %473 : vector<32x16xf32>
      %497 = arith.addf %494, %496 : vector<32x16xf32>
      %498 = vector.broadcast %221 : f32 to vector<32x16xf32>
      %499 = arith.mulf %498, %475 : vector<32x16xf32>
      %500 = arith.addf %497, %499 : vector<32x16xf32>
      %501 = vector.broadcast %222 : f32 to vector<32x16xf32>
      %502 = arith.mulf %501, %478 : vector<32x16xf32>
      %503 = arith.addf %500, %502 : vector<32x16xf32>
      %504 = vector.broadcast %223 : f32 to vector<32x16xf32>
      %505 = arith.mulf %504, %480 : vector<32x16xf32>
      %506 = arith.addf %503, %505 : vector<32x16xf32>
      %507 = vector.broadcast %224 : f32 to vector<32x16xf32>
      %508 = arith.mulf %507, %470 : vector<32x16xf32>
      %509 = arith.addf %506, %508 : vector<32x16xf32>
      %510 = vector.broadcast %225 : f32 to vector<32x16xf32>
      %511 = arith.mulf %510, %482 : vector<32x16xf32>
      %512 = arith.addf %509, %511 : vector<32x16xf32>
      %513 = vector.broadcast %226 : f32 to vector<32x16xf32>
      %514 = arith.mulf %513, %485 : vector<32x16xf32>
      %515 = arith.addf %512, %514 : vector<32x16xf32>
      %516 = vector.broadcast %227 : f32 to vector<32x16xf32>
      %517 = arith.mulf %516, %487 : vector<32x16xf32>
      %518 = arith.addf %515, %517 : vector<32x16xf32>
      %519 = vector.broadcast %228 : f32 to vector<32x16xf32>
      %520 = arith.mulf %519, %490 : vector<32x16xf32>
      %521 = arith.addf %518, %520 : vector<32x16xf32>
      %cst_157 = arith.constant 0.000000e+00 : f32
      %522 = vector.broadcast %cst_157 : f32 to vector<32x16xf32>
      %523 = arith.maximumf %521, %522 : vector<32x16xf32>
      %524 = vector.broadcast %451 : f32 to vector<32x16xf32>
      %525 = arith.mulf %524, %388 : vector<32x16xf32>
      %526 = vector.broadcast %293 : f32 to vector<32x16xf32>
      %527 = arith.addf %526, %525 : vector<32x16xf32>
      %528 = vector.broadcast %238 : f32 to vector<32x16xf32>
      %529 = arith.mulf %528, %473 : vector<32x16xf32>
      %530 = arith.addf %527, %529 : vector<32x16xf32>
      %531 = vector.broadcast %239 : f32 to vector<32x16xf32>
      %532 = arith.mulf %531, %475 : vector<32x16xf32>
      %533 = arith.addf %530, %532 : vector<32x16xf32>
      %534 = vector.broadcast %240 : f32 to vector<32x16xf32>
      %535 = arith.mulf %534, %478 : vector<32x16xf32>
      %536 = arith.addf %533, %535 : vector<32x16xf32>
      %537 = vector.broadcast %241 : f32 to vector<32x16xf32>
      %538 = arith.mulf %537, %480 : vector<32x16xf32>
      %539 = arith.addf %536, %538 : vector<32x16xf32>
      %540 = vector.broadcast %242 : f32 to vector<32x16xf32>
      %541 = arith.mulf %540, %470 : vector<32x16xf32>
      %542 = arith.addf %539, %541 : vector<32x16xf32>
      %543 = vector.broadcast %243 : f32 to vector<32x16xf32>
      %544 = arith.mulf %543, %482 : vector<32x16xf32>
      %545 = arith.addf %542, %544 : vector<32x16xf32>
      %546 = vector.broadcast %244 : f32 to vector<32x16xf32>
      %547 = arith.mulf %546, %485 : vector<32x16xf32>
      %548 = arith.addf %545, %547 : vector<32x16xf32>
      %549 = vector.broadcast %245 : f32 to vector<32x16xf32>
      %550 = arith.mulf %549, %487 : vector<32x16xf32>
      %551 = arith.addf %548, %550 : vector<32x16xf32>
      %552 = vector.broadcast %246 : f32 to vector<32x16xf32>
      %553 = arith.mulf %552, %490 : vector<32x16xf32>
      %554 = arith.addf %551, %553 : vector<32x16xf32>
      %cst_158 = arith.constant 0.000000e+00 : f32
      %555 = vector.broadcast %cst_158 : f32 to vector<32x16xf32>
      %556 = arith.maximumf %554, %555 : vector<32x16xf32>
      %557 = vector.broadcast %451 : f32 to vector<32x16xf32>
      %558 = arith.mulf %557, %416 : vector<32x16xf32>
      %559 = vector.broadcast %294 : f32 to vector<32x16xf32>
      %560 = arith.addf %559, %558 : vector<32x16xf32>
      %561 = vector.broadcast %256 : f32 to vector<32x16xf32>
      %562 = arith.mulf %561, %473 : vector<32x16xf32>
      %563 = arith.addf %560, %562 : vector<32x16xf32>
      %564 = vector.broadcast %257 : f32 to vector<32x16xf32>
      %565 = arith.mulf %564, %475 : vector<32x16xf32>
      %566 = arith.addf %563, %565 : vector<32x16xf32>
      %567 = vector.broadcast %258 : f32 to vector<32x16xf32>
      %568 = arith.mulf %567, %478 : vector<32x16xf32>
      %569 = arith.addf %566, %568 : vector<32x16xf32>
      %570 = vector.broadcast %259 : f32 to vector<32x16xf32>
      %571 = arith.mulf %570, %480 : vector<32x16xf32>
      %572 = arith.addf %569, %571 : vector<32x16xf32>
      %573 = vector.broadcast %260 : f32 to vector<32x16xf32>
      %574 = arith.mulf %573, %470 : vector<32x16xf32>
      %575 = arith.addf %572, %574 : vector<32x16xf32>
      %576 = vector.broadcast %261 : f32 to vector<32x16xf32>
      %577 = arith.mulf %576, %482 : vector<32x16xf32>
      %578 = arith.addf %575, %577 : vector<32x16xf32>
      %579 = vector.broadcast %262 : f32 to vector<32x16xf32>
      %580 = arith.mulf %579, %485 : vector<32x16xf32>
      %581 = arith.addf %578, %580 : vector<32x16xf32>
      %582 = vector.broadcast %263 : f32 to vector<32x16xf32>
      %583 = arith.mulf %582, %487 : vector<32x16xf32>
      %584 = arith.addf %581, %583 : vector<32x16xf32>
      %585 = vector.broadcast %264 : f32 to vector<32x16xf32>
      %586 = arith.mulf %585, %490 : vector<32x16xf32>
      %587 = arith.addf %584, %586 : vector<32x16xf32>
      %cst_159 = arith.constant 0.000000e+00 : f32
      %588 = vector.broadcast %cst_159 : f32 to vector<32x16xf32>
      %589 = arith.maximumf %587, %588 : vector<32x16xf32>
      %590 = vector.broadcast %451 : f32 to vector<32x16xf32>
      %591 = arith.mulf %590, %444 : vector<32x16xf32>
      %592 = vector.broadcast %295 : f32 to vector<32x16xf32>
      %593 = arith.addf %592, %591 : vector<32x16xf32>
      %594 = vector.broadcast %274 : f32 to vector<32x16xf32>
      %595 = arith.mulf %594, %473 : vector<32x16xf32>
      %596 = arith.addf %593, %595 : vector<32x16xf32>
      %597 = vector.broadcast %275 : f32 to vector<32x16xf32>
      %598 = arith.mulf %597, %475 : vector<32x16xf32>
      %599 = arith.addf %596, %598 : vector<32x16xf32>
      %600 = vector.broadcast %276 : f32 to vector<32x16xf32>
      %601 = arith.mulf %600, %478 : vector<32x16xf32>
      %602 = arith.addf %599, %601 : vector<32x16xf32>
      %603 = vector.broadcast %277 : f32 to vector<32x16xf32>
      %604 = arith.mulf %603, %480 : vector<32x16xf32>
      %605 = arith.addf %602, %604 : vector<32x16xf32>
      %606 = vector.broadcast %278 : f32 to vector<32x16xf32>
      %607 = arith.mulf %606, %470 : vector<32x16xf32>
      %608 = arith.addf %605, %607 : vector<32x16xf32>
      %609 = vector.broadcast %279 : f32 to vector<32x16xf32>
      %610 = arith.mulf %609, %482 : vector<32x16xf32>
      %611 = arith.addf %608, %610 : vector<32x16xf32>
      %612 = vector.broadcast %280 : f32 to vector<32x16xf32>
      %613 = arith.mulf %612, %485 : vector<32x16xf32>
      %614 = arith.addf %611, %613 : vector<32x16xf32>
      %615 = vector.broadcast %281 : f32 to vector<32x16xf32>
      %616 = arith.mulf %615, %487 : vector<32x16xf32>
      %617 = arith.addf %614, %616 : vector<32x16xf32>
      %618 = vector.broadcast %282 : f32 to vector<32x16xf32>
      %619 = arith.mulf %618, %490 : vector<32x16xf32>
      %620 = arith.addf %617, %619 : vector<32x16xf32>
      %cst_160 = arith.constant 0.000000e+00 : f32
      %621 = vector.broadcast %cst_160 : f32 to vector<32x16xf32>
      %622 = arith.maximumf %620, %621 : vector<32x16xf32>
      %623 = vector.broadcast %332 : f32 to vector<32x16xf32>
      %c1_i32_161 = arith.constant 1 : i32
      %624 = tpu.dynamic_rotate %523 by %c1_i32_161 dim 0 : vector<32x16xf32>, i32 -> vector<32x16xf32>
      %c1_i32_162 = arith.constant 1 : i32
      %625 = tpu.dynamic_rotate %624 by %c1_i32_162 dim 1 : vector<32x16xf32>, i32 -> vector<32x16xf32>
      %626 = arith.mulf %625, %51 : vector<32x16xf32>
      %627 = vector.broadcast %296 : f32 to vector<32x16xf32>
      %628 = arith.mulf %627, %626 : vector<32x16xf32>
      %629 = arith.addf %623, %628 : vector<32x16xf32>
      %c1_i32_163 = arith.constant 1 : i32
      %630 = tpu.dynamic_rotate %523 by %c1_i32_163 dim 0 : vector<32x16xf32>, i32 -> vector<32x16xf32>
      %631 = arith.mulf %630, %72 : vector<32x16xf32>
      %632 = vector.broadcast %297 : f32 to vector<32x16xf32>
      %633 = arith.mulf %632, %631 : vector<32x16xf32>
      %634 = arith.addf %629, %633 : vector<32x16xf32>
      %c1_i32_164 = arith.constant 1 : i32
      %635 = tpu.dynamic_rotate %523 by %c1_i32_164 dim 0 : vector<32x16xf32>, i32 -> vector<32x16xf32>
      %c15_i32_165 = arith.constant 15 : i32
      %636 = tpu.dynamic_rotate %635 by %c15_i32_165 dim 1 : vector<32x16xf32>, i32 -> vector<32x16xf32>
      %637 = arith.mulf %636, %93 : vector<32x16xf32>
      %638 = vector.broadcast %298 : f32 to vector<32x16xf32>
      %639 = arith.mulf %638, %637 : vector<32x16xf32>
      %640 = arith.addf %634, %639 : vector<32x16xf32>
      %c1_i32_166 = arith.constant 1 : i32
      %641 = tpu.dynamic_rotate %523 by %c1_i32_166 dim 1 : vector<32x16xf32>, i32 -> vector<32x16xf32>
      %642 = arith.mulf %641, %114 : vector<32x16xf32>
      %643 = vector.broadcast %299 : f32 to vector<32x16xf32>
      %644 = arith.mulf %643, %642 : vector<32x16xf32>
      %645 = arith.addf %640, %644 : vector<32x16xf32>
      %646 = vector.broadcast %300 : f32 to vector<32x16xf32>
      %647 = arith.mulf %646, %523 : vector<32x16xf32>
      %648 = arith.addf %645, %647 : vector<32x16xf32>
      %c15_i32_167 = arith.constant 15 : i32
      %649 = tpu.dynamic_rotate %523 by %c15_i32_167 dim 1 : vector<32x16xf32>, i32 -> vector<32x16xf32>
      %650 = arith.mulf %649, %156 : vector<32x16xf32>
      %651 = vector.broadcast %301 : f32 to vector<32x16xf32>
      %652 = arith.mulf %651, %650 : vector<32x16xf32>
      %653 = arith.addf %648, %652 : vector<32x16xf32>
      %c31_i32_168 = arith.constant 31 : i32
      %654 = tpu.dynamic_rotate %523 by %c31_i32_168 dim 0 : vector<32x16xf32>, i32 -> vector<32x16xf32>
      %c1_i32_169 = arith.constant 1 : i32
      %655 = tpu.dynamic_rotate %654 by %c1_i32_169 dim 1 : vector<32x16xf32>, i32 -> vector<32x16xf32>
      %656 = arith.mulf %655, %177 : vector<32x16xf32>
      %657 = vector.broadcast %302 : f32 to vector<32x16xf32>
      %658 = arith.mulf %657, %656 : vector<32x16xf32>
      %659 = arith.addf %653, %658 : vector<32x16xf32>
      %c31_i32_170 = arith.constant 31 : i32
      %660 = tpu.dynamic_rotate %523 by %c31_i32_170 dim 0 : vector<32x16xf32>, i32 -> vector<32x16xf32>
      %661 = arith.mulf %660, %198 : vector<32x16xf32>
      %662 = vector.broadcast %303 : f32 to vector<32x16xf32>
      %663 = arith.mulf %662, %661 : vector<32x16xf32>
      %664 = arith.addf %659, %663 : vector<32x16xf32>
      %c31_i32_171 = arith.constant 31 : i32
      %665 = tpu.dynamic_rotate %523 by %c31_i32_171 dim 0 : vector<32x16xf32>, i32 -> vector<32x16xf32>
      %c15_i32_172 = arith.constant 15 : i32
      %666 = tpu.dynamic_rotate %665 by %c15_i32_172 dim 1 : vector<32x16xf32>, i32 -> vector<32x16xf32>
      %667 = arith.mulf %666, %219 : vector<32x16xf32>
      %668 = vector.broadcast %304 : f32 to vector<32x16xf32>
      %669 = arith.mulf %668, %667 : vector<32x16xf32>
      %670 = arith.addf %664, %669 : vector<32x16xf32>
      %c1_i32_173 = arith.constant 1 : i32
      %671 = tpu.dynamic_rotate %556 by %c1_i32_173 dim 0 : vector<32x16xf32>, i32 -> vector<32x16xf32>
      %c1_i32_174 = arith.constant 1 : i32
      %672 = tpu.dynamic_rotate %671 by %c1_i32_174 dim 1 : vector<32x16xf32>, i32 -> vector<32x16xf32>
      %673 = arith.mulf %672, %51 : vector<32x16xf32>
      %674 = vector.broadcast %305 : f32 to vector<32x16xf32>
      %675 = arith.mulf %674, %673 : vector<32x16xf32>
      %676 = arith.addf %670, %675 : vector<32x16xf32>
      %c1_i32_175 = arith.constant 1 : i32
      %677 = tpu.dynamic_rotate %556 by %c1_i32_175 dim 0 : vector<32x16xf32>, i32 -> vector<32x16xf32>
      %678 = arith.mulf %677, %72 : vector<32x16xf32>
      %679 = vector.broadcast %306 : f32 to vector<32x16xf32>
      %680 = arith.mulf %679, %678 : vector<32x16xf32>
      %681 = arith.addf %676, %680 : vector<32x16xf32>
      %c1_i32_176 = arith.constant 1 : i32
      %682 = tpu.dynamic_rotate %556 by %c1_i32_176 dim 0 : vector<32x16xf32>, i32 -> vector<32x16xf32>
      %c15_i32_177 = arith.constant 15 : i32
      %683 = tpu.dynamic_rotate %682 by %c15_i32_177 dim 1 : vector<32x16xf32>, i32 -> vector<32x16xf32>
      %684 = arith.mulf %683, %93 : vector<32x16xf32>
      %685 = vector.broadcast %307 : f32 to vector<32x16xf32>
      %686 = arith.mulf %685, %684 : vector<32x16xf32>
      %687 = arith.addf %681, %686 : vector<32x16xf32>
      %c1_i32_178 = arith.constant 1 : i32
      %688 = tpu.dynamic_rotate %556 by %c1_i32_178 dim 1 : vector<32x16xf32>, i32 -> vector<32x16xf32>
      %689 = arith.mulf %688, %114 : vector<32x16xf32>
      %690 = vector.broadcast %308 : f32 to vector<32x16xf32>
      %691 = arith.mulf %690, %689 : vector<32x16xf32>
      %692 = arith.addf %687, %691 : vector<32x16xf32>
      %693 = vector.broadcast %309 : f32 to vector<32x16xf32>
      %694 = arith.mulf %693, %556 : vector<32x16xf32>
      %695 = arith.addf %692, %694 : vector<32x16xf32>
      %c15_i32_179 = arith.constant 15 : i32
      %696 = tpu.dynamic_rotate %556 by %c15_i32_179 dim 1 : vector<32x16xf32>, i32 -> vector<32x16xf32>
      %697 = arith.mulf %696, %156 : vector<32x16xf32>
      %698 = vector.broadcast %310 : f32 to vector<32x16xf32>
      %699 = arith.mulf %698, %697 : vector<32x16xf32>
      %700 = arith.addf %695, %699 : vector<32x16xf32>
      %c31_i32_180 = arith.constant 31 : i32
      %701 = tpu.dynamic_rotate %556 by %c31_i32_180 dim 0 : vector<32x16xf32>, i32 -> vector<32x16xf32>
      %c1_i32_181 = arith.constant 1 : i32
      %702 = tpu.dynamic_rotate %701 by %c1_i32_181 dim 1 : vector<32x16xf32>, i32 -> vector<32x16xf32>
      %703 = arith.mulf %702, %177 : vector<32x16xf32>
      %704 = vector.broadcast %311 : f32 to vector<32x16xf32>
      %705 = arith.mulf %704, %703 : vector<32x16xf32>
      %706 = arith.addf %700, %705 : vector<32x16xf32>
      %c31_i32_182 = arith.constant 31 : i32
      %707 = tpu.dynamic_rotate %556 by %c31_i32_182 dim 0 : vector<32x16xf32>, i32 -> vector<32x16xf32>
      %708 = arith.mulf %707, %198 : vector<32x16xf32>
      %709 = vector.broadcast %312 : f32 to vector<32x16xf32>
      %710 = arith.mulf %709, %708 : vector<32x16xf32>
      %711 = arith.addf %706, %710 : vector<32x16xf32>
      %c31_i32_183 = arith.constant 31 : i32
      %712 = tpu.dynamic_rotate %556 by %c31_i32_183 dim 0 : vector<32x16xf32>, i32 -> vector<32x16xf32>
      %c15_i32_184 = arith.constant 15 : i32
      %713 = tpu.dynamic_rotate %712 by %c15_i32_184 dim 1 : vector<32x16xf32>, i32 -> vector<32x16xf32>
      %714 = arith.mulf %713, %219 : vector<32x16xf32>
      %715 = vector.broadcast %313 : f32 to vector<32x16xf32>
      %716 = arith.mulf %715, %714 : vector<32x16xf32>
      %717 = arith.addf %711, %716 : vector<32x16xf32>
      %c1_i32_185 = arith.constant 1 : i32
      %718 = tpu.dynamic_rotate %589 by %c1_i32_185 dim 0 : vector<32x16xf32>, i32 -> vector<32x16xf32>
      %c1_i32_186 = arith.constant 1 : i32
      %719 = tpu.dynamic_rotate %718 by %c1_i32_186 dim 1 : vector<32x16xf32>, i32 -> vector<32x16xf32>
      %720 = arith.mulf %719, %51 : vector<32x16xf32>
      %721 = vector.broadcast %314 : f32 to vector<32x16xf32>
      %722 = arith.mulf %721, %720 : vector<32x16xf32>
      %723 = arith.addf %717, %722 : vector<32x16xf32>
      %c1_i32_187 = arith.constant 1 : i32
      %724 = tpu.dynamic_rotate %589 by %c1_i32_187 dim 0 : vector<32x16xf32>, i32 -> vector<32x16xf32>
      %725 = arith.mulf %724, %72 : vector<32x16xf32>
      %726 = vector.broadcast %315 : f32 to vector<32x16xf32>
      %727 = arith.mulf %726, %725 : vector<32x16xf32>
      %728 = arith.addf %723, %727 : vector<32x16xf32>
      %c1_i32_188 = arith.constant 1 : i32
      %729 = tpu.dynamic_rotate %589 by %c1_i32_188 dim 0 : vector<32x16xf32>, i32 -> vector<32x16xf32>
      %c15_i32_189 = arith.constant 15 : i32
      %730 = tpu.dynamic_rotate %729 by %c15_i32_189 dim 1 : vector<32x16xf32>, i32 -> vector<32x16xf32>
      %731 = arith.mulf %730, %93 : vector<32x16xf32>
      %732 = vector.broadcast %316 : f32 to vector<32x16xf32>
      %733 = arith.mulf %732, %731 : vector<32x16xf32>
      %734 = arith.addf %728, %733 : vector<32x16xf32>
      %c1_i32_190 = arith.constant 1 : i32
      %735 = tpu.dynamic_rotate %589 by %c1_i32_190 dim 1 : vector<32x16xf32>, i32 -> vector<32x16xf32>
      %736 = arith.mulf %735, %114 : vector<32x16xf32>
      %737 = vector.broadcast %317 : f32 to vector<32x16xf32>
      %738 = arith.mulf %737, %736 : vector<32x16xf32>
      %739 = arith.addf %734, %738 : vector<32x16xf32>
      %740 = vector.broadcast %318 : f32 to vector<32x16xf32>
      %741 = arith.mulf %740, %589 : vector<32x16xf32>
      %742 = arith.addf %739, %741 : vector<32x16xf32>
      %c15_i32_191 = arith.constant 15 : i32
      %743 = tpu.dynamic_rotate %589 by %c15_i32_191 dim 1 : vector<32x16xf32>, i32 -> vector<32x16xf32>
      %744 = arith.mulf %743, %156 : vector<32x16xf32>
      %745 = vector.broadcast %319 : f32 to vector<32x16xf32>
      %746 = arith.mulf %745, %744 : vector<32x16xf32>
      %747 = arith.addf %742, %746 : vector<32x16xf32>
      %c31_i32_192 = arith.constant 31 : i32
      %748 = tpu.dynamic_rotate %589 by %c31_i32_192 dim 0 : vector<32x16xf32>, i32 -> vector<32x16xf32>
      %c1_i32_193 = arith.constant 1 : i32
      %749 = tpu.dynamic_rotate %748 by %c1_i32_193 dim 1 : vector<32x16xf32>, i32 -> vector<32x16xf32>
      %750 = arith.mulf %749, %177 : vector<32x16xf32>
      %751 = vector.broadcast %320 : f32 to vector<32x16xf32>
      %752 = arith.mulf %751, %750 : vector<32x16xf32>
      %753 = arith.addf %747, %752 : vector<32x16xf32>
      %c31_i32_194 = arith.constant 31 : i32
      %754 = tpu.dynamic_rotate %589 by %c31_i32_194 dim 0 : vector<32x16xf32>, i32 -> vector<32x16xf32>
      %755 = arith.mulf %754, %198 : vector<32x16xf32>
      %756 = vector.broadcast %321 : f32 to vector<32x16xf32>
      %757 = arith.mulf %756, %755 : vector<32x16xf32>
      %758 = arith.addf %753, %757 : vector<32x16xf32>
      %c31_i32_195 = arith.constant 31 : i32
      %759 = tpu.dynamic_rotate %589 by %c31_i32_195 dim 0 : vector<32x16xf32>, i32 -> vector<32x16xf32>
      %c15_i32_196 = arith.constant 15 : i32
      %760 = tpu.dynamic_rotate %759 by %c15_i32_196 dim 1 : vector<32x16xf32>, i32 -> vector<32x16xf32>
      %761 = arith.mulf %760, %219 : vector<32x16xf32>
      %762 = vector.broadcast %322 : f32 to vector<32x16xf32>
      %763 = arith.mulf %762, %761 : vector<32x16xf32>
      %764 = arith.addf %758, %763 : vector<32x16xf32>
      %c1_i32_197 = arith.constant 1 : i32
      %765 = tpu.dynamic_rotate %622 by %c1_i32_197 dim 0 : vector<32x16xf32>, i32 -> vector<32x16xf32>
      %c1_i32_198 = arith.constant 1 : i32
      %766 = tpu.dynamic_rotate %765 by %c1_i32_198 dim 1 : vector<32x16xf32>, i32 -> vector<32x16xf32>
      %767 = arith.mulf %766, %51 : vector<32x16xf32>
      %768 = vector.broadcast %323 : f32 to vector<32x16xf32>
      %769 = arith.mulf %768, %767 : vector<32x16xf32>
      %770 = arith.addf %764, %769 : vector<32x16xf32>
      %c1_i32_199 = arith.constant 1 : i32
      %771 = tpu.dynamic_rotate %622 by %c1_i32_199 dim 0 : vector<32x16xf32>, i32 -> vector<32x16xf32>
      %772 = arith.mulf %771, %72 : vector<32x16xf32>
      %773 = vector.broadcast %324 : f32 to vector<32x16xf32>
      %774 = arith.mulf %773, %772 : vector<32x16xf32>
      %775 = arith.addf %770, %774 : vector<32x16xf32>
      %c1_i32_200 = arith.constant 1 : i32
      %776 = tpu.dynamic_rotate %622 by %c1_i32_200 dim 0 : vector<32x16xf32>, i32 -> vector<32x16xf32>
      %c15_i32_201 = arith.constant 15 : i32
      %777 = tpu.dynamic_rotate %776 by %c15_i32_201 dim 1 : vector<32x16xf32>, i32 -> vector<32x16xf32>
      %778 = arith.mulf %777, %93 : vector<32x16xf32>
      %779 = vector.broadcast %325 : f32 to vector<32x16xf32>
      %780 = arith.mulf %779, %778 : vector<32x16xf32>
      %781 = arith.addf %775, %780 : vector<32x16xf32>
      %c1_i32_202 = arith.constant 1 : i32
      %782 = tpu.dynamic_rotate %622 by %c1_i32_202 dim 1 : vector<32x16xf32>, i32 -> vector<32x16xf32>
      %783 = arith.mulf %782, %114 : vector<32x16xf32>
      %784 = vector.broadcast %326 : f32 to vector<32x16xf32>
      %785 = arith.mulf %784, %783 : vector<32x16xf32>
      %786 = arith.addf %781, %785 : vector<32x16xf32>
      %787 = vector.broadcast %327 : f32 to vector<32x16xf32>
      %788 = arith.mulf %787, %622 : vector<32x16xf32>
      %789 = arith.addf %786, %788 : vector<32x16xf32>
      %c15_i32_203 = arith.constant 15 : i32
      %790 = tpu.dynamic_rotate %622 by %c15_i32_203 dim 1 : vector<32x16xf32>, i32 -> vector<32x16xf32>
      %791 = arith.mulf %790, %156 : vector<32x16xf32>
      %792 = vector.broadcast %328 : f32 to vector<32x16xf32>
      %793 = arith.mulf %792, %791 : vector<32x16xf32>
      %794 = arith.addf %789, %793 : vector<32x16xf32>
      %c31_i32_204 = arith.constant 31 : i32
      %795 = tpu.dynamic_rotate %622 by %c31_i32_204 dim 0 : vector<32x16xf32>, i32 -> vector<32x16xf32>
      %c1_i32_205 = arith.constant 1 : i32
      %796 = tpu.dynamic_rotate %795 by %c1_i32_205 dim 1 : vector<32x16xf32>, i32 -> vector<32x16xf32>
      %797 = arith.mulf %796, %177 : vector<32x16xf32>
      %798 = vector.broadcast %329 : f32 to vector<32x16xf32>
      %799 = arith.mulf %798, %797 : vector<32x16xf32>
      %800 = arith.addf %794, %799 : vector<32x16xf32>
      %c31_i32_206 = arith.constant 31 : i32
      %801 = tpu.dynamic_rotate %622 by %c31_i32_206 dim 0 : vector<32x16xf32>, i32 -> vector<32x16xf32>
      %802 = arith.mulf %801, %198 : vector<32x16xf32>
      %803 = vector.broadcast %330 : f32 to vector<32x16xf32>
      %804 = arith.mulf %803, %802 : vector<32x16xf32>
      %805 = arith.addf %800, %804 : vector<32x16xf32>
      %c31_i32_207 = arith.constant 31 : i32
      %806 = tpu.dynamic_rotate %622 by %c31_i32_207 dim 0 : vector<32x16xf32>, i32 -> vector<32x16xf32>
      %c15_i32_208 = arith.constant 15 : i32
      %807 = tpu.dynamic_rotate %806 by %c15_i32_208 dim 1 : vector<32x16xf32>, i32 -> vector<32x16xf32>
      %808 = arith.mulf %807, %219 : vector<32x16xf32>
      %809 = vector.broadcast %331 : f32 to vector<32x16xf32>
      %810 = arith.mulf %809, %808 : vector<32x16xf32>
      %811 = arith.addf %805, %810 : vector<32x16xf32>
      %812 = arith.addf %470, %811 : vector<32x16xf32>
      scf.yield %812 : vector<32x16xf32>
    }
    %c5_i32_137 = arith.constant 5 : i32
    %c0_138 = arith.constant 0 : index
    %c0_139 = arith.constant 0 : index
    %447 = vector.load %arg14[%c0_138, %c0_139] : memref<32x16xf32, #tpu.memory_space<vmem>>, vector<32x16xf32>
    tpu.vector_store %arg14[%c0_138, %c0_139], %446 {strides = array<i32>} : memref<32x16xf32, #tpu.memory_space<vmem>>, vector<32x16xf32>,
    return
  }
  func.func @transform_0(%arg0: i32) -> i32 {
    %c0_i32 = arith.constant 0 : i32
    %c0_i32_0 = arith.constant 0 : i32
    return %c0_i32 : i32
  }
  func.func @transform_1(%arg0: i32) -> i32 {
    %c0_i32 = arith.constant 0 : i32
    %c0_i32_0 = arith.constant 0 : i32
    return %c0_i32 : i32
  }
  func.func @transform_2(%arg0: i32) -> i32 {
    %c0_i32 = arith.constant 0 : i32
    %c0_i32_0 = arith.constant 0 : i32
    return %c0_i32 : i32
  }
  func.func @transform_3(%arg0: i32) -> i32 {
    %c0_i32 = arith.constant 0 : i32
    %c0_i32_0 = arith.constant 0 : i32
    return %c0_i32 : i32
  }
  func.func @transform_4(%arg0: i32) -> i32 {
    %c0_i32 = arith.constant 0 : i32
    %c0_i32_0 = arith.constant 0 : i32
    return %c0_i32 : i32
  }
  func.func @transform_5(%arg0: i32) -> i32 {
    %c0_i32 = arith.constant 0 : i32
    %c0_i32_0 = arith.constant 0 : i32
    return %c0_i32 : i32
  }
  func.func @transform_6(%arg0: i32) -> (i32, i32) {
    %c0_i32 = arith.constant 0 : i32
    %c0_i32_0 = arith.constant 0 : i32
    %c0_i32_1 = arith.constant 0 : i32
    return %c0_i32, %c0_i32_0 : i32, i32
  }
  func.func @transform_7(%arg0: i32) -> (i32, i32) {
    %c0_i32 = arith.constant 0 : i32
    %c0_i32_0 = arith.constant 0 : i32
    %c0_i32_1 = arith.constant 0 : i32
    return %c0_i32, %c0_i32_0 : i32, i32
  }
  func.func @transform_8(%arg0: i32) -> (i32, i32) {
    %c0_i32 = arith.constant 0 : i32
    %c0_i32_0 = arith.constant 0 : i32
    %c0_i32_1 = arith.constant 0 : i32
    return %c0_i32, %c0_i32_0 : i32, i32
  }
  func.func @transform_9(%arg0: i32) -> (i32, i32) {
    %c0_i32 = arith.constant 0 : i32
    %c0_i32_0 = arith.constant 0 : i32
    %c0_i32_1 = arith.constant 0 : i32
    return %c0_i32, %c0_i32_0 : i32, i32
  }
  func.func @transform_10(%arg0: i32) -> (i32, i32) {
    %c0_i32 = arith.constant 0 : i32
    %c0_i32_0 = arith.constant 0 : i32
    %c0_i32_1 = arith.constant 0 : i32
    return %c0_i32, %c0_i32_0 : i32, i32
  }
  func.func @transform_11(%arg0: i32) -> (i32, i32) {
    %c0_i32 = arith.constant 0 : i32
    %c0_i32_0 = arith.constant 0 : i32
    %c0_i32_1 = arith.constant 0 : i32
    return %c0_i32, %c0_i32_0 : i32, i32
  }
  func.func @transform_12(%arg0: i32) -> (i32, i32) {
    %c0_i32 = arith.constant 0 : i32
    %c0_i32_0 = arith.constant 0 : i32
    %c0_i32_1 = arith.constant 0 : i32
    return %c0_i32, %c0_i32_0 : i32, i32
  }
  func.func @transform_13(%arg0: i32) -> (i32, i32) {
    %c0_i32 = arith.constant 0 : i32
    %c0_i32_0 = arith.constant 0 : i32
    %c0_i32_1 = arith.constant 0 : i32
    return %c0_i32, %c0_i32_0 : i32, i32
  }
}

</mosaic_0001>

<bundles_post_ra>
// kernel: tpu_custom_call.1
= control target key start
LH: loop header
LB: loop body
LE: loop exit
PB: predicated region body
PF: predicated region fallthrough
CT: control target
= control target key end

     0   :  { %s8048_s0 = inlined_call_operand.vmem [shape: f32[5], index: 0, kind: input, shape index: {}]   ;;  %s8049_s1 = inlined_call_operand.vmem [shape: f32[5], index: 1, kind: input, shape index: {}]   ;;  %s8050_s2 = inlined_call_operand.hbm [shape: f32[72], index: 2, kind: input, shape index: {}]   ;;  %s8051_s3 = inlined_call_operand.hbm [shape: f32[4], index: 3, kind: input, shape index: {}]   ;;  %s8052_s4 = inlined_call_operand.hbm [shape: f32[36], index: 4, kind: input, shape index: {}]   ;;  %s8053_s5 = inlined_call_operand.<no memory space> [shape: f32[1], index: 5, kind: input, shape index: {}]   ;;  %s8054_s6 = inlined_call_operand.vmem [shape: f32[32,16], index: 6, kind: input, shape index: {}]   ;;  %s8055_s7 = inlined_call_operand.vmem [shape: f32[32,32], index: 7, kind: input, shape index: {}]   ;;  %s8056_s8 = inlined_call_operand.vmem [shape: f32[32,32], index: 8, kind: input, shape index: {}]   ;;  %s8057_s9 = inlined_call_operand.vmem [shape: f32[16,32], index: 9, kind: input, shape index: {}]   ;;  %s8058_s10 = inlined_call_operand.hbm [shape: f32[32,32], index: 10, kind: input, shape index: {}]   ;;  %s8059_s11 = inlined_call_operand.hbm [shape: f32[32,32], index: 11, kind: input, shape index: {}]   ;;  %s8060_s12 = inlined_call_operand.hbm [shape: f32[32,32], index: 12, kind: input, shape index: {}]   ;;  %s8061_s13 = inlined_call_operand.vmem [shape: f32[32,16], index: 13, kind: output, shape index: {}]  }
   0x1   :  { %8251 = sst [smem:[#allocation223_spill]] %s8053_s5 }
   0x2   :  { %8252 = sst [smem:[#allocation224_spill]] %s8061_s13 }
   0x3   :  { %19 = vsyncpa [#allocation6], 0 }
   0x4   :  { %20 = vsyncpa [#allocation8], 0 }
   0x5   :  { %21 = vsyncpa [#allocation5], 0 }
   0x6   :  { %22 = vsyncpa [#allocation11], 0 }
   0x7   :  { %23 = vsyncpa [#allocation4], 0 }
   0x8   :  { %24 = vsyncpa [#allocation15], 0  ;;  %s4215_s27 = scalar_lea.hbm %s8051_s3, 16 }
   0x9   :  { %p4216_p0 = scmp.ne.s32.totalorder %s8051_s3, %s4215_s27  ;;  %p4219_p1 = scmp.lt.u32.totalorder %s4215_s27, %s8051_s3 }
   0xb   :  { %p4221_p2 = pnand %p4219_p1, %p4216_p0 }
   0xd   :  { %4224 = shalt.err (!%p4221_p2)
}
   0xe   :  { %s4387_s15 = smov [#allocation10]   ;;  %s4388_s18 = smov [#allocation14]  }
   0xf   :  { %60 = dma.hbm_to_smem %s8051_s3, 16, %s4387_s15, [#allocation11]  }
  0x10   :  { %s96_s19 = sshll.u32 %s4388_s18, 4  ;;  %s31_s22 = sshll.u32 %s8048_s0, 4  ;;  %s97_s19 = int_to_ptr.vmem [resolvable:$true] %s96_s19  ;;  %s32_s22 = int_to_ptr.vmem [resolvable:$true] %s31_s22 }
  0x11   :  { %s4225_s25 = scalar_lea.hbm %s8059_s11, 512 }
  0x12   :  { %p4226_p3 = scmp.ne.s32.totalorder %s8059_s11, %s4225_s25  ;;  %p4229_p4 = scmp.lt.u32.totalorder %s4225_s25, %s8059_s11 }
  0x14   :  { %p4231_p5 = pnand %p4229_p4, %p4226_p3 }
  0x16   :  { %4234 = shalt.err (!%p4231_p5)
}
  0x17   :  { %s4235_s3 = scalar_lea.vmem %s97_s19, 512  ;;  %p4240_p7 = scmp.lt.s32.totalorder %s97_s19, %s97_s19 }
  0x18   :  { %p4236_p6 = scmp.ne.s32.totalorder %s97_s19, %s4235_s3  ;;  %p4241_p8 = scmp.lt.s32.totalorder %s4235_s3, %s4235_s3 }
  0x1a   :  { %p4242_p9 = por %p4241_p8, %p4240_p7 }
  0x1c   :  { %p4243_p10 = pnand %p4242_p9, %p4236_p6 }
  0x1e   :  { %4246 = shalt.err (!%p4243_p10)
}
  0x1f   :  { %s4389_s0 = smov 128   ;;  %s4390_s30 = smov 8  }
  0x20   :  { %102 = dma.hbm_to_vmem [thread:$0]  %s8059_s11, 512, %s97_s19, [#allocation15], %s4389_s0, %s4389_s0, %s4390_s30  }
  0x21   :  { %s41_s18 = sshll.u32 %s8049_s1, 4  ;;  %s4247_s20 = scalar_lea.vmem %s32_s22, 16  ;;  %s42_s18 = int_to_ptr.vmem [resolvable:$true] %s41_s18 }
  0x22   :  { %p4248_p11 = scmp.ne.s32.totalorder %s32_s22, %s4247_s20  ;;  %p4252_p12 = scmp.lt.s32.totalorder %s32_s22, %s32_s22 }
  0x23   :  { %p4253_p13 = scmp.lt.s32.totalorder %s4247_s20, %s4247_s20 }
  0x25   :  { %p4254_p0 = por %p4253_p13, %p4252_p12 }
  0x27   :  { %p4255_p1 = pnand %p4254_p0, %p4248_p11 }
  0x29   :  { %4258 = shalt.err (!%p4255_p1)
}
  0x2a   :  { %s4391_s21 = smov [#allocation3]   ;;  %s4259_s23 = scalar_lea.vmem %s42_s18, 16 }
  0x2b   :  { %34 = dma.vmem_to_smem %s32_s22, 16, %s4391_s21, [#allocation6]  }
  0x2c   :  { %p4260_p2 = scmp.ne.s32.totalorder %s42_s18, %s4259_s23  ;;  %p4264_p3 = scmp.lt.s32.totalorder %s42_s18, %s42_s18 }
  0x2d   :  { %p4265_p4 = scmp.lt.s32.totalorder %s4259_s23, %s4259_s23 }
  0x2f   :  { %p4266_p5 = por %p4265_p4, %p4264_p3 }
  0x31   :  { %p4267_p6 = pnand %p4266_p5, %p4260_p2 }
  0x33   :  { %4270 = shalt.err (!%p4267_p6)
}
  0x34   :  { %s4392_s11 = smov [#allocation7]   ;;  %s4271_s24 = scalar_lea.hbm %s8050_s2, 16 }
  0x35   :  { %44 = dma.vmem_to_smem %s42_s18, 16, %s4392_s11, [#allocation8]  }
  0x36   :  { %p4272_p7 = scmp.ne.s32.totalorder %s8050_s2, %s4271_s24  ;;  %p4275_p8 = scmp.lt.u32.totalorder %s4271_s24, %s8050_s2 }
  0x38   :  { %p4277_p9 = pnand %p4275_p8, %p4272_p7 }
  0x3a   :  { %4280 = shalt.err (!%p4277_p9)
}
  0x3b   :  { %s4393_s28 = smov [#allocation9]   ;;  %s4281_s16 = scalar_lea.hbm %s8052_s4, 16 }
  0x3c   :  { %52 = dma.hbm_to_smem %s8050_s2, 16, %s4393_s28, [#allocation5]  }
  0x3d   :  { %p4282_p10 = scmp.ne.s32.totalorder %s8052_s4, %s4281_s16  ;;  %p4285_p11 = scmp.lt.u32.totalorder %s4281_s16, %s8052_s4 }
  0x3f   :  { %p4287_p12 = pnand %p4285_p11, %p4282_p10 }
  0x41   :  { %4290 = shalt.err (!%p4287_p12)
}
  0x42   :  { %s4394_s23 = smov [#allocation12]   ;;  %s4395_s2 = smov [#allocation13]  }
  0x43   :  { %68 = dma.hbm_to_smem %s8052_s4, 16, %s4394_s23, [#allocation11]  }
  0x44   :  { %s84_s19 = sshll.u32 %s4395_s2, 4  ;;  %s4396_s24 = smov [#allocation16]   ;;  %s85_s19 = int_to_ptr.vmem [resolvable:$true] %s84_s19 }
  0x45   :  { %s108_s25 = sshll.u32 %s4396_s24, 4  ;;  %s4291_s22 = scalar_lea.hbm %s8058_s10, 512  ;;  %s4534_s25 = int_to_ptr.vmem [resolvable:$true] %s108_s25 }
  0x46   :  { %p4292_p13 = scmp.ne.s32.totalorder %s8058_s10, %s4291_s22  ;;  %p4295_p0 = scmp.lt.u32.totalorder %s4291_s22, %s8058_s10 }
  0x48   :  { %p4297_p1 = pnand %p4295_p0, %p4292_p13 }
  0x4a   :  { %4300 = shalt.err (!%p4297_p1)
}
  0x4b   :  { %s4301_s4 = scalar_lea.vmem %s85_s19, 512  ;;  %p4306_p3 = scmp.lt.s32.totalorder %s85_s19, %s85_s19 }
  0x4c   :  { %p4302_p2 = scmp.ne.s32.totalorder %s85_s19, %s4301_s4  ;;  %p4307_p4 = scmp.lt.s32.totalorder %s4301_s4, %s4301_s4 }
  0x4e   :  { %p4308_p5 = por %p4307_p4, %p4306_p3 }
  0x50   :  { %p4309_p6 = pnand %p4308_p5, %p4302_p2 }
  0x52   :  { %4312 = shalt.err (!%p4309_p6)
}
  0x53   :  { %90 = dma.hbm_to_vmem [thread:$0]  %s8058_s10, 512, %s85_s19, [#allocation4], %s4389_s0, %s4389_s0, %s4390_s30  }
  0x54   :  { %s4313_s20 = scalar_lea.hbm %s8060_s12, 512 }
  0x55   :  { %p4314_p7 = scmp.ne.s32.totalorder %s8060_s12, %s4313_s20  ;;  %p4317_p8 = scmp.lt.u32.totalorder %s4313_s20, %s8060_s12 }
  0x57   :  { %p4319_p9 = pnand %p4317_p8, %p4314_p7 }
  0x59   :  { %4322 = shalt.err (!%p4319_p9)
}
  0x5a   :  { %s4323_s2 = scalar_lea.vmem %s4534_s25, 512  ;;  %p4328_p11 = scmp.lt.s32.totalorder %s4534_s25, %s4534_s25 }
  0x5b   :  { %p4324_p10 = scmp.ne.s32.totalorder %s4534_s25, %s4323_s2  ;;  %p4329_p12 = scmp.lt.s32.totalorder %s4323_s2, %s4323_s2 }
  0x5d   :  { %p4330_p13 = por %p4329_p12, %p4328_p11 }
  0x5f   :  { %p4331_p0 = pnand %p4330_p13, %p4324_p10 }
  0x61   :  { %4334 = shalt.err (!%p4331_p0)
}
  0x62   :  { %114 = dma.hbm_to_vmem [thread:$0]  %s8060_s12, 512, %s4534_s25, [#allocation15], %s4389_s0, %s4389_s0, %s4390_s30  }
  0x63   :  { %4355 = dma.done.wait [#allocation6], 16  }
  0x64   :  { %4356 = vsyncadd [#allocation6], 4294967280 }
  0x65   :  { %4357 = dma.done.wait [#allocation8], 16  }
  0x66   :  { %4358 = vsyncadd [#allocation8], 4294967280 }
  0x67   :  { %4359 = dma.done.wait [#allocation5], 16  }
  0x68   :  { %4360 = vsyncadd [#allocation5], 4294967280 }
  0x69   :  { %4361 = dma.done.wait [#allocation11], 32  }
  0x6a   :  { %4362 = vsyncadd [#allocation11], 4294967264 }
  0x6b   :  { %4363 = dma.done.wait [#allocation4], 512  }
  0x6c   :  { %4364 = vsyncadd [#allocation4], 4294966784 }
  0x6d   :  { %4365 = dma.done.wait [#allocation15], 1024  }
  0x6e   :  { %4366 = vsyncadd [#allocation15], 4294966272 }
  0x6f   :  { %139 = sfence }
  0x70   :  { %v4574_v0 = vld [vmem:[%s8057_s9] sm:$0xff]  ;;  %v4579_v1 = vld [vmem:[%s8057_s9 + $0x8] sm:$0xff]  ;;  %v166_v3 = vlaneseq  ;;  %v4585_v5 = vld [vmem:[#allocation13 + $0x10] sm:$0xff]  ;;  %s4589_s0 = sld [smem:[#allocation9]]  ;;  %s4607_s9 = sld [smem:[#allocation9 + $0x1]]  ;;  %v4397_v23 = vmov 1.0  }
  0x71   :  { %8253 = vst [vmem:[#allocation23_spill] sm:$0xff] %v4574_v0  ;;  %8254 = vst [vmem:[#allocation24_spill] sm:$0xff] %v4579_v1  ;;  %v4581_v2 = vld [vmem:[#allocation13] sm:$0xff]  ;;  %v4583_v4 = vld [vmem:[#allocation13 + $0x8] sm:$0xff]  ;;  %s4703_s27 = sld [smem:[#allocation9 + $0x3]]  ;;  %s4710_s12 = sld [smem:[#allocation9 + $0x4]] }
  0x72   :  { %8255 = vst [vmem:[#allocation25_spill] sm:$0xff] %v4581_v2  ;;  %8256 = vst [vmem:[#allocation26_spill] sm:$0xff] %v4583_v4  ;;  %v4587_v6 = vld [vmem:[#allocation13 + $0x18] sm:$0xff]  ;;  %v4591_v7 = vld [vmem:[#allocation14] sm:$0xff]  ;;  %v4597_v10 = vand.u32 127, %v166_v3  ;;  %v4599_v11 = vshrl.u32 %v166_v3, 7 }
  0x73   :  { %8257 = vst [vmem:[#allocation27_spill] sm:$0xff] %v4585_v5  ;;  %8258 = vst [vmem:[#allocation28_spill] sm:$0xff] %v4587_v6  ;;  %v4593_v8 = vld [vmem:[#allocation14 + $0x8] sm:$0xff]  ;;  %v4595_v9 = vld [vmem:[#allocation14 + $0x10] sm:$0xff]  ;;  %s4720_s30 = sld [smem:[#allocation9 + $0x5]]  ;;  %s4722_s25 = sld [smem:[#allocation9 + $0x6]] }
  0x74   :  { %8260 = vst [vmem:[#allocation30_spill] sm:$0xff] %v4591_v7  ;;  %8261 = vst [vmem:[#allocation31_spill] sm:$0xff] %v4593_v8  ;;  %v4601_v12 = vld [vmem:[#allocation14 + $0x18] sm:$0xff]  ;;  %v4603_v13 = vld [vmem:[#allocation16] sm:$0xff]  ;;  %vm168_vm0 = vcmp.lt.s32.totalorder %v4597_v10, 16  ;;  %v172_v18 = vadd.s32 8, %v4599_v11 }
  0x75   :  { %8262 = vst [vmem:[#allocation32_spill] sm:$0xff] %v4595_v9  ;;  %8263 = vst [vmem:[#allocation33_spill] sm:$0xff] %v4599_v11  ;;  %v4605_v14 = vld [vmem:[#allocation16 + $0x8] sm:$0xff]  ;;  %v4609_v15 = vld [vmem:[#allocation16 + $0x10] sm:$0xff]  ;;  %v173_v19 = vadd.s32 16, %v4599_v11  ;;  %v4638_v24 = vsel %vm168_vm0, -1.0, %v4397_v23 }
  0x76   :  { %8259 = sst [smem:[#allocation29_spill]] %s4589_s0  ;;  %8264 = vst [vmem:[#allocation34_spill] sm:$0xff] %v4601_v12  ;;  %8265 = vst [vmem:[#allocation35_spill] sm:$0xff] %v4603_v13  ;;  %v4611_v16 = vld [vmem:[#allocation16 + $0x18] sm:$0xff]  ;;  %v4616_v17 = vld [vmem:[%s8055_s7] sm:$0xff]  ;;  %v174_v25 = vadd.s32 24, %v4599_v11 }
  0x77   :  { %8266 = vst [vmem:[#allocation36_spill] sm:$0xff] %v4605_v14  ;;  %8267 = sst [smem:[#allocation37_spill]] %s4607_s9  ;;  %8268 = vst [vmem:[#allocation38_spill] sm:$0xff] %v4609_v15  ;;  %v4624_v20 = vld [vmem:[%s8055_s7 + $0x8] sm:$0xff]  ;;  %v4629_v21 = vld [vmem:[%s8055_s7 + $0x10] sm:$0xff]  ;;  %v179_v26 = vand.u32 15, %v4599_v11 }
  0x78   :  { %8269 = vst [vmem:[#allocation39_spill] sm:$0xff] %v4611_v16  ;;  %8270 = vst [vmem:[#allocation40_spill] sm:$0xff] %v4616_v17  ;;  %v4634_v22 = vld [vmem:[%s8055_s7 + $0x18] sm:$0xff]  ;;  %v4645_v27 = vld [vmem:[%s8056_s8] sm:$0xff]  ;;  %v193_v30 = vand.u32 15, %v173_v19  ;;  %v4658_v31 = vadd.s32 4294967295, %v4597_v10 }
  0x79   :  { %8271 = vst [vmem:[#allocation41_spill] sm:$0xff] %v4624_v20  ;;  %8272 = vst [vmem:[#allocation42_spill] sm:$0xff] %v4629_v21  ;;  %v4650_v28 = vld [vmem:[%s8056_s8 + $0x8] sm:$0xff]  ;;  %v4655_v29 = vld [vmem:[%s8056_s8 + $0x10] sm:$0xff]  ;;  %v186_v35 = vand.u32 15, %v172_v18  ;;  %v223_v36 = vadd.s32 4294967295, %v179_v26 }
  0x7a   :  { %8273 = vst [vmem:[#allocation43_spill] sm:$0xff] %v4634_v22  ;;  %8274 = vst [vmem:[#allocation44_spill] sm:$0xff] %v4638_v24  ;;  %v4663_v32 = vld [vmem:[%s8056_s8 + $0x18] sm:$0xff]  ;;  %v4668_v33 = vld [vmem:[%s8054_s6] sm:$0xff]   ;;  %v200_v39 = vand.u32 15, %v174_v25  ;;  %v225_v40 = vadd.s32 4294967295, %v193_v30 }
  0x7b   :  { %8275 = vst [vmem:[#allocation45_spill] sm:$0xff] %v4645_v27  ;;  %8276 = vst [vmem:[#allocation46_spill] sm:$0xff] %v4650_v28  ;;  %v4673_v34 = vld [vmem:[%s8054_s6 + $0x8] sm:$0xff]   ;;  %v4678_v37 = vld [vmem:[%s8054_s6 + $0x10] sm:$0xff]   ;;  %vm240_vm1 = vcmp.ge.s32.totalorder %v4658_v31, 0  ;;  %vm245_vm2 = vcmp.lt.s32.totalorder %v4658_v31, 16 }
  0x7c   :  { %8277 = vst [vmem:[#allocation47_spill] sm:$0xff] %v4655_v29  ;;  %8278 = vst [vmem:[#allocation48_spill] sm:$0xff] %v4663_v32  ;;  %v4683_v38 = vld [vmem:[%s8054_s6 + $0x18] sm:$0xff]   ;;  %vm227_vm3 = vcmp.ge.s32.totalorder %v223_v36, 0  ;;  %v4696_v42 = vadd.s32 1, %v4597_v10  ;;  %s4698_s6 = sld [smem:[#allocation9 + $0x2]] }
  0x7d   :  { %vm4691_vm4 = vmand %vm240_vm1, %vm245_vm2  ;;  %vm229_vm5 = vcmp.ge.s32.totalorder %v225_v40, 0  ;;  %v4708_v43 = vadd.s32 1, %v186_v35  ;;  %8282 = sst [smem:[#allocation50_spill]] %s4710_s12  ;;  %v4718_v45 = vadd.s32 1, %v200_v39  ;;  %s4731_s22 = sld [smem:[#allocation9 + $0x7]]  ;;  %v4398_v50 = vmov 0.0  }
  0x7e   :  { %vm241_vm6 = vmand %vm227_vm3, %vm240_vm1  ;;  %8285 = sst [smem:[#allocation51_spill]] %s4722_s25  ;;  %vm281_vm10 = vcmp.lt.s32.totalorder %v4696_v42, 16  ;;  %s4733_s28 = sld [smem:[#allocation9 + $0x8]]  ;;  %v4772_v51 = vsel %vm4691_vm4, 1.0, %v4398_v50  ;;  %v4776_v52 = vsel %vm168_vm0, 1.0, %v4398_v50 }
  0x7f   :  { %vm243_vm7 = vmand %vm229_vm5, %vm240_vm1  ;;  %s4742_s29 = sld [smem:[#allocation9 + $0x9]]  ;;  %s4744_s3 = sld [smem:[#allocation9 + $0xa]]  ;;  %vm363_vm13 = vcmp.lt.s32.totalorder %v4708_v43, 16  ;;  %vm365_vm15 = vcmp.lt.s32.totalorder %v4718_v45, 16  ;;  %8296 = vst [vmem:[#allocation54_spill] sm:$0xff] %v4772_v51  ;;  %v4827_v59 = vsel %vm281_vm10, 1.0, %v4398_v50 }
  0x80   :  { %vm4714_vm8 = vmand %vm241_vm6, %vm245_vm2  ;;  %s4754_s14 = sld [smem:[#allocation9 + $0xb]]  ;;  %s4756_s4 = sld [smem:[#allocation9 + $0xc]]  ;;  %8297 = vst [vmem:[#allocation55_spill] sm:$0xff] %v4776_v52 }
  0x81   :  { %vm4726_vm9 = vmand %vm243_vm7, %vm245_vm2  ;;  %s4766_s15 = sld [smem:[#allocation9 + $0xd]]  ;;  %s4768_s16 = sld [smem:[#allocation9 + $0xe]]  ;;  %v4791_v54 = vsel %vm4714_vm8, 1.0, %v4398_v50  ;;  %8308 = vst [vmem:[#allocation64_spill] sm:$0xff] %v4827_v59 }
  0x82   :  { %8281 = sst [smem:[#allocation49_spill]] %s4698_s6  ;;  %vm4738_vm11 = vmand %vm227_vm3, %vm168_vm0  ;;  %s4785_s17 = sld [smem:[#allocation9 + $0xf]]  ;;  %8300 = vst [vmem:[#allocation56_spill] sm:$0xff] %v4791_v54  ;;  %v4795_v55 = vsel %vm4726_vm9, 1.0, %v4398_v50 }
  0x83   :  { %8288 = sst [smem:[#allocation52_spill]] %s4731_s22  ;;  %vm4749_vm12 = vmand %vm229_vm5, %vm168_vm0  ;;  %s4787_s18 = sld [smem:[#allocation9 + $0x10]]  ;;  %8301 = vst [vmem:[#allocation57_spill] sm:$0xff] %v4795_v55  ;;  %v4807_v56 = vsel %vm4738_vm11, 1.0, %v4398_v50 }
  0x84   :  { %8289 = sst [smem:[#allocation53_spill]] %s4733_s28  ;;  %vm4761_vm14 = vmand %vm227_vm3, %vm281_vm10  ;;  %s4801_s7 = sld [smem:[#allocation9 + $0x11]]  ;;  %8303 = vst [vmem:[#allocation59_spill] sm:$0xff] %v4807_v56  ;;  %v4811_v57 = vsel %vm4749_vm12, 1.0, %v4398_v50 }
  0x85   :  { %vm4781_vm3 = vmand %vm229_vm5, %vm281_vm10  ;;  %s4803_s20 = sld [smem:[#allocation9 + $0x12]]  ;;  %8304 = vst [vmem:[#allocation60_spill] sm:$0xff] %v4811_v57  ;;  %s4817_s21 = sld [smem:[#allocation9 + $0x13]]  ;;  %v4823_v58 = vsel %vm4761_vm14, 1.0, %v4398_v50  ;;  %v531_v60 = vstv %s4742_s29  ;;  %v540_v61 = vstv %s4744_s3 }
  0x86   :  { %vm371_vm4 = vmand %vm363_vm13, %vm240_vm1  ;;  %s4819_s23 = sld [smem:[#allocation9 + $0x14]]  ;;  %8307 = vst [vmem:[#allocation63_spill] sm:$0xff] %v4823_v58  ;;  %s4831_s11 = sld [smem:[#allocation9 + $0x15]]  ;;  %v4839_v62 = vsel %vm4781_vm3, 1.0, %v4398_v50  ;;  %v532_v63 = vmul.f32 %v4791_v54, %v531_v60  ;;  %v533_v3 = vmul.f32 %v4772_v51, %v531_v60  ;;  %v534_v18 = vmul.f32 %v4795_v55, %v531_v60 }
  0x87   :  { %vm373_vm5 = vmand %vm365_vm15, %vm240_vm1  ;;  %s4833_s1 = sld [smem:[#allocation9 + $0x16]]  ;;  %8311 = vst [vmem:[#allocation67_spill] sm:$0xff] %v4839_v62  ;;  %s4843_s2 = sld [smem:[#allocation9 + $0x17]]  ;;  %v541_v23 = vmul.f32 %v4807_v56, %v540_v61  ;;  %v542_v25 = vmul.f32 %v4776_v52, %v540_v61  ;;  %v543_v26 = vmul.f32 %v4811_v57, %v540_v61  ;;  %v549_v35 = vstv %s4754_s14 }
  0x88   :  { %vm375_vm6 = vmand %vm371_vm4, %vm245_vm2  ;;  %s4845_s10 = sld [smem:[#allocation9 + $0x18]]  ;;  %s4856_s19 = sld [smem:[#allocation9 + $0x19]]  ;;  %v558_v36 = vstv %s4756_s4  ;;  %v567_v41 = vstv %s4766_s15  ;;  %v550_v43 = vmul.f32 %v4823_v58, %v549_v35  ;;  %v551_v46 = vmul.f32 %v4827_v59, %v549_v35 }
  0x89   :  { %vm377_vm1 = vmand %vm373_vm5, %vm245_vm2  ;;  %v4850_v19 = vsel %vm375_vm6, 1.0, %v4398_v50  ;;  %s4858_s24 = sld [smem:[#allocation9 + $0x1a]]  ;;  %s4871_s26 = sld [smem:[#allocation9 + $0x1b]]  ;;  %v545_v39 = vadd.f32 %v541_v23, %v532_v63  ;;  %v546_v10 = vadd.f32 %v542_v25, %v533_v3  ;;  %v547_v40 = vadd.f32 %v543_v26, %v534_v18 }
  0x8a   :  { %8314 = vst [vmem:[#allocation70_spill] sm:$0xff] %v4850_v19  ;;  %vm391_vm7 = vmand %vm363_vm13, %vm168_vm0  ;;  %v4863_v30 = vsel %vm377_vm1, 1.0, %v4398_v50  ;;  %s4879_s8 = sld [smem:[#allocation9 + $0x1c]]  ;;  %s4881_s29 = sld [smem:[#allocation9 + $0x1d]]  ;;  %v552_v47 = vmul.f32 %v4839_v62, %v549_v35  ;;  %v559_v42 = vmul.f32 %v4772_v51, %v558_v36  ;;  %v576_v45 = vstv %s4768_s16 }
  0x8b   :  { %8302 = sst [smem:[#allocation58_spill]] %s4803_s20  ;;  %8317 = vst [vmem:[#allocation73_spill] sm:$0xff] %v4863_v30  ;;  %vm393_vm2 = vmand %vm365_vm15, %vm168_vm0  ;;  %v4869_v31 = vsel %vm391_vm7, 1.0, %v4398_v50  ;;  %s4890_s3 = sld [smem:[#allocation9 + $0x1e]]  ;;  %v554_v53 = vadd.f32 %v550_v43, %v545_v39  ;;  %v555_v60 = vadd.f32 %v551_v46, %v546_v10  ;;  %v568_v63 = vmul.f32 %v4776_v52, %v567_v41 }
  0x8c   :  { %8305 = sst [smem:[#allocation61_spill]] %s4817_s21  ;;  %8318 = vst [vmem:[#allocation74_spill] sm:$0xff] %v4869_v31  ;;  %vm407_vm8 = vmand %vm363_vm13, %vm281_vm10  ;;  %v4884_v44 = vsel %vm393_vm2, 1.0, %v4398_v50  ;;  %s4892_s14 = sld [smem:[#allocation9 + $0x1f]]  ;;  %v556_v61 = vadd.f32 %v552_v47, %v547_v40  ;;  %v585_v3 = vstv %s4785_s17  ;;  %v594_v18 = vstv %s4787_s18 }
  0x8d   :  { %8306 = sst [smem:[#allocation62_spill]] %s4819_s23  ;;  %8319 = vst [vmem:[#allocation75_spill] sm:$0xff] %v4884_v44  ;;  %vm409_vm0 = vmand %vm365_vm15, %vm281_vm10  ;;  %v4897_v48 = vsel %vm407_vm8, 1.0, %v4398_v50  ;;  %s4901_s4 = sld [smem:[#allocation9 + $0x20]]  ;;  %v603_v23 = vstv %s4801_s7  ;;  %v563_v25 = vadd.f32 %v559_v42, %v554_v53  ;;  %v564_v26 = vadd.f32 %v559_v42, %v555_v60 }
  0x8e   :  { %8309 = sst [smem:[#allocation65_spill]] %s4831_s11  ;;  %8320 = vst [vmem:[#allocation76_spill] sm:$0xff] %v4897_v48  ;;  %v4899_v49 = vsel %vm409_vm0, 1.0, %v4398_v50  ;;  %s4903_s15 = sld [smem:[#allocation9 + $0x21]]  ;;  %v577_v50 = vmul.f32 %v4827_v59, %v576_v45  ;;  %v565_v35 = vadd.f32 %v559_v42, %v556_v61  ;;  %v586_v36 = vmul.f32 %v4772_v51, %v585_v3 }
  0x8f   :  { %8310 = sst [smem:[#allocation66_spill]] %s4833_s1  ;;  %8321 = vst [vmem:[#allocation77_spill] sm:$0xff] %v4899_v49  ;;  %s4907_s13 = sld [smem:[#allocation9 + $0x22]]  ;;  %v587_v39 = vmul.f32 %v4850_v19, %v585_v3  ;;  %v589_v10 = vmul.f32 %v4863_v30, %v585_v3  ;;  %v595_v40 = vmul.f32 %v4776_v52, %v594_v18  ;;  %v596_v41 = vmul.f32 %v4869_v31, %v594_v18 }
  0x90   :  { %8312 = sst [smem:[#allocation68_spill]] %s4843_s2  ;;  %s4914_s1 = sld [smem:[#allocation9 + $0x26]]  ;;  %v572_v43 = vadd.f32 %v568_v63, %v563_v25  ;;  %v573_v46 = vadd.f32 %v568_v63, %v564_v26  ;;  %v574_v47 = vadd.f32 %v568_v63, %v565_v35  ;;  %v598_v42 = vmul.f32 %v4884_v44, %v594_v18 }
  0x91   :  { %8313 = sst [smem:[#allocation69_spill]] %s4845_s10  ;;  %s4909_s5 = sld [smem:[#allocation9 + $0x24]]  ;;  %v604_v45 = vmul.f32 %v4827_v59, %v603_v23  ;;  %v605_v53 = vmul.f32 %v4897_v48, %v603_v23  ;;  %v607_v60 = vmul.f32 %v4899_v49, %v603_v23  ;;  %v612_v61 = vstv %s4871_s26 }
  0x92   :  { %8315 = sst [smem:[#allocation71_spill]] %s4856_s19  ;;  %s4912_s19 = sld [smem:[#allocation9 + $0x25]]  ;;  %v581_v63 = vadd.f32 %v577_v50, %v572_v43  ;;  %v582_v3 = vadd.f32 %v577_v50, %v573_v46  ;;  %v583_v18 = vadd.f32 %v577_v50, %v574_v47  ;;  %v613_v25 = vmul.f32 %v4791_v54, %v612_v61 }
  0x93   :  { %8316 = sst [smem:[#allocation72_spill]] %s4858_s24  ;;  %s4922_s16 = sld [smem:[#allocation9 + $0x28]]  ;;  %v614_v26 = vmul.f32 %v4772_v51, %v612_v61  ;;  %v615_v35 = vmul.f32 %v4795_v55, %v612_v61  ;;  %v621_v11 = vstv %s4879_s8  ;;  %v630_v23 = vstv %s4881_s29 }
  0x94   :  { %s4920_s22 = sld [smem:[#allocation9 + $0x27]]  ;;  %s4925_s21 = sld [smem:[#allocation9 + $0x29]]  ;;  %v590_v21 = vadd.f32 %v586_v36, %v581_v63  ;;  %v591_v43 = vadd.f32 %v587_v39, %v582_v3  ;;  %v592_v46 = vadd.f32 %v586_v36, %v583_v18  ;;  %v593_v50 = vadd.f32 %v589_v10, %v582_v3 }
  0x95   :  { %s4927_s12 = sld [smem:[#allocation9 + $0x2a]]  ;;  %s4933_s17 = sld [smem:[#allocation9 + $0x2b]]  ;;  %v622_v47 = vmul.f32 %v4807_v56, %v621_v11  ;;  %v623_v22 = vmul.f32 %v4776_v52, %v621_v11  ;;  %v624_v61 = vmul.f32 %v4811_v57, %v621_v11  ;;  %v631_v20 = vmul.f32 %v4823_v58, %v630_v23 }
  0x96   :  { %8324 = sst [smem:[#allocation80_spill]] %s4914_s1  ;;  %s4935_s18 = sld [smem:[#allocation9 + $0x2c]]  ;;  %v599_v63 = vadd.f32 %v595_v40, %v590_v21  ;;  %v600_v39 = vadd.f32 %v596_v41, %v591_v43  ;;  %v601_v36 = vadd.f32 %v595_v40, %v592_v46  ;;  %v602_v10 = vadd.f32 %v598_v42, %v593_v50 }
  0x97   :  { %8322 = sst [smem:[#allocation78_spill]] %s4909_s5  ;;  %s4938_s7 = sld [smem:[#allocation9 + $0x23]]  ;;  %v626_v3 = vadd.f32 %v622_v47, %v613_v25  ;;  %v627_v18 = vadd.f32 %v623_v22, %v614_v26  ;;  %v628_v17 = vadd.f32 %v624_v61, %v615_v35  ;;  %v632_v11 = vmul.f32 %v4827_v59, %v630_v23 }
  0x98   :  { %8323 = sst [smem:[#allocation79_spill]] %s4912_s19  ;;  %s4948_s19 = sld [smem:[#allocation9 + $0x2f]]  ;;  %v4984_v21 = vadd.f32 %v604_v45, %v599_v63  ;;  %v4986_v40 = vadd.f32 %v605_v53, %v600_v39  ;;  %v4988_v41 = vadd.f32 %v604_v45, %v601_v36  ;;  %v4990_v42 = vadd.f32 %v607_v60, %v602_v10 }
  0x99   :  { %8325 = sst [smem:[#allocation81_spill]] %s4922_s16  ;;  %s4940_s16 = sld [smem:[#allocation9 + $0x2d]]  ;;  %v633_v22 = vmul.f32 %v4839_v62, %v630_v23  ;;  %v635_v25 = vadd.f32 %v631_v20, %v626_v3  ;;  %v636_v26 = vadd.f32 %v632_v11, %v627_v18  ;;  %v639_v35 = vstv %s4890_s3 }
  0x9a   :  { %s4951_s9 = sld [smem:[#allocation9 + $0x30]]  ;;  %s4953_s1 = sld [smem:[#allocation9 + $0x31]]  ;;  %8334 = vst [vmem:[#allocation90_spill] sm:$0xff] %v4984_v21  ;;  %8335 = vst [vmem:[#allocation91_spill] sm:$0xff] %v4986_v40  ;;  %v640_v53 = vmul.f32 %v4772_v51, %v639_v35  ;;  %v648_v43 = vstv %s4892_s14  ;;  %v657_v45 = vstv %s4901_s4  ;;  %v666_v46 = vstv %s4903_s15 }
  0x9b   :  { %8326 = sst [smem:[#allocation82_spill]] %s4927_s12  ;;  %s4959_s26 = sld [smem:[#allocation9 + $0x32]]  ;;  %8336 = vst [vmem:[#allocation92_spill] sm:$0xff] %v4988_v41  ;;  %8337 = vst [vmem:[#allocation93_spill] sm:$0xff] %v4990_v42  ;;  %v637_v60 = vadd.f32 %v633_v22, %v628_v17  ;;  %v649_v20 = vmul.f32 %v4776_v52, %v648_v43  ;;  %v658_v23 = vmul.f32 %v4827_v59, %v657_v45  ;;  %v675_v36 = vstv %s4907_s13 }
  0x9c   :  { %8327 = sst [smem:[#allocation83_spill]] %s4933_s17  ;;  %s4946_s17 = sld [smem:[#allocation9 + $0x2e]]  ;;  %v667_v50 = vmul.f32 %v4772_v51, %v666_v46  ;;  %v644_v47 = vadd.f32 %v640_v53, %v635_v25  ;;  %v645_v61 = vadd.f32 %v640_v53, %v636_v26  ;;  %v668_v63 = vmul.f32 %v4850_v19, %v666_v46 }
  0x9d   :  { %8328 = sst [smem:[#allocation84_spill]] %s4935_s18  ;;  %s4961_s5 = sld [smem:[#allocation9 + $0x33]]  ;;  %v670_v39 = vmul.f32 %v4863_v30, %v666_v46  ;;  %v646_v17 = vadd.f32 %v640_v53, %v637_v60  ;;  %v684_v10 = vstv %s4938_s7  ;;  %v676_v22 = vmul.f32 %v4776_v52, %v675_v36 }
  0x9e   :  { %s4963_s18 = sld [smem:[#allocation9 + $0x34]]  ;;  %s4965_s23 = sld [smem:[#allocation9 + $0x36]]  ;;  %v653_v18 = vadd.f32 %v649_v20, %v644_v47  ;;  %v654_v11 = vadd.f32 %v649_v20, %v645_v61  ;;  %v677_v25 = vmul.f32 %v4869_v31, %v675_v36  ;;  %v679_v35 = vmul.f32 %v4884_v44, %v675_v36 }
  0x9f   :  { %s4971_s8 = sld [smem:[#allocation9 + $0x37]]  ;;  %s4973_s29 = sld [smem:[#allocation9 + $0x38]]  ;;  %v693_v3 = vstv %s4940_s16  ;;  %v655_v26 = vadd.f32 %v649_v20, %v646_v17  ;;  %v685_v53 = vmul.f32 %v4827_v59, %v684_v10  ;;  %v686_v43 = vmul.f32 %v4897_v48, %v684_v10 }
  0xa0   :  { %s4975_s12 = sld [smem:[#allocation9 + $0x39]]  ;;  %s4977_s20 = sld [smem:[#allocation9 + $0x3a]]  ;;  %v662_v45 = vadd.f32 %v658_v23, %v653_v18  ;;  %v663_v46 = vadd.f32 %v658_v23, %v654_v11  ;;  %v688_v60 = vmul.f32 %v4899_v49, %v684_v10  ;;  %v694_v47 = vmul.f32 %v4791_v54, %v693_v3 }
  0xa1   :  { %s4998_s24 = sld [smem:[#allocation9 + $0x35]]  ;;  %s5006_s10 = sld [smem:[#allocation9 + $0x40]]  ;;  %v664_v20 = vadd.f32 %v658_v23, %v655_v26  ;;  %v695_v61 = vmul.f32 %v4772_v51, %v693_v3  ;;  %v696_v17 = vmul.f32 %v4795_v55, %v693_v3  ;;  %v711_v3 = vstv %s4948_s19 }
  0xa2   :  { %s5013_s3 = sld [smem:[#allocation9 + $0x42]]  ;;  %s5019_s14 = sld [smem:[#allocation9 + $0x44]]  ;;  %v702_v36 = vstv %s4946_s17  ;;  %v671_v18 = vadd.f32 %v667_v50, %v662_v45  ;;  %v672_v11 = vadd.f32 %v668_v63, %v663_v46  ;;  %v674_v10 = vadd.f32 %v670_v39, %v663_v46 }
  0xa3   :  { %s5021_s4 = sld [smem:[#allocation9 + $0x45]]  ;;  %s5026_s15 = sld [smem:[#allocation9 + $0x46]]  ;;  %v703_v41 = vmul.f32 %v4807_v56, %v702_v36  ;;  %v673_v21 = vadd.f32 %v667_v50, %v664_v20  ;;  %v704_v23 = vmul.f32 %v4776_v52, %v702_v36  ;;  %v705_v26 = vmul.f32 %v4811_v57, %v702_v36 }
  0xa4   :  { %8329 = sst [smem:[#allocation85_spill]] %s4965_s23  ;;  %s4980_s23 = sld [smem:[#allocation9 + $0x3b]]  ;;  %v680_v42 = vadd.f32 %v676_v22, %v671_v18  ;;  %v681_v45 = vadd.f32 %v677_v25, %v672_v11  ;;  %v683_v63 = vadd.f32 %v679_v35, %v674_v10  ;;  %v712_v40 = vmul.f32 %v4823_v58, %v711_v3 }
  0xa5   :  { %8330 = sst [smem:[#allocation86_spill]] %s4971_s8  ;;  %s4982_s8 = sld [smem:[#allocation9 + $0x3c]]  ;;  %v707_v39 = vadd.f32 %v703_v41, %v694_v47  ;;  %v682_v46 = vadd.f32 %v676_v22, %v673_v21  ;;  %v708_v50 = vadd.f32 %v704_v23, %v695_v61  ;;  %v709_v20 = vadd.f32 %v705_v26, %v696_v17 }
  0xa6   :  { %8331 = sst [smem:[#allocation87_spill]] %s4973_s29  ;;  %s4994_s29 = sld [smem:[#allocation9 + $0x3e]]  ;;  %v5077_v36 = vadd.f32 %v685_v53, %v680_v42  ;;  %v5079_v25 = vadd.f32 %v686_v43, %v681_v45  ;;  %v5081_v41 = vadd.f32 %v688_v60, %v683_v63  ;;  %v713_v35 = vmul.f32 %v4827_v59, %v711_v3 }
  0xa7   :  { %8332 = sst [smem:[#allocation88_spill]] %s4977_s20  ;;  %s4992_s20 = sld [smem:[#allocation9 + $0x3d]]  ;;  %v5088_v21 = vadd.f32 %v685_v53, %v682_v46  ;;  %v714_v22 = vmul.f32 %v4839_v62, %v711_v3  ;;  %v716_v47 = vadd.f32 %v712_v40, %v707_v39  ;;  %v720_v61 = vstv %s4951_s9 }
  0xa8   :  { %s5028_s28 = sld [smem:[#allocation10]]  ;;  %s5032_s6 = sld [smem:[#allocation10 + $0x1]]  ;;  %8354 = vst [vmem:[#allocation110_spill] sm:$0xff] %v5077_v36  ;;  %8355 = vst [vmem:[#allocation111_spill] sm:$0xff] %v5079_v25  ;;  %v717_v42 = vadd.f32 %v713_v35, %v708_v50  ;;  %v721_v43 = vmul.f32 %v4772_v51, %v720_v61  ;;  %v729_v60 = vstv %s4953_s1  ;;  %v738_v17 = vstv %s4959_s26 }
  0xa9   :  { %s5034_s25 = sld [smem:[#allocation10 + $0x2]]  ;;  %s5039_s13 = sld [smem:[#allocation10 + $0x3]]  ;;  %8356 = vst [vmem:[#allocation112_spill] sm:$0xff] %v5081_v41  ;;  %8358 = vst [vmem:[#allocation114_spill] sm:$0xff] %v5088_v21  ;;  %v718_v53 = vadd.f32 %v714_v22, %v709_v20  ;;  %v730_v18 = vmul.f32 %v4776_v52, %v729_v60  ;;  %v739_v40 = vmul.f32 %v4827_v59, %v738_v17  ;;  %v747_v11 = vstv %s4961_s5 }
  0xaa   :  { %s5041_s16 = sld [smem:[#allocation12]]  ;;  %s5045_s7 = sld [smem:[#allocation12 + $0x1]]  ;;  %v725_v10 = vadd.f32 %v721_v43, %v716_v47  ;;  %v726_v23 = vadd.f32 %v721_v43, %v717_v42  ;;  %v748_v26 = vmul.f32 %v4772_v51, %v747_v11  ;;  %v749_v3 = vmul.f32 %v4850_v19, %v747_v11 }
  0xab   :  { %8333 = sst [smem:[#allocation89_spill]] %s4982_s8  ;;  %s5000_s8 = sld [smem:[#allocation9 + $0x3f]]  ;;  %v727_v45 = vadd.f32 %v721_v43, %v718_v53  ;;  %v751_v63 = vmul.f32 %v4863_v30, %v747_v11  ;;  %v756_v39 = vstv %s4963_s18  ;;  %v765_v46 = vstv %s4998_s24 }
  0xac   :  { %8339 = sst [smem:[#allocation95_spill]] %s4994_s29  ;;  %s5015_s29 = sld [smem:[#allocation9 + $0x43]]  ;;  %v734_v50 = vadd.f32 %v730_v18, %v725_v10  ;;  %v735_v20 = vadd.f32 %v730_v18, %v726_v23  ;;  %v757_v35 = vmul.f32 %v4776_v52, %v756_v39  ;;  %v758_v22 = vmul.f32 %v4869_v31, %v756_v39 }
  0xad   :  { %8338 = sst [smem:[#allocation94_spill]] %s4992_s20  ;;  %s5008_s20 = sld [smem:[#allocation9 + $0x41]]  ;;  %v736_v47 = vadd.f32 %v730_v18, %v727_v45  ;;  %v760_v61 = vmul.f32 %v4884_v44, %v756_v39  ;;  %v766_v42 = vmul.f32 %v4827_v59, %v765_v46  ;;  %v767_v43 = vmul.f32 %v4897_v48, %v765_v46 }
  0xae   :  { %8340 = sst [smem:[#allocation96_spill]] %s5032_s6  ;;  %s5057_s6 = sld [smem:[#allocation12 + $0x5]]  ;;  %v743_v60 = vadd.f32 %v739_v40, %v734_v50  ;;  %v744_v17 = vadd.f32 %v739_v40, %v735_v20  ;;  %v769_v53 = vmul.f32 %v4899_v49, %v765_v46  ;;  %v783_v20 = vstv %s5006_s10 }
  0xaf   :  { %8341 = sst [smem:[#allocation97_spill]] %s5034_s25  ;;  %s5047_s25 = sld [smem:[#allocation12 + $0x2]]  ;;  %v745_v18 = vadd.f32 %v739_v40, %v736_v47  ;;  %v784_v47 = vmul.f32 %v4807_v56, %v783_v20  ;;  %v785_v41 = vmul.f32 %v4776_v52, %v783_v20 }
  0xb0   :  { %8342 = sst [smem:[#allocation98_spill]] %s5039_s13  ;;  %s5052_s13 = sld [smem:[#allocation12 + $0x3]]  ;;  %v752_v39 = vadd.f32 %v748_v26, %v743_v60  ;;  %v753_v50 = vadd.f32 %v749_v3, %v744_v17  ;;  %v755_v46 = vadd.f32 %v751_v63, %v744_v17 }
  0xb1   :  { %8343 = sst [smem:[#allocation99_spill]] %s5041_s16  ;;  %s5054_s16 = sld [smem:[#allocation12 + $0x4]]  ;;  %v774_v11 = vstv %s5000_s8  ;;  %v754_v40 = vadd.f32 %v748_v26, %v745_v18 }
  0xb2   :  { %8344 = sst [smem:[#allocation100_spill]] %s5045_s7  ;;  %s5059_s7 = sld [smem:[#allocation12 + $0x6]]  ;;  %v775_v10 = vmul.f32 %v4791_v54, %v774_v11  ;;  %v776_v23 = vmul.f32 %v4772_v51, %v774_v11  ;;  %v777_v45 = vmul.f32 %v4795_v55, %v774_v11  ;;  %v786_v11 = vmul.f32 %v4811_v57, %v783_v20 }
  0xb3   :  { %s5064_s17 = sld [smem:[#allocation12 + $0x7]]  ;;  %s5075_s19 = sld [smem:[#allocation12 + $0xc]]  ;;  %v761_v60 = vadd.f32 %v757_v35, %v752_v39  ;;  %v762_v3 = vadd.f32 %v758_v22, %v753_v50  ;;  %v764_v63 = vadd.f32 %v760_v61, %v755_v46  ;;  %v792_v17 = vstv %s5008_s20 }
  0xb4   :  { %8348 = sst [smem:[#allocation104_spill]] %s5057_s6  ;;  %s5099_s6 = sld [smem:[#allocation12 + $0x11]]  ;;  %v763_v21 = vadd.f32 %v757_v35, %v754_v40  ;;  %v788_v36 = vadd.f32 %v784_v47, %v775_v10  ;;  %v789_v26 = vadd.f32 %v785_v41, %v776_v23  ;;  %v790_v18 = vadd.f32 %v786_v11, %v777_v45 }
  0xb5   :  { %8345 = sst [smem:[#allocation101_spill]] %s5047_s25  ;;  %s5068_s25 = sld [smem:[#allocation12 + $0x9]]  ;;  %v5162_v56 = vadd.f32 %v766_v42, %v761_v60  ;;  %v5164_v25 = vadd.f32 %v767_v43, %v762_v3  ;;  %v5166_v20 = vadd.f32 %v769_v53, %v764_v63  ;;  %v793_v57 = vmul.f32 %v4823_v58, %v792_v17 }
  0xb6   :  { %8346 = sst [smem:[#allocation102_spill]] %s5052_s13  ;;  %s5066_s13 = sld [smem:[#allocation12 + $0x8]]  ;;  %v5169_v54 = vadd.f32 %v766_v42, %v763_v21  ;;  %v794_v22 = vmul.f32 %v4827_v59, %v792_v17  ;;  %v795_v61 = vmul.f32 %v4839_v62, %v792_v17  ;;  %v801_v35 = vstv %s5013_s3 }
  0xb7   :  { %8347 = sst [smem:[#allocation103_spill]] %s5054_s16  ;;  %s5070_s16 = sld [smem:[#allocation12 + $0xa]]  ;;  %8370 = vst [vmem:[#allocation126_spill] sm:$0xff] %v5162_v56  ;;  %8371 = vst [vmem:[#allocation127_spill] sm:$0xff] %v5164_v25  ;;  %v797_v41 = vadd.f32 %v793_v57, %v788_v36  ;;  %v802_v10 = vmul.f32 %v4772_v51, %v801_v35  ;;  %v810_v23 = vstv %s5015_s29  ;;  %v819_v43 = vstv %s5019_s14 }
  0xb8   :  { %8349 = sst [smem:[#allocation105_spill]] %s5059_s7  ;;  %s5073_s7 = sld [smem:[#allocation12 + $0xb]]  ;;  %8372 = vst [vmem:[#allocation128_spill] sm:$0xff] %v5166_v20  ;;  %8373 = vst [vmem:[#allocation129_spill] sm:$0xff] %v5169_v54  ;;  %v798_v45 = vadd.f32 %v794_v22, %v789_v26  ;;  %v799_v39 = vadd.f32 %v795_v61, %v790_v18  ;;  %v811_v53 = vmul.f32 %v4776_v52, %v810_v23  ;;  %v828_v42 = vstv %s5021_s4 }
  0xb9   :  { %8353 = sst [smem:[#allocation109_spill]] %s5075_s19  ;;  %s5092_s19 = sld [smem:[#allocation12 + $0xf]]  ;;  %v806_v50 = vadd.f32 %v802_v10, %v797_v41  ;;  %v820_v21 = vmul.f32 %v4827_v59, %v819_v43  ;;  %v837_v47 = vstv %s5026_s15  ;;  %v829_v60 = vmul.f32 %v4772_v51, %v828_v42 }
  0xba   :  { %8360 = sst [smem:[#allocation116_spill]] %s5099_s6  ;;  %s5106_s9 = sld [smem:[#allocation12 + $0x13]]  ;;  %v807_v46 = vadd.f32 %v802_v10, %v798_v45  ;;  %v808_v40 = vadd.f32 %v802_v10, %v799_v39  ;;  %v830_v63 = vmul.f32 %v4850_v19, %v828_v42  ;;  %v832_v17 = vmul.f32 %v4863_v30, %v828_v42 }
  0xbb   :  { %8351 = sst [smem:[#allocation107_spill]] %s5068_s25  ;;  %s5084_s25 = sld [smem:[#allocation12 + $0xd]]  ;;  %v815_v11 = vadd.f32 %v811_v53, %v806_v50  ;;  %v838_v18 = vmul.f32 %v4776_v52, %v837_v47  ;;  %v839_v35 = vmul.f32 %v4869_v31, %v837_v47  ;;  %v841_v41 = vmul.f32 %v4884_v44, %v837_v47 }
  0xbc   :  { %8350 = sst [smem:[#allocation106_spill]] %s5066_s13  ;;  %s5086_s13 = sld [smem:[#allocation12 + $0xe]]  ;;  %v816_v57 = vadd.f32 %v811_v53, %v807_v46  ;;  %v817_v36 = vadd.f32 %v811_v53, %v808_v40 }
  0xbd   :  { %s5112_s1 = sld [smem:[#allocation12 + $0x15]]  ;;  %s5114_s26 = sld [smem:[#allocation12 + $0x16]]  ;;  %v824_v26 = vadd.f32 %v820_v21, %v815_v11 }
  0xbe   :  { %8352 = sst [smem:[#allocation108_spill]] %s5073_s7  ;;  %s5094_s7 = sld [smem:[#allocation12 + $0x10]]  ;;  %v825_v22 = vadd.f32 %v820_v21, %v816_v57  ;;  %v826_v61 = vadd.f32 %v820_v21, %v817_v36 }
  0xbf   :  { %8359 = sst [smem:[#allocation115_spill]] %s5092_s19  ;;  %s5108_s19 = sld [smem:[#allocation12 + $0x14]]  ;;  %v833_v10 = vadd.f32 %v829_v60, %v824_v26 }
  0xc0   :  { %s5119_s5 = sld [smem:[#allocation12 + $0x17]]  ;;  %s5125_s6 = sld [smem:[#allocation12 + $0x19]]  ;;  %v834_v45 = vadd.f32 %v830_v63, %v825_v22  ;;  %v835_v39 = vadd.f32 %v829_v60, %v826_v61  ;;  %v836_v53 = vadd.f32 %v832_v17, %v825_v22 }
  0xc1   :  { %s5132_s24 = sld [smem:[#allocation12 + $0x1b]]  ;;  %s5134_s18 = sld [smem:[#allocation12 + $0x1c]]  ;;  %v842_v42 = vadd.f32 %v838_v18, %v833_v10 }
  0xc2   :  { %8357 = sst [smem:[#allocation113_spill]] %s5086_s13  ;;  %s5101_s13 = sld [smem:[#allocation12 + $0x12]]  ;;  %v843_v46 = vadd.f32 %v839_v35, %v834_v45  ;;  %v844_v40 = vadd.f32 %v838_v18, %v835_v39  ;;  %v845_v11 = vadd.f32 %v841_v41, %v836_v53 }
  0xc3   :  { %8363 = sst [smem:[#allocation119_spill]] %s5112_s1  ;;  %s5127_s1 = sld [smem:[#allocation12 + $0x1a]] }
  0xc4   :  { %s5150_s8 = sld [smem:[#allocation12 + $0x21]]  ;;  %s5211_s20 = smov 0  }
  0xc5   :  { %8362 = sst [smem:[#allocation118_spill]] %s5108_s19 }
  0xc6   :  { %s5147_s19 = sld [smem:[#allocation12 + $0x20]] }
  0xc7   :  { %8366 = sst [smem:[#allocation122_spill]] %s5132_s24  ;;  %s5145_s24 = sld [smem:[#allocation12 + $0x1f]] }
  0xc8   :  { %8361 = sst [smem:[#allocation117_spill]] %s5101_s13  ;;  %s5121_s13 = sld [smem:[#allocation12 + $0x18]] }
  0xc9   :  { %8365 = sst [smem:[#allocation121_spill]] %s5127_s1  ;;  %s5140_s1 = sld [smem:[#allocation12 + $0x1e]] }
  0xcd   :  { %8369 = sst [smem:[#allocation125_spill]] %s5145_s24  ;;  %s5159_s24 = sld [smem:[#allocation12 + $0x23]] }
  0xce   :  { %8364 = sst [smem:[#allocation120_spill]] %s5121_s13  ;;  %s5138_s13 = sld [smem:[#allocation12 + $0x1d]] }
  0xcf   :  { %8368 = sst [smem:[#allocation124_spill]] %s5140_s1  ;;  %s5157_s1 = sld [smem:[#allocation9 + $0x47]] }
  0xd4   :  { %8367 = sst [smem:[#allocation123_spill]] %s5138_s13  ;;  %s5152_s13 = sld [smem:[#allocation12 + $0x22]] }
  0xd5   :  { %v846_v3 = vstv %s5157_s1 }
  0xd6   :  { %v847_v23 = vmul.f32 %v4827_v59, %v846_v3  ;;  %v848_v43 = vmul.f32 %v4897_v48, %v846_v3  ;;  %v850_v50 = vmul.f32 %v4899_v49, %v846_v3 }
  0xd8   :  { %v5191_v57 = vadd.f32 %v847_v23, %v842_v42  ;;  %v5193_v21 = vadd.f32 %v848_v43, %v843_v46  ;;  %v5195_v36 = vadd.f32 %v847_v23, %v844_v40  ;;  %v5197_v47 = vadd.f32 %v850_v50, %v845_v11 }
  0xda   :  { %8374 = vst [vmem:[#allocation130_spill] sm:$0xff] %v5191_v57  ;;  %8375 = vst [vmem:[#allocation131_spill] sm:$0xff] %v5193_v21 }
  0xdb   :  { %8376 = vst [vmem:[#allocation132_spill] sm:$0xff] %v5195_v36  ;;  %8377 = vst [vmem:[#allocation133_spill] sm:$0xff] %v5197_v47 }
  0xdc LB: > { %v8378_v52 = vld [vmem:[#allocation55_spill] sm:$0xff]  ;;  %v8379_v59 = vld [vmem:[#allocation64_spill] sm:$0xff]  ;;  %v8380_v51 = vld [vmem:[#allocation54_spill] sm:$0xff]  ;;  %vm867_vm9 = vcmask 130048   ;;  %vm965_vm10 = vcmask 261120   ;;  %s4399_s10 = smov 32   ;;  %v4369_v38 = vphi %v4683_v38, %v8875_v38   ;;  %s4385_s20 = sphi %s5211_s20, %s860_s20   ;;  %v4381_v33 = vphi %v4668_v33, %v8878_v33   ;;  %v4377_v34 = vphi %v4673_v34, %v8877_v34   ;;  %v4373_v37 = vphi %v4678_v37, %v8876_v37  }
  0xdd   : > { %v8381_v16 = vld [vmem:[#allocation39_spill] sm:$0xff]  ;;  %v8382_v15 = vld [vmem:[#allocation38_spill] sm:$0xff]  ;;  %v8383_v14 = vld [vmem:[#allocation36_spill] sm:$0xff]  ;;  %3953 = vmatprep.mubr.msk.f32.mxu1 %vm867_vm9, %v4381_v33  ;;  %vm1063_vm11 = vcmask 1047808   ;;  %s8108_s29 = smov 16   ;;  %s4401_s3 = smov 112  }
  0xde   : > { %v8384_v13 = vld [vmem:[#allocation35_spill] sm:$0xff]  ;;  %v8385_v12 = vld [vmem:[#allocation34_spill] sm:$0xff]  ;;  %v8386_v9 = vld [vmem:[#allocation32_spill] sm:$0xff]  ;;  %s865_s14 = sld [smem:[#allocation3 + %s4385_s20]]  ;;  %s8106_s4 = smov 15   ;;  %vm1522_vm14 = vcmask 1047680  }
  0xdf   : > { %v8387_v8 = vld [vmem:[#allocation31_spill] sm:$0xff]  ;;  %v8388_v7 = vld [vmem:[#allocation30_spill] sm:$0xff]  ;;  %v8389_v0 = vld [vmem:[#allocation23_spill] sm:$0xff]  ;;  %s4403_s15 = smov 1   ;;  %s8421_s11 = sld [smem:[#allocation65_spill]] }
  0xe0   : > { %v8390_v1 = vld [vmem:[#allocation24_spill] sm:$0xff]  ;;  %3981 = vmatprep.mubr.msk.f32.mxu0 %vm965_vm10, %v8388_v7  ;;  %v8391_v24 = vld [vmem:[#allocation44_spill] sm:$0xff]  ;;  %v8392_v2 = vld [vmem:[#allocation25_spill] sm:$0xff]  ;;  %s8146_s1 = smov 113   ;;  %s8423_s2 = sld [smem:[#allocation68_spill]] }
  0xe1   : > { %v4029_v60 = vpack.c.bf16 %v8390_v1, %v8389_v0  ;;  %v8393_v4 = vld [vmem:[#allocation26_spill] sm:$0xff]  ;;  %v8394_v5 = vld [vmem:[#allocation27_spill] sm:$0xff]  ;;  %v8395_v6 = vld [vmem:[#allocation28_spill] sm:$0xff]  ;;  %s8428_s0 = sld [smem:[#allocation29_spill]] }
  0xe2   : > { %v4049_v42 = vpack.c.bf16 %v8393_v4, %v8392_v2  ;;  %v4053_v11 = vpack.c.bf16 %v8395_v6, %v8394_v5  ;;  %v8396_v27 = vld [vmem:[#allocation45_spill] sm:$0xff]  ;;  %v8397_v28 = vld [vmem:[#allocation46_spill] sm:$0xff]  ;;  %v8398_v32 = vld [vmem:[#allocation48_spill] sm:$0xff] }
  0xe3   : > { %4030 = vmatprep.subr.bf16.mxu1 %v4029_v60  ;;  %v8399_v29 = vld [vmem:[#allocation47_spill] sm:$0xff]  ;;  %v8404_v55 = vld [vmem:[#allocation57_spill] sm:$0xff]  ;;  %v8406_v62 = vld [vmem:[#allocation67_spill] sm:$0xff] }
  0xe4   : > { %4032 = vmatpush3.bf16.msra.mxu1 %v4029_v60  ;;  %v8407_v58 = vld [vmem:[#allocation63_spill] sm:$0xff]  ;;  %v8409_v19 = vld [vmem:[#allocation70_spill] sm:$0xff]  ;;  %v8514_v31 = vld [vmem:[#allocation74_spill] sm:$0xff] }
  0xe5   : > { %v8408_v30 = vld [vmem:[#allocation73_spill] sm:$0xff]  ;;  %v8411_v48 = vld [vmem:[#allocation76_spill] sm:$0xff]  ;;  %v8526_v25 = vld [vmem:[#allocation127_spill] sm:$0xff] }
  0xe6   : > { %v8410_v49 = vld [vmem:[#allocation77_spill] sm:$0xff]  ;;  %v8527_v56 = vld [vmem:[#allocation126_spill] sm:$0xff]  ;;  %v8546_v44 = vld [vmem:[#allocation75_spill] sm:$0xff] }
  0xe7   : > { %3954 = vmatmul.mubr.msk.f32.vlgmr.msra.gmra.mrb[0].mxu1 %vm867_vm9, %v4377_v34  ;;  %v8537_v57 = vld [vmem:[#allocation130_spill] sm:$0xff] }
  0xe8   : > { %3956 = vmatprep.mubr.msk.f32.mxu1 %vm867_vm9, %v4373_v37 }
  0xeb   : > { %3957 = vmatmul.mubr.msk.f32.gmra.mrb[2].mxu1 %vm867_vm9, %v4369_v38 }
  0xec   : > { %3967 = vmatprep.mubr.msk.f32.mxu1 %vm965_vm10, %v8384_v13 }
 0x1ba   : > { %v3955_v3 = vpop.f32.mrb[0].mxu1 }
 0x1bb   : > { %v946_v63 = vpop.f32.mrb[1].mxu1 }
 0x1bc   : > { %v4033_v17 = vpack.c.bf16 %v3955_v3, %v946_v63 }
 0x1be   : > { %v3958_v26 = vpop.f32.mrb[2].mxu1  ;;  %4034 = vmatprep.subr.bf16.mxu1 %v4033_v17  ;;  %4042 = vmatprep.subr.bf16.mxu0 %v4033_v17 }
 0x1bf   : > { %v956_v33 = vpop.f32.mrb[3].mxu1  ;;  %4036 = vmatpush3.bf16.msra.mxu1 %v4033_v17  ;;  %4044 = vmatpush3.bf16.msra.mxu0 %v4033_v17 }
 0x1c0   : > { %v4037_v34 = vpack.c.bf16 %v3958_v26, %v956_v33 }
 0x1c2   : > { %4038 = vmatprep.subr.bf16.mxu1 %v4037_v34  ;;  %4046 = vmatprep.subr.bf16.mxu0 %v4037_v34 }
 0x1c3   : > { %4040 = vmatpush3.bf16.msra.mxu1 %v4037_v34  ;;  %4048 = vmatpush3.bf16.msra.mxu0 %v4037_v34 }
 0x1c4   : > { %4050 = vmatprep.subr.bf16.mxu1 %v4049_v42 }
 0x1c6   : > { %3968 = vmatmul.mubr.msk.f32.vlgmr.msra.gmra.mrb[4].mxu1 %vm965_vm10, %v8383_v14  ;;  %3982 = vmatmul.mubr.msk.f32.vlgmr.msra.gmra.mrb[0].mxu0 %vm965_vm10, %v8387_v8 }
 0x1c7   : > { %3970 = vmatprep.mubr.msk.f32.mxu1 %vm965_vm10, %v8382_v15  ;;  %3984 = vmatprep.mubr.msk.f32.mxu0 %vm965_vm10, %v8386_v9 }
 0x1c8   : > { %4052 = vmatpush3.bf16.msra.mxu1 %v4049_v42 }
 0x1c9   : > { %4054 = vmatprep.subr.bf16.mxu1 %v4053_v11 }
 0x1ca   : > { %3971 = vmatmul.mubr.msk.f32.gmra.mrb[6].mxu1 %vm965_vm10, %v8381_v16  ;;  %3985 = vmatmul.mubr.msk.f32.gmra.mrb[2].mxu0 %vm965_vm10, %v8385_v12 }
 0x1cb   : > { %4009 = vmatprep.mubr.msk.f32.mxu0 %vm965_vm10, %v8384_v13 }
 0x1cc   : > { %4056 = vmatpush3.bf16.msra.mxu1 %v4053_v11 }
 0x299   : > { %v3969_v37 = vpop.f32.mrb[4].mxu1  ;;  %v3983_v35 = vpop.f32.mrb[0].mxu0 }
 0x29a   : > { %v1044_v38 = vpop.f32.mrb[5].mxu1  ;;  %v1190_v10 = vpop.f32.mrb[1].mxu0 }
 0x29b   : > { %1064 = vrot.lane.b32.xlu0 %v1044_v38, %s4399_s10 }
 0x29d   : > { %v3972_v18 = vpop.f32.mrb[6].mxu1  ;;  %v3986_v46 = vpop.f32.mrb[2].mxu0 }
 0x29e   : > { %v1054_v22 = vpop.f32.mrb[7].mxu1  ;;  %v1200_v40 = vpop.f32.mrb[3].mxu0 }
 0x29f   : > { %1067 = vrot.lane.b32.xlu0 %v3969_v37, %s4399_s10  ;;  %1070 = vrot.lane.b32.xlu1 %v1054_v22, %s4399_s10 }
 0x2a3   : > { %1073 = vrot.lane.b32.xlu1 %v3972_v18, %s4399_s10 }
 0x30d   : > { %v1065_v61 = vpop.permute.xlu0 %1064 }
 0x30e   : > { %v1066_v41 = vsel %vm1063_vm11, %v1065_v61, %v1044_v38 }
 0x30f   : > { %1076 = vrot.lane.b32.xlu0 %v1066_v41, %s4399_s10 }
 0x311   : > { %v1068_v23 = vpop.permute.xlu0 %1067  ;;  %v1071_v43 = vpop.permute.xlu1 %1070 }
 0x312   : > { %v1069_v45 = vsel %vm1063_vm11, %v1068_v23, %v3969_v37  ;;  %v1072_v53 = vsel %vm1063_vm11, %v1071_v43, %v1054_v22 }
 0x313   : > { %1089 = vrot.lane.b32.xlu0 %v8391_v24, %s8108_s29  ;;  %1078 = vrot.lane.b32.xlu1 %v1069_v45, %s4399_s10  ;;  %v5488_v24 = vstv %s8421_s11  ;;  %s8523_s11 = sld [smem:[#allocation94_spill]] }
 0x315   : > { %v1074_v39 = vpop.permute.xlu1 %1073 }
 0x316   : > { %v1075_v50 = vsel %vm1063_vm11, %v1074_v39, %v3972_v18 }
 0x317   : > { %1080 = vrot.lane.b32.xlu1 %v1072_v53, %s4399_s10  ;;  %1082 = vrot.lane.b32.xlu0 %v1075_v50, %s4399_s10  ;;  %s8114_s10 = smov 127  }
 0x381   : > { %v1077_v60 = vpop.permute.xlu0 %1076 }
 0x382   : > { %v1084_v3 = vsel %vm1063_vm11, %v1077_v60, %v1044_v38 }
 0x385   : > { %v1090_v63 = vpop.permute.xlu0 %1089  ;;  %v1079_v17 = vpop.permute.xlu1 %1078 }
 0x386   : > { %v1085_v26 = vsel %vm1063_vm11, %v1079_v17, %v3969_v37  ;;  %v1092_v33 = vmul.f32 %v1090_v63, %v1084_v3  ;;  %v1209_v37 = vstv %s865_s14  ;;  %s8432_s14 = sld [smem:[#allocation49_spill]] }
 0x387   : > { %v1093_v34 = vmul.f32 %v1090_v63, %v1085_v26  ;;  %v1218_v39 = vadd.f32 %v1209_v37, %v8396_v27  ;;  %v1219_v53 = vadd.f32 %v1209_v37, %v8397_v28  ;;  %v1221_v50 = vadd.f32 %v1209_v37, %v8398_v32 }
 0x388   : > { %1100 = vrot.lane.b32.xlu1 %v1092_v33, %s4401_s3  ;;  %v8400_v33 = vld [vmem:[#allocation40_spill] sm:$0xff] }
 0x389   : > { %v1083_v61 = vpop.permute.xlu0 %1082  ;;  %1102 = vrot.lane.b32.xlu0 %v1093_v34, %s4401_s3  ;;  %v1081_v41 = vpop.permute.xlu1 %1080  ;;  %4207 = vrcp.f32 %v1218_v39 }
 0x38a   : > { %v1087_v23 = vsel %vm1063_vm11, %v1083_v61, %v3972_v18  ;;  %v1086_v43 = vsel %vm1063_vm11, %v1081_v41, %v1054_v22  ;;  %4209 = vrcp.f32 %v1219_v53  ;;  %v1220_v18 = vadd.f32 %v1209_v37, %v8399_v29 }
 0x38b   : > { %v1095_v45 = vmul.f32 %v1090_v63, %v1087_v23  ;;  %v1094_v38 = vmul.f32 %v1090_v63, %v1086_v43  ;;  %4211 = vrcp.f32 %v1221_v50  ;;  %v8401_v23 = vld [vmem:[#allocation41_spill] sm:$0xff] }
 0x38c   : > { %4213 = vrcp.f32 %v1220_v18 }
 0x38d   : > { %1106 = vrot.lane.b32.xlu0 %v1095_v45, %s4401_s3  ;;  %1104 = vrot.lane.b32.xlu1 %v1094_v38, %s4401_s3 }
 0x393   : > { %v4208_v63 = vpop.eup %4207 }
 0x394   : > { %v4210_v26 = vpop.eup %4209 }
 0x395   : > { %v4212_v53 = vpop.eup %4211 }
 0x3fa   : > { %v1101_v22 = vpop.permute.xlu1 %1100 }
 0x3fb   : > { %v1191_v42 = vadd.f32 %v1190_v10, %v1101_v22  ;;  %v1103_v11 = vpop.permute.xlu0 %1102  ;;  %v4214_v10 = vpop.eup %4213 }
 0x3fc   : > { %v1196_v60 = vadd.f32 %v3983_v35, %v1103_v11  ;;  %v8402_v35 = vld [vmem:[#allocation43_spill] sm:$0xff] }
 0x3fd   : > { %v1210_v3 = vmul.f32 %v1209_v37, %v1191_v42  ;;  %v8403_v42 = vld [vmem:[#allocation42_spill] sm:$0xff] }
 0x3fe   : > { %v1211_v17 = vmul.f32 %v1209_v37, %v1196_v60 }
 0x3ff   : > { %v1214_v34 = vadd.f32 %v1210_v3, %v8400_v33  ;;  %v1107_v61 = vpop.permute.xlu0 %1106  ;;  %v1105_v41 = vpop.permute.xlu1 %1104 }
 0x400   : > { %v1215_v43 = vadd.f32 %v1211_v17, %v8401_v23  ;;  %v1206_v45 = vadd.f32 %v3986_v46, %v1107_v61  ;;  %v1201_v38 = vadd.f32 %v1200_v40, %v1105_v41  ;;  %v8405_v61 = vld [vmem:[#allocation56_spill] sm:$0xff]  ;;  %v4162_v23 = vpack.i.bf16 %v8379_v59, %v8406_v62 }
 0x401   : > { %v1226_v39 = vmul.f32 %v4208_v63, %v1214_v34  ;;  %v4147_v41 = vpack.i.bf16 %v8380_v51, %v8405_v61 }
 0x402   : > { %v1227_v50 = vmul.f32 %v4210_v26, %v1215_v43  ;;  %v1213_v18 = vmul.f32 %v1209_v37, %v1206_v45  ;;  %v1212_v0 = vmul.f32 %v1209_v37, %v1201_v38  ;;  %v4157_v43 = vpack.i.bf16 %v8379_v59, %v8407_v58 }
 0x403   : > { %3995 = vmatprep.mubr.msk.f32.mxu1 %vm965_vm10, %v1226_v39  ;;  %v4172_v45 = vpack.i.bf16 %v8380_v51, %v8380_v51  ;;  %v4182_v38 = vpack.i.bf16 %v8379_v59, %v8379_v59  ;;  %v4192_v39 = vpack.i.bf16 %v8408_v30, %v8380_v51  ;;  %v5544_v58 = vstv %s4925_s21 }
 0x404   : > { %v1217_v22 = vadd.f32 %v1213_v18, %v8402_v35  ;;  %v1216_v11 = vadd.f32 %v1212_v0, %v8403_v42  ;;  %3996 = vmatmul.mubr.msk.f32.vlgmr.msra.gmra.mrb[8].mxu1 %vm965_vm10, %v1227_v50  ;;  %v4152_v0 = vpack.i.bf16 %v8380_v51, %v8404_v55  ;;  %v4202_v50 = vpack.i.bf16 %v8410_v49, %v8379_v59 }
 0x405   : > { %v4197_v18 = vpack.i.bf16 %v8411_v48, %v8379_v59  ;;  %v5507_v48 = vstv %s8423_s2  ;;  %v2371_v59 = vstv %s4975_s12  ;;  %s8441_s2 = sld [smem:[#allocation62_spill]] }
 0x406   : > { %v1229_v60 = vmul.f32 %v4212_v53, %v1217_v22  ;;  %v1228_v3 = vmul.f32 %v4214_v10, %v1216_v11  ;;  %v4187_v53 = vpack.i.bf16 %v8409_v19, %v8380_v51  ;;  %v5479_v19 = vstv %s4720_s30 }
 0x407   : > { %v5522_v51 = vstv %s4920_s22 }
 0x408   : > { %3998 = vmatprep.mubr.msk.f32.mxu1 %vm965_vm10, %v1228_v3 }
 0x409   : > { %3999 = vmatmul.mubr.msk.f32.gmra.mrb[10].mxu1 %vm965_vm10, %v1229_v60 }
 0x4d7   : > { %v3997_v46 = vpop.f32.mrb[8].mxu1 }
 0x4d8   : > { %v1308_v40 = vpop.f32.mrb[9].mxu1 }
 0x4d9   : > { %v4137_v63 = vpack.i.bf16 %v3997_v46, %v1308_v40  ;;  %v4065_v17 = vpack.c.bf16 %v3997_v46, %v1308_v40 }
 0x4db   : > { %4138 = vrot.lane.b32.xlu1 %v4137_v63, %s4401_s3 }
 0x4dc   : > { %v4000_v37 = vpop.f32.mrb[10].mxu1 }
 0x4dd   : > { %v1318_v26 = vpop.f32.mrb[11].mxu1 }
 0x4de   : > { %v4142_v33 = vpack.i.bf16 %v4000_v37, %v1318_v26  ;;  %v4069_v34 = vpack.c.bf16 %v4000_v37, %v1318_v26  ;;  %v8414_v37 = vld [vmem:[#allocation33_spill] sm:$0xff] }
 0x4df   : > { %4148 = vrot.lane.b32.xlu1 %v4147_v41, %s8106_s4  ;;  %v8415_v26 = vmov %v8414_v37  ;;  %vm1517_vm12 = vcmp.lt.s32.totalorder %v8414_v37, 1 }
 0x4e0   : > { %4143 = vrot.lane.b32.xlu0 %v4142_v33, %s4401_s3  ;;  %vm1659_vm13 = vcmp.lt.s32.totalorder %v8415_v26, 7  ;;  %s8429_s3 = sld [smem:[#allocation51_spill]] }
 0x4e3   : > { %4158 = vrot.lane.b32.xlu1 %v4157_v43, %s4403_s15 }
 0x4e4   : > { %4153 = vrot.lane.b32.xlu0 %v4152_v0, %s8106_s4 }
 0x4e7   : > { %4168 = vrot.lane.b32.xlu1 %v4172_v45, %s8106_s4 }
 0x4e8   : > { %4163 = vrot.lane.b32.xlu0 %v4162_v23, %s4403_s15 }
 0x4eb   : > { %4178 = vrot.lane.b32.xlu1 %v4182_v38, %s4403_s15 }
 0x4ec   : > { %4173 = vrot.lane.b32.xlu0 %v4172_v45, %s8106_s4 }
 0x4ef   : > { %4188 = vrot.lane.b32.xlu1 %v4187_v53, %s8106_s4 }
 0x4f0   : > { %4183 = vrot.lane.b32.xlu0 %v4182_v38, %s4403_s15 }
 0x4f3   : > { %4198 = vrot.lane.b32.xlu1 %v4197_v18, %s4403_s15 }
 0x4f4   : > { %4193 = vrot.lane.b32.xlu0 %v4192_v39, %s8106_s4  ;;  %s8435_s4 = sld [smem:[#allocation69_spill]] }
 0x4f8   : > { %4203 = vrot.lane.b32.xlu0 %v4202_v50, %s4403_s15  ;;  %s8433_s15 = sld [smem:[#allocation53_spill]] }
 0x54d   : > { %v4139_v10 = vpop.permute.xlu1 %4138 }
 0x54e   : > { %v4141_v35 = vunpack.i.h.bf16 %v4139_v10  ;;  %v4140_v22 = vunpack.i.l.bf16 %v4139_v10 }
 0x550   : > { %v4057_v42 = vpack.c.bf16 %v4141_v35, %v4140_v22 }
 0x552   : > { %v4144_v11 = vpop.permute.xlu0 %4143  ;;  %4058 = vmatprep.subr.bf16.mxu0 %v4057_v42 }
 0x553   : > { %v4146_v60 = vunpack.i.h.bf16 %v4144_v11  ;;  %v4145_v3 = vunpack.i.l.bf16 %v4144_v11  ;;  %4060 = vmatpush3.bf16.msra.mxu0 %v4057_v42 }
 0x555   : > { %v4061_v46 = vpack.c.bf16 %v4146_v60, %v4145_v3  ;;  %v5393_v60 = vpop.permute.xlu1 %4148 }
 0x556   : > { %v5391_v11 = vpop.permute.xlu0 %4153 }
 0x557   : > { %4062 = vmatprep.subr.bf16.mxu0 %v4061_v46 }
 0x558   : > { %4064 = vmatpush3.bf16.msra.mxu0 %v4061_v46 }
 0x559   : > { %4066 = vmatprep.subr.bf16.mxu0 %v4065_v17  ;;  %v5397_v46 = vpop.permute.xlu1 %4158 }
 0x55a   : > { %v5395_v3 = vpop.permute.xlu0 %4163 }
 0x55b   : > { %4010 = vmatmul.mubr.msk.f32.vlgmr.msra.gmra.mrb[4].mxu0 %vm965_vm10, %v8383_v14 }
 0x55c   : > { %4068 = vmatpush3.bf16.msra.mxu0 %v4065_v17  ;;  %4012 = vmatprep.mubr.msk.f32.mxu0 %vm965_vm10, %v8382_v15 }
 0x55d   : > { %4070 = vmatprep.subr.bf16.mxu0 %v4069_v34  ;;  %v4169_v37 = vpop.permute.xlu1 %4168 }
 0x55f   : > { %4013 = vmatmul.mubr.msk.f32.gmra.mrb[6].mxu0 %vm965_vm10, %v8381_v16 }
 0x560   : > { %4072 = vmatpush3.bf16.msra.mxu0 %v4069_v34  ;;  %4023 = vmatprep.mubr.msk.f32.mxu0 %vm965_vm10, %v8388_v7 }
 0x563   : > { %4024 = vmatmul.mubr.msk.f32.vlgmr.msra.gmra.mrb[4].mxu0 %vm965_vm10, %v8387_v8 }
 0x564   : > { %4026 = vmatprep.mubr.msk.f32.mxu0 %vm965_vm10, %v8386_v9 }
 0x567   : > { %4027 = vmatmul.mubr.msk.f32.gmra.mrb[6].mxu0 %vm965_vm10, %v8385_v12  ;;  %v5454_v12 = vstv %s4703_s27 }
 0x636   : > { %v5317_v40 = vpop.f32.mrb[4].mxu0 }
 0x637   : > { %8412 = vst [vmem:[#allocation134_spill] sm:$0xff] %v5317_v40  ;;  %1594 = vrot.lane.b32.xlu0 %v5317_v40, %s8108_s29  ;;  %v5321_v63 = vpop.f32.mrb[5].mxu0  ;;  %v1514_v17 = vrot.slane %v5317_v40, 7  ;;  %v1656_v33 = vrot.slane %v5317_v40, 1 }
 0x638   : > { %8413 = vst [vmem:[#allocation135_spill] sm:$0xff] %v5321_v63  ;;  %1591 = vrot.lane.b32.xlu1 %v5321_v63, %s8108_s29  ;;  %v1513_v34 = vrot.slane %v5321_v63, 7  ;;  %v1655_v0 = vrot.slane %v5321_v63, 1 }
 0x63a   : > { %v5331_v61 = vpop.f32.mrb[6].mxu0  ;;  %v5335_v41 = vsel %vm1517_vm12, %v1513_v34, %v1514_v17  ;;  %v5339_v23 = vsel %vm1659_vm13, %v1655_v0, %v1656_v33 }
 0x63b   : > { %8416 = vst [vmem:[#allocation136_spill] sm:$0xff] %v5331_v61  ;;  %1526 = vrot.lane.b32.xlu0 %v5335_v41, %s8108_s29  ;;  %v5343_v43 = vpop.f32.mrb[7].mxu0  ;;  %v1658_v45 = vrot.slane %v5331_v61, 1  ;;  %v1516_v38 = vrot.slane %v5331_v61, 7 }
 0x63c   : > { %8417 = vst [vmem:[#allocation137_spill] sm:$0xff] %v5343_v43  ;;  %1664 = vrot.lane.b32.xlu1 %v5339_v23, %s8108_s29  ;;  %v1515_v39 = vrot.slane %v5343_v43, 7  ;;  %v1657_v53 = vrot.slane %v5343_v43, 1 }
 0x63d   : > { %v5353_v50 = vsel %vm1659_vm13, %v1658_v45, %v1655_v0  ;;  %v5357_v18 = vsel %vm1517_vm12, %v1516_v38, %v1513_v34  ;;  %v4179_v34 = vpop.permute.xlu1 %4178 }
 0x63e   : > { %v5361_v10 = vsel %vm1517_vm12, %v1515_v39, %v1516_v38  ;;  %v5365_v35 = vsel %vm1517_vm12, %v1514_v17, %v1515_v39  ;;  %v5371_v22 = vsel %vm1659_vm13, %v1656_v33, %v1657_v53  ;;  %v5375_v42 = vsel %vm1659_vm13, %v1657_v53, %v1658_v45  ;;  %v5399_v17 = vpop.permute.xlu0 %4173 }
 0x63f   : > { %1600 = vrot.lane.b32.xlu0 %v5331_v61, %s8108_s29  ;;  %v5491_v27 = vunpack.i.l.bf16 %v5399_v17 }
 0x640   : > { %1597 = vrot.lane.b32.xlu1 %v5343_v43, %s8108_s29 }
 0x641   : > { %v5405_v45 = vpop.permute.xlu1 %4188  ;;  %8424 = vst [vmem:[#allocation142_spill] sm:$0xff] %v5491_v27 }
 0x642   : > { %v5401_v33 = vpop.permute.xlu0 %4183 }
 0x643   : > { %1673 = vrot.lane.b32.xlu0 %v5353_v50, %s8108_s29  ;;  %v5516_v49 = vunpack.i.h.bf16 %v5401_v33 }
 0x644   : > { %1523 = vrot.lane.b32.xlu1 %v5357_v18, %s8108_s29 }
 0x645   : > { %v5409_v39 = vpop.permute.xlu1 %4198  ;;  %8427 = vst [vmem:[#allocation145_spill] sm:$0xff] %v5516_v49 }
 0x646   : > { %v5403_v0 = vpop.permute.xlu0 %4193 }
 0x647   : > { %1532 = vrot.lane.b32.xlu0 %v5361_v10, %s8108_s29 }
 0x648   : > { %1529 = vrot.lane.b32.xlu1 %v5365_v35, %s8108_s29 }
 0x64a   : > { %v5407_v38 = vpop.permute.xlu0 %4203 }
 0x64b   : > { %1667 = vrot.lane.b32.xlu0 %v5371_v22, %s8108_s29 }
 0x64c   : > { %1670 = vrot.lane.b32.xlu1 %v5375_v42, %s8108_s29 }
 0x6a9   : > { %v1595_v53 = vpop.permute.xlu0 %1594 }
 0x6aa   : > { %v1592_v1 = vpop.permute.xlu1 %1591  ;;  %v1596_v2 = vsel %vm1522_vm14, %v1595_v53, %v5317_v40 }
 0x6ab   : > { %1605 = vrot.lane.b32.xlu0 %v1596_v2, %s8108_s29  ;;  %v1593_v4 = vsel %vm1522_vm14, %v1592_v1, %v5321_v63 }
 0x6ac   : > { %1603 = vrot.lane.b32.xlu1 %v1593_v4, %s8108_s29 }
 0x6ad   : > { %v1527_v5 = vpop.permute.xlu0 %1526 }
 0x6ae   : > { %v1665_v6 = vpop.permute.xlu1 %1664  ;;  %v1528_v7 = vsel %vm1522_vm14, %v1527_v5, %v5335_v41 }
 0x6af   : > { %1537 = vrot.lane.b32.xlu0 %v1528_v7, %s8108_s29  ;;  %v1666_v8 = vsel %vm1522_vm14, %v1665_v6, %v5339_v23 }
 0x6b0   : > { %1676 = vrot.lane.b32.xlu1 %v1666_v8, %s8108_s29 }
 0x6b1   : > { %v1601_v53 = vpop.permute.xlu0 %1600 }
 0x6b2   : > { %v1598_v9 = vpop.permute.xlu1 %1597  ;;  %v1602_v2 = vsel %vm1522_vm14, %v1601_v53, %v5331_v61 }
 0x6b3   : > { %1609 = vrot.lane.b32.xlu0 %v1602_v2, %s8108_s29  ;;  %v1599_v1 = vsel %vm1522_vm14, %v1598_v9, %v5343_v43 }
 0x6b4   : > { %1607 = vrot.lane.b32.xlu1 %v1599_v1, %s8108_s29 }
 0x6b5   : > { %v1674_v4 = vpop.permute.xlu0 %1673 }
 0x6b6   : > { %v1524_v5 = vpop.permute.xlu1 %1523  ;;  %v1675_v7 = vsel %vm1522_vm14, %v1674_v4, %v5353_v50 }
 0x6b7   : > { %1682 = vrot.lane.b32.xlu0 %v1675_v7, %s8108_s29  ;;  %v1525_v6 = vsel %vm1522_vm14, %v1524_v5, %v5357_v18 }
 0x6b8   : > { %1535 = vrot.lane.b32.xlu1 %v1525_v6, %s8108_s29  ;;  %v5447_v6 = vunpack.i.h.bf16 %v4169_v37 }
 0x6b9   : > { %v1533_v8 = vpop.permute.xlu0 %1532 }
 0x6ba   : > { %v1530_v53 = vpop.permute.xlu1 %1529  ;;  %v1534_v9 = vsel %vm1522_vm14, %v1533_v8, %v5361_v10  ;;  %8418 = vst [vmem:[#allocation138_spill] sm:$0xff] %v5447_v6 }
 0x6bb   : > { %1541 = vrot.lane.b32.xlu0 %v1534_v9, %s8108_s29  ;;  %v1531_v2 = vsel %vm1522_vm14, %v1530_v53, %v5365_v35  ;;  %v5449_v9 = vunpack.i.l.bf16 %v4169_v37 }
 0x6bc   : > { %1539 = vrot.lane.b32.xlu1 %v1531_v2, %s8108_s29 }
 0x6bd   : > { %v1668_v1 = vpop.permute.xlu0 %1667  ;;  %8419 = vst [vmem:[#allocation139_spill] sm:$0xff] %v5449_v9 }
 0x6be   : > { %v1671_v4 = vpop.permute.xlu1 %1670  ;;  %v1669_v5 = vsel %vm1522_vm14, %v1668_v1, %v5371_v22  ;;  %v5456_v1 = vunpack.i.h.bf16 %v4179_v34 }
 0x6bf   : > { %1678 = vrot.lane.b32.xlu0 %v1669_v5, %s8108_s29  ;;  %v1672_v7 = vsel %vm1522_vm14, %v1671_v4, %v5375_v42 }
 0x6c0   : > { %1680 = vrot.lane.b32.xlu1 %v1672_v7, %s8108_s29  ;;  %8420 = vst [vmem:[#allocation140_spill] sm:$0xff] %v5456_v1  ;;  %v5463_v7 = vunpack.i.l.bf16 %v4179_v34  ;;  %s8437_s29 = sld [smem:[#allocation72_spill]] }
 0x6c2   : > { %8422 = vst [vmem:[#allocation141_spill] sm:$0xff] %v5463_v7 }
 0x71d   : > { %v1606_v8 = vpop.permute.xlu0 %1605 }
 0x71e   : > { %v1612_v53 = vsel %vm1522_vm14, %v1606_v8, %v5317_v40  ;;  %v1604_v2 = vpop.permute.xlu1 %1603 }
 0x71f   : > { %v5459_v5 = vmul.f32 %v5447_v6, %v1612_v53  ;;  %v1611_v4 = vsel %vm1522_vm14, %v1604_v2, %v5321_v63  ;;  %v5469_v13 = vmul.f32 %v5456_v1, %v1612_v53 }
 0x720   : > { %v5466_v37 = vmul.f32 %v5449_v9, %v1611_v4  ;;  %v5474_v14 = vmul.f32 %v5463_v7, %v1611_v4 }
 0x721   : > { %v1803_v8 = vmul.f32 %v5454_v12, %v5459_v5  ;;  %v1538_v15 = vpop.permute.xlu0 %1537  ;;  %v1837_v34 = vmul.f32 %v5479_v19, %v5469_v13  ;;  %v1993_v30 = vmul.f32 %v5488_v24, %v5459_v5 }
 0x722   : > { %v1677_v16 = vpop.permute.xlu1 %1676  ;;  %v1802_v2 = vmul.f32 %v5454_v12, %v5466_v37  ;;  %v1836_v4 = vmul.f32 %v5479_v19, %v5474_v14  ;;  %v2216_v1 = vmul.f32 %v5544_v58, %v5474_v14 }
 0x723   : > { %1812 = vrot.lane.b32.xlu0 %v1803_v8, %s8146_s1  ;;  %v5497_v8 = vunpack.i.l.bf16 %v5401_v33  ;;  %v1684_v26 = vsel %vm1522_vm14, %v1677_v16, %v5339_v23  ;;  %v5603_v16 = vunpack.i.h.bf16 %v5397_v46 }
 0x724   : > { %1810 = vrot.lane.b32.xlu1 %v1802_v2, %s8146_s1 }
 0x725   : > { %8425 = vst [vmem:[#allocation143_spill] sm:$0xff] %v5497_v8  ;;  %v1610_v2 = vpop.permute.xlu0 %1609  ;;  %8434 = vst [vmem:[#allocation148_spill] sm:$0xff] %v5603_v16 }
 0x726   : > { %v1608_v53 = vpop.permute.xlu1 %1607 }
 0x727   : > { %v1613_v28 = vsel %vm1522_vm14, %v1608_v53, %v5343_v43  ;;  %1846 = vrot.lane.b32.xlu0 %v1837_v34, %s8114_s10  ;;  %v1992_v53 = vmul.f32 %v5488_v24, %v5466_v37  ;;  %v1614_v34 = vsel %vm1522_vm14, %v1610_v2, %v5331_v61 }
 0x728   : > { %1844 = vrot.lane.b32.xlu1 %v1836_v4, %s8114_s10  ;;  %v1633_v29 = vmul.f32 %v5491_v27, %v1613_v28  ;;  %v1653_v32 = vmul.f32 %v5497_v8, %v1613_v28  ;;  %v5513_v4 = vunpack.i.h.bf16 %v5399_v17  ;;  %v2027_v28 = vmul.f32 %v5507_v48, %v5469_v13 }
 0x729   : > { %v2026_v17 = vmul.f32 %v5507_v48, %v5474_v14  ;;  %v2405_v27 = vstv %s4980_s23 }
 0x72a   : > { %8426 = vst [vmem:[#allocation144_spill] sm:$0xff] %v5513_v4  ;;  %v5525_v55 = vmul.f32 %v5454_v12, %v1633_v29  ;;  %v5528_v2 = vmul.f32 %v5513_v4, %v1614_v34  ;;  %v5536_v33 = vmul.f32 %v5479_v19, %v1653_v32  ;;  %v5548_v62 = vmul.f32 %v5507_v48, %v1653_v32 }
 0x72b   : > { %2002 = vrot.lane.b32.xlu0 %v1993_v30, %s8146_s1  ;;  %v5531_v30 = vmul.f32 %v5516_v49, %v1614_v34  ;;  %v2183_v34 = vmul.f32 %v5522_v51, %v5459_v5  ;;  %v5554_v9 = vmul.f32 %v5522_v51, %v1633_v29  ;;  %v2182_v4 = vmul.f32 %v5522_v51, %v5466_v37 }
 0x72c   : > { %2000 = vrot.lane.b32.xlu1 %v1992_v53, %s8146_s1  ;;  %v5540_v53 = vmul.f32 %v5488_v24, %v1633_v29  ;;  %v5564_v6 = vmul.f32 %v2371_v59, %v1633_v29  ;;  %v5570_v7 = vmul.f32 %v2405_v27, %v1653_v32  ;;  %v2217_v49 = vmul.f32 %v5544_v58, %v5469_v13 }
 0x72d   : > { %v5567_v8 = vmul.f32 %v2405_v27, %v5531_v30  ;;  %v2373_v29 = vmul.f32 %v2371_v59, %v5459_v5  ;;  %v2406_v5 = vmul.f32 %v2405_v27, %v5474_v14  ;;  %v1995_v20 = vmul.f32 %v5488_v24, %v5528_v2 }
 0x72e   : > { %v2029_v54 = vmul.f32 %v5507_v48, %v5531_v30 }
 0x72f   : > { %2036 = vrot.lane.b32.xlu0 %v2027_v28, %s8114_s10  ;;  %v5557_v28 = vmul.f32 %v5544_v58, %v1653_v32  ;;  %v1544_v32 = vsel %vm1522_vm14, %v1538_v15, %v5335_v41  ;;  %v2407_v15 = vmul.f32 %v2405_v27, %v5469_v13 }
 0x730   : > { %2034 = vrot.lane.b32.xlu1 %v2026_v17, %s8114_s10  ;;  %v5562_v17 = vmul.f32 %v2371_v59, %v5528_v2  ;;  %v5614_v13 = vmul.f32 %v5603_v16, %v1544_v32 }
 0x733   : > { %2192 = vrot.lane.b32.xlu0 %v2183_v34, %s8146_s1  ;;  %v2372_v34 = vmul.f32 %v2371_v59, %v5466_v37  ;;  %v5600_v37 = vstv %s8428_s0  ;;  %s8440_s0 = smov 127  }
 0x734   : > { %2190 = vrot.lane.b32.xlu1 %v2182_v4, %s8146_s1  ;;  %v5584_v4 = vunpack.i.h.bf16 %v5393_v60 }
 0x736   : > { %8430 = vst [vmem:[#allocation146_spill] sm:$0xff] %v5584_v4 }
 0x737   : > { %2226 = vrot.lane.b32.xlu0 %v2217_v49, %s8114_s10  ;;  %v5590_v49 = vunpack.i.l.bf16 %v5405_v45 }
 0x738   : > { %2224 = vrot.lane.b32.xlu1 %v2216_v1, %s8114_s10  ;;  %v5594_v1 = vmul.f32 %v5584_v4, %v1544_v32  ;;  %v5621_v4 = vstv %s8432_s14  ;;  %s8442_s14 = sld [smem:[#allocation84_spill]] }
 0x739   : > { %8431 = vst [vmem:[#allocation147_spill] sm:$0xff] %v5590_v49  ;;  %v1704_v59 = vmul.f32 %v5590_v49, %v1684_v26  ;;  %v1778_v32 = vmul.f32 %v5621_v4, %v5614_v13 }
 0x73a   : > { %v1744_v14 = vmul.f32 %v5600_v37, %v5594_v1 }
 0x73b   : > { %2382 = vrot.lane.b32.xlu0 %v2373_v29, %s8146_s1  ;;  %v5607_v29 = vstv %s8429_s3  ;;  %s8438_s3 = sld [smem:[#allocation58_spill]] }
 0x73c   : > { %2380 = vrot.lane.b32.xlu1 %v2372_v34, %s8146_s1  ;;  %v5610_v34 = vunpack.i.l.bf16 %v5409_v39  ;;  %v1861_v49 = vmul.f32 %v5607_v29, %v1704_v59 }
 0x73e   : > { %8436 = vst [vmem:[#allocation149_spill] sm:$0xff] %v5610_v34  ;;  %v1728_v27 = vmul.f32 %v5610_v34, %v1684_v26  ;;  %v5633_v26 = vstv %s8435_s4  ;;  %s8444_s4 = sld [smem:[#allocation95_spill]] }
 0x73f   : > { %2416 = vrot.lane.b32.xlu0 %v2407_v15, %s8114_s10  ;;  %v5625_v15 = vstv %s8433_s15  ;;  %v2051_v34 = vmul.f32 %v5633_v26, %v1704_v59  ;;  %s8443_s15 = sld [smem:[#allocation89_spill]] }
 0x740   : > { %2414 = vrot.lane.b32.xlu1 %v2406_v5, %s8114_s10  ;;  %s8439_s10 = sld [smem:[#allocation82_spill]]  ;;  %v1895_v5 = vmul.f32 %v5625_v15, %v1728_v27 }
 0x741   : > { %v5648_v36 = vstv %s8438_s3  ;;  %s8448_s3 = sld [smem:[#allocation87_spill]] }
 0x743   : > { %1753 = vrot.lane.b32.xlu0 %v1744_v14, %s8146_s1  ;;  %v1805_v14 = vmul.f32 %v5454_v12, %v5528_v2  ;;  %v1934_v12 = vmul.f32 %v5648_v36, %v5594_v1 }
 0x744   : > { %1869 = vrot.lane.b32.xlu1 %v1861_v49, %s8146_s1  ;;  %v5641_v49 = vstv %s8437_s29  ;;  %s8445_s29 = sld [smem:[#allocation78_spill]] }
 0x745   : > { %v2085_v16 = vmul.f32 %v5641_v49, %v1728_v27  ;;  %v5671_v47 = vstv %s8443_s15  ;;  %s8500_s15 = sld [smem:[#allocation96_spill]] }
 0x747   : > { %1787 = vrot.lane.b32.xlu0 %v1778_v32, %s8440_s0  ;;  %v1839_v32 = vmul.f32 %v5479_v19, %v5531_v30  ;;  %v5663_v19 = vstv %s8442_s14  ;;  %s8493_s14 = sld [smem:[#allocation37_spill]] }
 0x748   : > { %1903 = vrot.lane.b32.xlu1 %v1895_v5, %s8440_s0  ;;  %v5652_v5 = vstv %s8439_s10  ;;  %s8446_s10 = sld [smem:[#allocation80_spill]] }
 0x74a   : > { %v5686_v21 = vstv %s8445_s29  ;;  %s8504_s29 = sld [smem:[#allocation61_spill]] }
 0x74b   : > { %1816 = vrot.lane.b32.xlu0 %v1805_v14, %s8146_s1  ;;  %v5659_v14 = vstv %s8441_s2  ;;  %s8447_s2 = sld [smem:[#allocation85_spill]]  ;;  %v2124_v24 = vmul.f32 %v5686_v21, %v5594_v1 }
 0x74c   : > { %2059 = vrot.lane.b32.xlu1 %v2051_v34, %s8146_s1  ;;  %v2241_v34 = vmul.f32 %v5652_v5, %v1704_v59 }
 0x74f   : > { %1850 = vrot.lane.b32.xlu0 %v1839_v32, %s8440_s0  ;;  %v1968_v32 = vmul.f32 %v5659_v14, %v5614_v13 }
 0x750   : > { %2093 = vrot.lane.b32.xlu1 %v2085_v16, %s8440_s0  ;;  %v2275_v16 = vmul.f32 %v5663_v19, %v1728_v27 }
 0x753   : > { %1943 = vrot.lane.b32.xlu0 %v1934_v12, %s8146_s1  ;;  %v2431_v12 = vmul.f32 %v5671_v47, %v1704_v59  ;;  %v2219_v59 = vmul.f32 %v5544_v58, %v5531_v30  ;;  %v1683_v58 = vpop.permute.xlu0 %1682  ;;  %v5732_v30 = vunpack.i.h.bf16 %v5403_v0 }
 0x754   : > { %2249 = vrot.lane.b32.xlu1 %v2241_v34, %s8146_s1  ;;  %v5679_v34 = vstv %s8444_s4  ;;  %s8502_s4 = sld [smem:[#allocation50_spill]] }
 0x755   : > { %8449 = vst [vmem:[#allocation150_spill] sm:$0xff] %v5732_v30 }
 0x757   : > { %1977 = vrot.lane.b32.xlu0 %v1968_v32, %s8440_s0  ;;  %v2465_v32 = vmul.f32 %v5679_v34, %v1728_v27  ;;  %v5719_v27 = vstv %s8448_s3  ;;  %s8510_s3 = sld [smem:[#allocation66_spill]] }
 0x758   : > { %2283 = vrot.lane.b32.xlu1 %v2275_v16, %s8440_s0  ;;  %v5751_v16 = vunpack.i.l.bf16 %v5397_v46 }
 0x75a   : > { %8452 = vst [vmem:[#allocation153_spill] sm:$0xff] %v5751_v16 }
 0x75b   : > { %2006 = vrot.lane.b32.xlu0 %v1995_v20, %s8146_s1  ;;  %v5693_v20 = vstv %s8446_s10  ;;  %s8508_s10 = sld [smem:[#allocation52_spill]] }
 0x75c   : > { %2439 = vrot.lane.b32.xlu1 %v2431_v12, %s8146_s1  ;;  %v2158_v48 = vmul.f32 %v5693_v20, %v5614_v13 }
 0x75f   : > { %2040 = vrot.lane.b32.xlu0 %v2029_v54, %s8440_s0  ;;  %v2185_v54 = vmul.f32 %v5522_v51, %v5528_v2  ;;  %v2348_v51 = vmul.f32 %v5719_v27, %v5614_v13  ;;  %v1536_v2 = vpop.permute.xlu1 %1535  ;;  %v5746_v13 = vunpack.i.h.bf16 %v5407_v38 }
 0x760   : > { %2473 = vrot.lane.b32.xlu1 %v2465_v32, %s8440_s0 }
 0x761   : > { %8451 = vst [vmem:[#allocation152_spill] sm:$0xff] %v5746_v13 }
 0x763   : > { %2133 = vrot.lane.b32.xlu0 %v2124_v24, %s8146_s1  ;;  %v1542_v24 = vpop.permute.xlu0 %1541 }
 0x764   : > { %1814 = vrot.lane.b32.xlu1 %v5525_v55, %s8146_s1  ;;  %v5711_v55 = vstv %s8447_s2  ;;  %s8509_s2 = sld [smem:[#allocation79_spill]] }
 0x767   : > { %2167 = vrot.lane.b32.xlu0 %v2158_v48, %s8440_s0  ;;  %v1540_v48 = vpop.permute.xlu1 %1539 }
 0x768   : > { %1848 = vrot.lane.b32.xlu1 %v5536_v33, %s8440_s0  ;;  %v2314_v33 = vmul.f32 %v5711_v55, %v5594_v1 }
 0x76b   : > { %2196 = vrot.lane.b32.xlu0 %v2185_v54, %s8146_s1 }
 0x76c   : > { %2004 = vrot.lane.b32.xlu1 %v5540_v53, %s8146_s1  ;;  %v1543_v53 = vsel %vm1522_vm14, %v1536_v2, %v5357_v18 }
 0x76f   : > { %2230 = vrot.lane.b32.xlu0 %v2219_v59, %s8440_s0 }
 0x770   : > { %2038 = vrot.lane.b32.xlu1 %v5548_v62, %s8440_s0  ;;  %v1687_v62 = vsel %vm1522_vm14, %v1683_v58, %v5353_v50  ;;  %v1681_v58 = vpop.permute.xlu1 %1680 }
 0x773   : > { %2323 = vrot.lane.b32.xlu0 %v2314_v33, %s8146_s1  ;;  %v1679_v33 = vpop.permute.xlu0 %1678 }
 0x774   : > { %2194 = vrot.lane.b32.xlu1 %v5554_v9, %s8146_s1  ;;  %v5739_v9 = vunpack.i.l.bf16 %v5393_v60  ;;  %v1731_v60 = vmul.f32 %v5746_v13, %v1687_v62 }
 0x776   : > { %8450 = vst [vmem:[#allocation151_spill] sm:$0xff] %v5739_v9  ;;  %v1563_v1 = vmul.f32 %v5739_v9, %v1543_v53  ;;  %v2088_v54 = vmul.f32 %v5641_v49, %v1731_v60  ;;  %v1685_v9 = vsel %vm1522_vm14, %v1679_v33, %v5371_v22 }
 0x777   : > { %2357 = vrot.lane.b32.xlu0 %v2348_v51, %s8440_s0 }
 0x778   : > { %2228 = vrot.lane.b32.xlu1 %v5557_v28, %s8440_s0  ;;  %v1707_v28 = vmul.f32 %v5732_v30, %v1687_v62  ;;  %v1743_v12 = vmul.f32 %v5600_v37, %v1563_v1  ;;  %v1933_v32 = vmul.f32 %v5648_v36, %v1563_v1  ;;  %v2123_v2 = vmul.f32 %v5686_v21, %v1563_v1 }
 0x779   : > { %v5846_v30 = vunpack.i.l.bf16 %v5403_v0  ;;  %v5864_v0 = vunpack.i.h.bf16 %v5409_v39 }
 0x77a   : > { %v2244_v51 = vmul.f32 %v5652_v5, %v1707_v28 }
 0x77b   : > { %2386 = vrot.lane.b32.xlu0 %v5562_v17, %s8146_s1  ;;  %v1587_v17 = vmul.f32 %v5751_v16, %v1543_v53  ;;  %v2278_v53 = vmul.f32 %v5663_v19, %v1731_v60  ;;  %8460 = vst [vmem:[#allocation161_spill] sm:$0xff] %v5846_v30  ;;  %8461 = vst [vmem:[#allocation162_spill] sm:$0xff] %v5864_v0 }
 0x77c   : > { %2384 = vrot.lane.b32.xlu1 %v5564_v6, %s8146_s1  ;;  %v1864_v6 = vmul.f32 %v5607_v29, %v1707_v28 }
 0x77d   : > { %v1777_v46 = vmul.f32 %v5621_v4, %v1587_v17  ;;  %v1967_v59 = vmul.f32 %v5659_v14, %v1587_v17 }
 0x77f   : > { %2420 = vrot.lane.b32.xlu0 %v5567_v8, %s8440_s0  ;;  %v1898_v8 = vmul.f32 %v5625_v15, %v1731_v60 }
 0x780   : > { %2418 = vrot.lane.b32.xlu1 %v5570_v7, %s8440_s0  ;;  %v2054_v7 = vmul.f32 %v5633_v26, %v1707_v28 }
 0x783   : > { %1875 = vrot.lane.b32.xlu0 %v1864_v6, %s8146_s1 }
 0x784   : > { %1751 = vrot.lane.b32.xlu1 %v1743_v12, %s8146_s1  ;;  %v2157_v12 = vmul.f32 %v5693_v20, %v1587_v17 }
 0x787   : > { %1909 = vrot.lane.b32.xlu0 %v1898_v8, %s8440_s0 }
 0x788   : > { %1785 = vrot.lane.b32.xlu1 %v1777_v46, %s8440_s0  ;;  %v2434_v46 = vmul.f32 %v5671_v47, %v1707_v28 }
 0x78b   : > { %2065 = vrot.lane.b32.xlu0 %v2054_v7, %s8146_s1  ;;  %v1546_v7 = vsel %vm1522_vm14, %v1542_v24, %v5361_v10 }
 0x78c   : > { %1941 = vrot.lane.b32.xlu1 %v1933_v32, %s8146_s1 }
 0x78f   : > { %2099 = vrot.lane.b32.xlu0 %v2088_v54, %s8440_s0  ;;  %v2313_v54 = vmul.f32 %v5711_v55, %v1563_v1  ;;  %v2468_v1 = vmul.f32 %v5679_v34, %v1731_v60 }
 0x790   : > { %1975 = vrot.lane.b32.xlu1 %v1967_v59, %s8440_s0  ;;  %v5794_v59 = vunpack.i.h.bf16 %v5391_v11 }
 0x792   : > { %8455 = vst [vmem:[#allocation156_spill] sm:$0xff] %v5794_v59  ;;  %v5804_v28 = vmul.f32 %v5794_v59, %v1546_v7 }
 0x793   : > { %2255 = vrot.lane.b32.xlu0 %v2244_v51, %s8146_s1  ;;  %v1545_v51 = vsel %vm1522_vm14, %v1540_v48, %v5365_v35  ;;  %v2347_v48 = vmul.f32 %v5719_v27, %v1587_v17 }
 0x794   : > { %2131 = vrot.lane.b32.xlu1 %v2123_v2, %s8146_s1  ;;  %v5800_v2 = vunpack.i.l.bf16 %v5391_v11  ;;  %v5820_v11 = vunpack.i.l.bf16 %v5395_v3 }
 0x795   : > { %v5777_v62 = vpop.permute.xlu0 %1812 }
 0x796   : > { %v5780_v6 = vpop.permute.xlu1 %1810  ;;  %8456 = vst [vmem:[#allocation157_spill] sm:$0xff] %v5800_v2  ;;  %8458 = vst [vmem:[#allocation159_spill] sm:$0xff] %v5820_v11  ;;  %v5831_v17 = vmul.f32 %v5820_v11, %v1545_v51 }
 0x797   : > { %8453 = vst [vmem:[#allocation154_spill] sm:$0xff] %v5780_v6  ;;  %2289 = vrot.lane.b32.xlu0 %v2278_v53, %s8440_s0  ;;  %v5810_v53 = vmul.f32 %v5800_v2, %v1545_v51  ;;  %v1746_v2 = vmul.f32 %v5600_v37, %v5804_v28  ;;  %v6127_v6 = vstv %s8509_s2  ;;  %s8549_s2 = smov 15  }
 0x798   : > { %2165 = vrot.lane.b32.xlu1 %v2157_v12, %s8440_s0 }
 0x799   : > { %v5785_v8 = vpop.permute.xlu0 %1846 }
 0x79a   : > { %v5790_v32 = vpop.permute.xlu1 %1844 }
 0x79b   : > { %8454 = vst [vmem:[#allocation155_spill] sm:$0xff] %v5790_v32  ;;  %2445 = vrot.lane.b32.xlu0 %v2434_v46, %s8146_s1  ;;  %v5816_v46 = vunpack.i.h.bf16 %v5395_v3  ;;  %v1745_v3 = vmul.f32 %v5600_v37, %v5810_v53 }
 0x79c   : > { %2321 = vrot.lane.b32.xlu1 %v2313_v54, %s8146_s1 }
 0x79d   : > { %v5806_v24 = vpop.permute.xlu0 %2002  ;;  %8457 = vst [vmem:[#allocation158_spill] sm:$0xff] %v5816_v46  ;;  %v5824_v54 = vmul.f32 %v5816_v46, %v1546_v7  ;;  %v1686_v7 = vsel %vm1522_vm14, %v1681_v58, %v5375_v42  ;;  %v1779_v58 = vmul.f32 %v5621_v4, %v5831_v17 }
 0x79e   : > { %v5812_v12 = vpop.permute.xlu1 %2000 }
 0x79f   : > { %2479 = vrot.lane.b32.xlu0 %v2468_v1, %s8440_s0  ;;  %v1780_v37 = vmul.f32 %v5621_v4, %v5824_v54 }
 0x7a0   : > { %2355 = vrot.lane.b32.xlu1 %v2347_v48, %s8440_s0  ;;  %v5840_v48 = vunpack.i.h.bf16 %v5405_v45  ;;  %v5857_v45 = vmul.f32 %v5846_v30, %v1686_v7 }
 0x7a1   : > { %v5826_v60 = vpop.permute.xlu0 %2036 }
 0x7a2   : > { %v5835_v1 = vpop.permute.xlu1 %2034  ;;  %8459 = vst [vmem:[#allocation160_spill] sm:$0xff] %v5840_v48  ;;  %v5850_v33 = vmul.f32 %v5840_v48, %v1685_v9 }
 0x7a3   : > { %1757 = vrot.lane.b32.xlu0 %v1746_v2, %s8146_s1  ;;  %v5868_v2 = vunpack.i.l.bf16 %v5407_v38 }
 0x7a4   : > { %1755 = vrot.lane.b32.xlu1 %v1745_v3, %s8146_s1  ;;  %v5872_v3 = vmul.f32 %v5864_v0, %v1685_v9  ;;  %v1862_v48 = vmul.f32 %v5607_v29, %v5850_v33 }
 0x7a5   : > { %v5852_v51 = vpop.permute.xlu0 %2192  ;;  %8462 = vst [vmem:[#allocation163_spill] sm:$0xff] %v5868_v2  ;;  %v5879_v4 = vmul.f32 %v5868_v2, %v1686_v7 }
 0x7a6   : > { %v5859_v59 = vpop.permute.xlu1 %2190  ;;  %v1896_v9 = vmul.f32 %v5625_v15, %v5872_v3 }
 0x7a7   : > { %1791 = vrot.lane.b32.xlu0 %v1780_v37, %s8440_s0  ;;  %v1863_v37 = vmul.f32 %v5607_v29, %v5857_v45  ;;  %v1897_v7 = vmul.f32 %v5625_v15, %v5879_v4  ;;  %v1936_v29 = vmul.f32 %v5648_v36, %v5804_v28  ;;  %v1970_v15 = vmul.f32 %v5659_v14, %v5824_v54 }
 0x7a8   : > { %1789 = vrot.lane.b32.xlu1 %v1779_v58, %s8440_s0 }
 0x7a9   : > { %v5874_v30 = vpop.permute.xlu0 %2226 }
 0x7aa   : > { %8463 = vst [vmem:[#allocation164_spill] sm:$0xff] %v5874_v30  ;;  %v5881_v39 = vpop.permute.xlu1 %2224 }
 0x7ab   : > { %8464 = vst [vmem:[#allocation165_spill] sm:$0xff] %v5881_v39  ;;  %1871 = vrot.lane.b32.xlu0 %v1862_v48, %s8146_s1 }
 0x7ac   : > { %1873 = vrot.lane.b32.xlu1 %v1863_v37, %s8146_s1  ;;  %v1935_v37 = vmul.f32 %v5648_v36, %v5810_v53  ;;  %v2052_v36 = vmul.f32 %v5633_v26, %v5850_v33 }
 0x7ad   : > { %v5887_v38 = vpop.permute.xlu0 %2382 }
 0x7ae   : > { %8465 = vst [vmem:[#allocation166_spill] sm:$0xff] %v5887_v38  ;;  %v5891_v58 = vpop.permute.xlu1 %2380  ;;  %v6088_v38 = vstv %s8500_s15  ;;  %s8515_s15 = sld [smem:[#allocation86_spill]] }
 0x7af   : > { %1905 = vrot.lane.b32.xlu0 %v1896_v9, %s8440_s0 }
 0x7b0   : > { %1907 = vrot.lane.b32.xlu1 %v1897_v7, %s8440_s0  ;;  %v1969_v7 = vmul.f32 %v5659_v14, %v5831_v17  ;;  %v2086_v14 = vmul.f32 %v5641_v49, %v5872_v3 }
 0x7b1   : > { %v5897_v2 = vpop.permute.xlu0 %2416 }
 0x7b2   : > { %8466 = vst [vmem:[#allocation167_spill] sm:$0xff] %v5897_v2  ;;  %v5901_v48 = vpop.permute.xlu1 %2414 }
 0x7b3   : > { %8467 = vst [vmem:[#allocation168_spill] sm:$0xff] %v5901_v48  ;;  %1947 = vrot.lane.b32.xlu0 %v1936_v29, %s8146_s1 }
 0x7b4   : > { %1945 = vrot.lane.b32.xlu1 %v1935_v37, %s8146_s1  ;;  %v2053_v37 = vmul.f32 %v5633_v26, %v5857_v45  ;;  %v2126_v26 = vmul.f32 %v5686_v21, %v5804_v28 }
 0x7b5   : > { %v5907_v11 = vpop.permute.xlu0 %1753 }
 0x7b6   : > { %v5911_v9 = vpop.permute.xlu1 %1869 }
 0x7b7   : > { %8468 = vst [vmem:[#allocation169_spill] sm:$0xff] %v5911_v9  ;;  %1981 = vrot.lane.b32.xlu0 %v1970_v15, %s8440_s0 }
 0x7b8   : > { %1979 = vrot.lane.b32.xlu1 %v1969_v7, %s8440_s0  ;;  %v2087_v7 = vmul.f32 %v5641_v49, %v5879_v4  ;;  %v2160_v49 = vmul.f32 %v5693_v20, %v5824_v54 }
 0x7b9   : > { %v5917_v16 = vpop.permute.xlu0 %1787 }
 0x7ba   : > { %v5921_v29 = vpop.permute.xlu1 %1903 }
 0x7bb   : > { %8469 = vst [vmem:[#allocation170_spill] sm:$0xff] %v5921_v29  ;;  %2061 = vrot.lane.b32.xlu0 %v2052_v36, %s8146_s1 }
 0x7bc   : > { %2063 = vrot.lane.b32.xlu1 %v2053_v37, %s8146_s1  ;;  %v2125_v37 = vmul.f32 %v5686_v21, %v5810_v53  ;;  %v2242_v21 = vmul.f32 %v5652_v5, %v5850_v33 }
 0x7bd   : > { %v5927_v13 = vpop.permute.xlu0 %1816 }
 0x7be   : > { %8470 = vst [vmem:[#allocation171_spill] sm:$0xff] %v5927_v13  ;;  %v5931_v15 = vpop.permute.xlu1 %2059 }
 0x7bf   : > { %8471 = vst [vmem:[#allocation172_spill] sm:$0xff] %v5931_v15  ;;  %2095 = vrot.lane.b32.xlu0 %v2086_v14, %s8440_s0 }
 0x7c0   : > { %2097 = vrot.lane.b32.xlu1 %v2087_v7, %s8440_s0  ;;  %v2159_v7 = vmul.f32 %v5693_v20, %v5831_v17  ;;  %v2276_v20 = vmul.f32 %v5663_v19, %v5872_v3 }
 0x7c1   : > { %v5937_v0 = vpop.permute.xlu0 %1850 }
 0x7c2   : > { %8472 = vst [vmem:[#allocation173_spill] sm:$0xff] %v5937_v0  ;;  %v5941_v36 = vpop.permute.xlu1 %2093  ;;  %v8506_v0 = vld [vmem:[#allocation111_spill] sm:$0xff] }
 0x7c3   : > { %8473 = vst [vmem:[#allocation174_spill] sm:$0xff] %v5941_v36  ;;  %2137 = vrot.lane.b32.xlu0 %v2126_v26, %s8146_s1 }
 0x7c4   : > { %2135 = vrot.lane.b32.xlu1 %v2125_v37, %s8146_s1  ;;  %v2243_v37 = vmul.f32 %v5652_v5, %v5857_v45  ;;  %v2316_v5 = vmul.f32 %v5711_v55, %v5804_v28 }
 0x7c5   : > { %v5947_v46 = vpop.permute.xlu0 %1943 }
 0x7c6   : > { %v5951_v14 = vpop.permute.xlu1 %2249 }
 0x7c7   : > { %8474 = vst [vmem:[#allocation175_spill] sm:$0xff] %v5951_v14  ;;  %2171 = vrot.lane.b32.xlu0 %v2160_v49, %s8440_s0 }
 0x7c8   : > { %2169 = vrot.lane.b32.xlu1 %v2159_v7, %s8440_s0  ;;  %v2277_v7 = vmul.f32 %v5663_v19, %v5879_v4  ;;  %v2350_v19 = vmul.f32 %v5719_v27, %v5824_v54 }
 0x7c9   : > { %v5957_v29 = vpop.permute.xlu0 %1977 }
 0x7ca   : > { %v5961_v26 = vpop.permute.xlu1 %2283 }
 0x7cb   : > { %8475 = vst [vmem:[#allocation176_spill] sm:$0xff] %v5961_v26  ;;  %2251 = vrot.lane.b32.xlu0 %v2242_v21, %s8146_s1 }
 0x7cc   : > { %2253 = vrot.lane.b32.xlu1 %v2243_v37, %s8146_s1  ;;  %v2315_v37 = vmul.f32 %v5711_v55, %v5810_v53  ;;  %v2432_v55 = vmul.f32 %v5671_v47, %v5850_v33  ;;  %v2467_v33 = vmul.f32 %v5679_v34, %v5879_v4 }
 0x7cd   : > { %v5967_v2 = vpop.permute.xlu0 %2006 }
 0x7ce   : > { %8476 = vst [vmem:[#allocation177_spill] sm:$0xff] %v5967_v2  ;;  %v5971_v49 = vpop.permute.xlu1 %2439  ;;  %v6071_v2 = vstv %s8493_s14  ;;  %s8512_s14 = sld [smem:[#allocation88_spill]] }
 0x7cf   : > { %8477 = vst [vmem:[#allocation178_spill] sm:$0xff] %v5971_v49  ;;  %2285 = vrot.lane.b32.xlu0 %v2276_v20, %s8440_s0 }
 0x7d0   : > { %2287 = vrot.lane.b32.xlu1 %v2277_v7, %s8440_s0  ;;  %v2349_v7 = vmul.f32 %v5719_v27, %v5831_v17  ;;  %v2466_v27 = vmul.f32 %v5679_v34, %v5872_v3 }
 0x7d1   : > { %v5977_v9 = vpop.permute.xlu0 %2040 }
 0x7d2   : > { %8478 = vst [vmem:[#allocation179_spill] sm:$0xff] %v5977_v9  ;;  %v5981_v21 = vpop.permute.xlu1 %2473 }
 0x7d3   : > { %8479 = vst [vmem:[#allocation180_spill] sm:$0xff] %v5981_v21  ;;  %2327 = vrot.lane.b32.xlu0 %v2316_v5, %s8146_s1  ;;  %v2433_v5 = vmul.f32 %v5671_v47, %v5857_v45 }
 0x7d4   : > { %2325 = vrot.lane.b32.xlu1 %v2315_v37, %s8146_s1 }
 0x7d5   : > { %v5987_v26 = vpop.permute.xlu0 %2133 }
 0x7d6   : > { %v5991_v20 = vpop.permute.xlu1 %1814 }
 0x7d7   : > { %8480 = vst [vmem:[#allocation181_spill] sm:$0xff] %v5991_v20  ;;  %2361 = vrot.lane.b32.xlu0 %v2350_v19, %s8440_s0 }
 0x7d8   : > { %2359 = vrot.lane.b32.xlu1 %v2349_v7, %s8440_s0 }
 0x7d9   : > { %v5997_v28 = vpop.permute.xlu0 %2167 }
 0x7da   : > { %v6001_v53 = vpop.permute.xlu1 %1848 }
 0x7db   : > { %8481 = vst [vmem:[#allocation182_spill] sm:$0xff] %v6001_v53  ;;  %2441 = vrot.lane.b32.xlu0 %v2432_v55, %s8146_s1 }
 0x7dc   : > { %2443 = vrot.lane.b32.xlu1 %v2433_v5, %s8146_s1  ;;  %s8522_s1 = sld [smem:[#allocation83_spill]] }
 0x7dd   : > { %v6007_v54 = vpop.permute.xlu0 %2196 }
 0x7de   : > { %8482 = vst [vmem:[#allocation183_spill] sm:$0xff] %v6007_v54  ;;  %v6011_v17 = vpop.permute.xlu1 %2004 }
 0x7df   : > { %8483 = vst [vmem:[#allocation184_spill] sm:$0xff] %v6011_v17  ;;  %2475 = vrot.lane.b32.xlu0 %v2466_v27, %s8440_s0 }
 0x7e0   : > { %2477 = vrot.lane.b32.xlu1 %v2467_v33, %s8440_s0  ;;  %s866_s0 = sld [smem:[#allocation7 + %s4385_s20]]  ;;  %s860_s20 = sadd.s32 1, %s4385_s20  }
 0x7e1   : > { %v6017_v47 = vpop.permute.xlu0 %2230  ;;  %p857_p1 = scmp.ge.s32.totalorder %s860_s20, 5  }
 0x7e2   : > { %8484 = vst [vmem:[#allocation185_spill] sm:$0xff] %v6017_v47  ;;  %v6019_v45 = vpop.permute.xlu1 %2038 }
 0x7e3   : > { %8485 = vst [vmem:[#allocation186_spill] sm:$0xff] %v6019_v45 }
 0x7e5   : > { %v6021_v37 = vpop.permute.xlu0 %2323 }
 0x7e6   : > { %v6023_v19 = vpop.permute.xlu1 %2194  ;;  %v6046_v21 = vstv %s866_s0  ;;  %s8511_s0 = sld [smem:[#allocation81_spill]] }
 0x7e7   : > { %8486 = vst [vmem:[#allocation187_spill] sm:$0xff] %v6023_v19  ;;  %v1924_v49 = vmul.f32 %v6046_v21, %v8506_v0  ;;  %v6103_v0 = vstv %s8504_s29  ;;  %s8520_s29 = sld [smem:[#allocation71_spill]]  ;;  %v2113_v13 = vmul.f32 %v6046_v21, %v8527_v56 }
 0x7e9   : > { %v6025_v7 = vpop.permute.xlu0 %2357 }
 0x7ea   : > { %8487 = vst [vmem:[#allocation188_spill] sm:$0xff] %v6025_v7  ;;  %v6027_v3 = vpop.permute.xlu1 %2228 }
 0x7eb   : > { %8488 = vst [vmem:[#allocation189_spill] sm:$0xff] %v6027_v3 }
 0x7ed   : > { %v6029_v55 = vpop.permute.xlu0 %2386  ;;  %v6151_v15 = vstv %s8520_s29  ;;  %s8725_s29 = sld [smem:[#allocation108_spill]] }
 0x7ee   : > { %8489 = vst [vmem:[#allocation190_spill] sm:$0xff] %v6029_v55  ;;  %v6031_v34 = vpop.permute.xlu1 %2384 }
 0x7ef   : > { %8490 = vst [vmem:[#allocation191_spill] sm:$0xff] %v6031_v34  ;;  %v8498_v34 = vld [vmem:[#allocation91_spill] sm:$0xff] }
 0x7f1   : > { %v6033_v4 = vpop.permute.xlu0 %2420 }
 0x7f2   : > { %8491 = vst [vmem:[#allocation192_spill] sm:$0xff] %v6033_v4  ;;  %v6035_v5 = vpop.permute.xlu1 %2418  ;;  %v1734_v4 = vmul.f32 %v6046_v21, %v8498_v34 }
 0x7f3   : > { %8492 = vst [vmem:[#allocation193_spill] sm:$0xff] %v6035_v5  ;;  %v6055_v5 = vstv %s5028_s28 }
 0x7f5   : > { %v6038_v27 = vpop.permute.xlu0 %1875 }
 0x7f6   : > { %8494 = vst [vmem:[#allocation194_spill] sm:$0xff] %v6038_v27  ;;  %v6040_v33 = vpop.permute.xlu1 %1751 }
 0x7f9   : > { %v6042_v47 = vpop.permute.xlu0 %1909 }
 0x7fa   : > { %8495 = vst [vmem:[#allocation195_spill] sm:$0xff] %v6042_v47  ;;  %v6044_v9 = vpop.permute.xlu1 %1785  ;;  %v1739_v47 = vadd.f32 %v6055_v5, %v1734_v4 }
 0x7fb   : > { %8496 = vst [vmem:[#allocation196_spill] sm:$0xff] %v6044_v9 }
 0x7fc   : > { %v1764_v34 = vadd.f32 %v5907_v11, %v1739_v47 }
 0x7fd   : > { %v6048_v3 = vpop.permute.xlu0 %2065 }
 0x7fe   : > { %8497 = vst [vmem:[#allocation197_spill] sm:$0xff] %v6048_v3  ;;  %v6050_v55 = vpop.permute.xlu1 %1941  ;;  %v6066_v3 = vmul.f32 %v8378_v52, %v5335_v41 }
 0x801   : > { %v6057_v54 = vpop.permute.xlu0 %2099 }
 0x802   : > { %8499 = vst [vmem:[#allocation198_spill] sm:$0xff] %v6057_v54  ;;  %v6059_v53 = vpop.permute.xlu1 %1975  ;;  %v1769_v54 = vmul.f32 %v6071_v2, %v6066_v3 }
 0x805   : > { %v6062_v45 = vpop.permute.xlu0 %2255 }
 0x806   : > { %8501 = vst [vmem:[#allocation199_spill] sm:$0xff] %v6062_v45  ;;  %v6068_v27 = vpop.permute.xlu1 %2131  ;;  %v1773_v45 = vadd.f32 %v1769_v54, %v1764_v34  ;;  %v1929_v54 = vadd.f32 %v6088_v38, %v1924_v49  ;;  %v1959_v49 = vmul.f32 %v6103_v0, %v6066_v3 }
 0x808   : > { %v1798_v41 = vadd.f32 %v5917_v16, %v1773_v45  ;;  %v1954_v45 = vadd.f32 %v5947_v46, %v1929_v54  ;;  %v8518_v46 = vld [vmem:[#allocation110_spill] sm:$0xff] }
 0x809   : > { %v6074_v32 = vpop.permute.xlu0 %2289 }
 0x80a   : > { %8503 = vst [vmem:[#allocation200_spill] sm:$0xff] %v6074_v32  ;;  %v6078_v4 = vpop.permute.xlu1 %2165  ;;  %v1826_v32 = vstv %s8502_s4  ;;  %v1823_v20 = vadd.f32 %v5777_v62, %v1798_v41  ;;  %v6110_v62 = vmul.f32 %v8514_v31, %v5371_v22  ;;  %v1963_v48 = vadd.f32 %v1959_v49, %v1954_v45  ;;  %s8517_s4 = sld [smem:[#allocation97_spill]] }
 0x80b   : > { %v1828_v16 = vmul.f32 %v5317_v40, %v1826_v32  ;;  %v6130_v45 = vstv %s8510_s3  ;;  %s8640_s3 = sld [smem:[#allocation100_spill]] }
 0x80c   : > { %v1988_v49 = vadd.f32 %v5957_v29, %v1963_v48  ;;  %v2018_v48 = vmul.f32 %v5317_v40, %v6130_v45  ;;  %v6158_v29 = vstv %s8522_s1  ;;  %v6170_v56 = vmul.f32 %v6130_v45, %v5321_v63  ;;  %s8536_s1 = sld [smem:[#allocation98_spill]] }
 0x80d   : > { %v6080_v19 = vpop.permute.xlu0 %2445  ;;  %8529 = vst [vmem:[#allocation210_spill] sm:$0xff] %v6158_v29  ;;  %v2303_v29 = vmul.f32 %v6046_v21, %v8537_v57 }
 0x80e   : > { %8505 = vst [vmem:[#allocation201_spill] sm:$0xff] %v6080_v19  ;;  %v6082_v36 = vpop.permute.xlu1 %2321 }
 0x811   : > { %v6090_v11 = vpop.permute.xlu0 %2479 }
 0x812   : > { %8507 = vst [vmem:[#allocation202_spill] sm:$0xff] %v6090_v11  ;;  %v6092_v47 = vpop.permute.xlu1 %2355  ;;  %v1832_v11 = vadd.f32 %v1828_v16, %v1823_v20  ;;  %v1923_v20 = vmul.f32 %v6046_v21, %v8518_v46  ;;  %v6120_v16 = vstv %s8508_s10  ;;  %v6142_v46 = vstv %s8515_s15  ;;  %s8541_s10 = smov 16   ;;  %s4406_s15 = smov 14  }
 0x813   : > { %8519 = vst [vmem:[#allocation205_spill] sm:$0xff] %v6120_v16  ;;  %v1887_v31 = vmul.f32 %v6120_v16, %v6110_v62 }
 0x814   : > { %v1857_v14 = vadd.f32 %v5785_v8, %v1832_v11  ;;  %v6133_v8 = vstv %s8511_s0  ;;  %v6136_v11 = vstv %s8512_s14  ;;  %s8699_s0 = sld [smem:[#allocation104_spill]]  ;;  %s8704_s14 = sld [smem:[#allocation113_spill]] }
 0x815   : > { %v6097_v34 = vpop.permute.xlu0 %1757  ;;  %8524 = vst [vmem:[#allocation207_spill] sm:$0xff] %v6133_v8  ;;  %8525 = vst [vmem:[#allocation208_spill] sm:$0xff] %v6136_v11 }
 0x816   : > { %v6099_v19 = vpop.permute.xlu1 %1755 }
 0x819   : > { %v6106_v17 = vpop.permute.xlu0 %1791 }
 0x81a   : > { %8513 = vst [vmem:[#allocation203_spill] sm:$0xff] %v6106_v17  ;;  %v6114_v41 = vpop.permute.xlu1 %1789 }
 0x81b   : > { %8516 = vst [vmem:[#allocation204_spill] sm:$0xff] %v6114_v41  ;;  %v1928_v41 = vadd.f32 %v6088_v38, %v1923_v20  ;;  %v6166_v20 = vmul.f32 %v1826_v32, %v5321_v63 }
 0x81d   : > { %v1872_v54 = vpop.permute.xlu0 %1871  ;;  %8532 = vst [vmem:[#allocation212_spill] sm:$0xff] %v6166_v20 }
 0x81e   : > { %v1882_v7 = vadd.f32 %v1872_v54, %v1857_v14  ;;  %v6122_v22 = vpop.permute.xlu1 %1873  ;;  %v2114_v14 = vmul.f32 %v6046_v21, %v8526_v25  ;;  %v6161_v25 = vstv %s8523_s11  ;;  %s8534_s11 = sld [smem:[#allocation103_spill]] }
 0x81f   : > { %8521 = vst [vmem:[#allocation206_spill] sm:$0xff] %v6122_v22  ;;  %v6145_v22 = vstv %s8517_s4  ;;  %8530 = vst [vmem:[#allocation211_spill] sm:$0xff] %v6161_v25  ;;  %v6180_v25 = vmul.f32 %v6136_v11, %v5321_v63  ;;  %s8722_s4 = sld [smem:[#allocation101_spill]] }
 0x820   : > { %v1891_v54 = vadd.f32 %v1887_v31, %v1882_v7  ;;  %v8531_v31 = vld [vmem:[#allocation59_spill] sm:$0xff]  ;;  %v2118_v20 = vadd.f32 %v6145_v22, %v2113_v13 }
 0x821   : > { %v1906_v39 = vpop.permute.xlu0 %1905  ;;  %v1567_v7 = vmul.f32 %v8531_v31, %v5357_v18  ;;  %8533 = vst [vmem:[#allocation213_spill] sm:$0xff] %v6180_v25  ;;  %v1953_v31 = vadd.f32 %v6050_v55, %v1928_v41  ;;  %v6202_v55 = vmul.f32 %v1826_v32, %v5343_v43  ;;  %v6210_v41 = vmul.f32 %v5317_v40, %v6136_v11 }
 0x822   : > { %v1916_v30 = vadd.f32 %v1906_v39, %v1891_v54  ;;  %v6153_v9 = vpop.permute.xlu1 %1907  ;;  %v6174_v39 = vmul.f32 %v6133_v8, %v5321_v63  ;;  %v2013_v54 = vadd.f32 %v5806_v24, %v1988_v49  ;;  %v6192_v24 = vmul.f32 %v5317_v40, %v6133_v8 }
 0x823   : > { %8528 = vst [vmem:[#allocation209_spill] sm:$0xff] %v6153_v9  ;;  %v2119_v9 = vadd.f32 %v6145_v22, %v2114_v14  ;;  %v6196_v49 = vmul.f32 %v8378_v52, %v5339_v23  ;;  %8540 = vst [vmem:[#allocation217_spill] sm:$0xff] %v6202_v55  ;;  %v6214_v14 = vmul.f32 %v8378_v52, %v5361_v10  ;;  %v8543_v23 = vld [vmem:[#allocation60_spill] sm:$0xff] }
 0x824   : > { %v6182_v18 = vmax.f32 %v1916_v30, 0.0  ;;  %v6199_v30 = vmul.f32 %v5331_v61, %v1826_v32  ;;  %8542 = vst [vmem:[#allocation218_spill] sm:$0xff] %v6210_v41  ;;  %v6218_v57 = vmul.f32 %v8543_v23, %v5365_v35  ;;  %v1958_v32 = vmul.f32 %v6103_v0, %v1567_v7 }
 0x825   : > { %v6188_v17 = vpop.permute.xlu0 %1947  ;;  %v6222_v63 = vstv %s8534_s11  ;;  %v2144_v55 = vadd.f32 %v5987_v26, %v2119_v9  ;;  %v2022_v11 = vadd.f32 %v2018_v48, %v2013_v54  ;;  %v2143_v10 = vadd.f32 %v6068_v27, %v2118_v20  ;;  %s8727_s11 = sld [smem:[#allocation118_spill]] }
 0x826   : > { %8535 = vst [vmem:[#allocation214_spill] sm:$0xff] %v6182_v18  ;;  %8538 = vst [vmem:[#allocation215_spill] sm:$0xff] %v6188_v17  ;;  %v6204_v13 = vpop.permute.xlu1 %1945  ;;  %2600 = vrot.lane.b32.xlu0 %v6182_v18, %s8541_s10  ;;  %v2636_v40 = vmul.f32 %v6222_v63, %v6182_v18  ;;  %v1962_v41 = vadd.f32 %v1958_v32, %v1953_v31  ;;  %v8545_v17 = vld [vmem:[#allocation93_spill] sm:$0xff]  ;;  %v6238_v8 = vmul.f32 %v8546_v44, %v5353_v50 }
 0x827   : > { %8539 = vst [vmem:[#allocation216_spill] sm:$0xff] %v6199_v30  ;;  %8544 = vst [vmem:[#allocation219_spill] sm:$0xff] %v6222_v63  ;;  %v6226_v30 = vstv %s8536_s1  ;;  %v1736_v35 = vmul.f32 %v6046_v21, %v8545_v17  ;;  %v6242_v9 = vmul.f32 %v8378_v52, %v5375_v42  ;;  %v2149_v26 = vmul.f32 %v6127_v6, %v6066_v3  ;;  %v8550_v17 = vld [vmem:[#allocation90_spill] sm:$0xff]  ;;  %s8732_s1 = sld [smem:[#allocation123_spill]] }
 0x828   : > { %v2308_v25 = vadd.f32 %v6226_v30, %v2303_v29  ;;  %8547 = vst [vmem:[#allocation220_spill] sm:$0xff] %v6238_v8  ;;  %v6248_v27 = vmul.f32 %v6142_v46, %v6066_v3  ;;  %v1733_v29 = vmul.f32 %v6046_v21, %v8550_v17  ;;  %v1768_v50 = vmul.f32 %v6071_v2, %v1567_v7 }
 0x829   : > { %v6234_v23 = vpop.permute.xlu0 %1981  ;;  %8548 = vst [vmem:[#allocation221_spill] sm:$0xff] %v6242_v9  ;;  %v2148_v31 = vmul.f32 %v6127_v6, %v1567_v7  ;;  %v2338_v42 = vmul.f32 %v6142_v46, %v1567_v7  ;;  %v2153_v20 = vadd.f32 %v2149_v26, %v2144_v55  ;;  %v1771_v54 = vmul.f32 %v6071_v2, %v6214_v14  ;;  %v8552_v55 = vld [vmem:[#allocation114_spill] sm:$0xff] }
 0x82a   : > { %v6250_v48 = vpop.permute.xlu1 %1979  ;;  %2645 = vrot.lane.b32.xlu0 %v2636_v40, %s8549_s2  ;;  %v6262_v3 = vmul.f32 %v6071_v2, %v6218_v57  ;;  %v2047_v32 = vadd.f32 %v5826_v60, %v2022_v11  ;;  %v1987_v40 = vadd.f32 %v6059_v53, %v1962_v41  ;;  %v2333_v17 = vadd.f32 %v6082_v36, %v2308_v25  ;;  %v8553_v53 = vld [vmem:[#allocation131_spill] sm:$0xff]  ;;  %v8554_v36 = vld [vmem:[#allocation92_spill] sm:$0xff] }
 0x82b   : > { %v2152_v44 = vadd.f32 %v2148_v31, %v2143_v10  ;;  %v1741_v52 = vadd.f32 %v6055_v5, %v1736_v35  ;;  %v6270_v7 = vmul.f32 %v6120_v16, %v6196_v49  ;;  %v1925_v26 = vmul.f32 %v6046_v21, %v8552_v55 }
 0x82c   : > { %v2077_v60 = vmul.f32 %v6151_v15, %v6110_v62  ;;  %v2304_v11 = vmul.f32 %v6046_v21, %v8553_v53  ;;  %v1738_v25 = vadd.f32 %v6055_v5, %v1733_v29  ;;  %v1735_v41 = vmul.f32 %v6046_v21, %v8554_v36 }
 0x82d   : > { %v2062_v63 = vpop.permute.xlu0 %2061  ;;  %8551 = vst [vmem:[#allocation222_spill] sm:$0xff] %v6270_v7  ;;  %v6285_v10 = vmul.f32 %v6120_v16, %v6238_v8  ;;  %v2178_v35 = vadd.f32 %v5997_v28, %v2153_v20  ;;  %v6294_v31 = vmul.f32 %v6103_v0, %v6214_v14  ;;  %v2012_v29 = vadd.f32 %v5812_v12, %v1987_v40  ;;  %v8555_v7 = vld [vmem:[#allocation129_spill] sm:$0xff] }
 0x82e   : > { %v2072_v18 = vadd.f32 %v2062_v63, %v2047_v32  ;;  %v6274_v2 = vpop.permute.xlu1 %2063  ;;  %v6290_v63 = vmul.f32 %v5331_v61, %v6130_v45  ;;  %v2177_v55 = vadd.f32 %v6078_v4, %v2152_v44  ;;  %v2342_v53 = vadd.f32 %v2338_v42, %v2333_v17  ;;  %v8556_v42 = vld [vmem:[#allocation112_spill] sm:$0xff] }
 0x82f   : > { %v1766_v36 = vadd.f32 %v6097_v34, %v1741_v52  ;;  %v1930_v28 = vadd.f32 %v6088_v38, %v1925_v26  ;;  %v1960_v20 = vmul.f32 %v6103_v0, %v6218_v57  ;;  %v2309_v12 = vadd.f32 %v6226_v30, %v2304_v11 }
 0x830   : > { %v2081_v32 = vadd.f32 %v2077_v60, %v2072_v18  ;;  %v2115_v18 = vmul.f32 %v6046_v21, %v8555_v7  ;;  %v1763_v44 = vadd.f32 %v6040_v33, %v1738_v25  ;;  %v1740_v4 = vadd.f32 %v6055_v5, %v1735_v41  ;;  %v8557_v41 = vld [vmem:[#allocation128_spill] sm:$0xff] }
 0x831   : > { %v2096_v8 = vpop.permute.xlu0 %2095  ;;  %v6311_v52 = vmul.f32 %v6130_v45, %v5343_v43  ;;  %v2203_v34 = vadd.f32 %v5852_v51, %v2178_v35  ;;  %v1926_v0 = vmul.f32 %v6046_v21, %v8556_v42  ;;  %v6319_v40 = vstv %s5084_s25 }
 0x832   : > { %v2106_v16 = vadd.f32 %v2096_v8, %v2081_v32  ;;  %v6302_v9 = vpop.permute.xlu1 %2097  ;;  %v2021_v17 = vadd.f32 %v6170_v56, %v2012_v29  ;;  %v2202_v7 = vadd.f32 %v5859_v59, %v2177_v55  ;;  %v2367_v33 = vadd.f32 %v6092_v47, %v2342_v53  ;;  %v8558_v55 = vld [vmem:[#allocation203_spill] sm:$0xff] }
 0x833   : > { %v1775_v5 = vadd.f32 %v1771_v54, %v1766_v36  ;;  %v1955_v45 = vadd.f32 %v6204_v13, %v1930_v28  ;;  %v2076_v51 = vmul.f32 %v6151_v15, %v6196_v49  ;;  %v2120_v60 = vadd.f32 %v6145_v22, %v2115_v18  ;;  %v8559_v28 = vld [vmem:[#allocation207_spill] sm:$0xff] }
 0x834   : > { %v6316_v8 = vmax.f32 %v2106_v16, 0.0  ;;  %v1772_v16 = vadd.f32 %v1768_v50, %v1763_v44  ;;  %v1765_v59 = vadd.f32 %v6099_v19, %v1740_v4  ;;  %v2151_v47 = vmul.f32 %v6127_v6, %v6214_v14  ;;  %v8561_v44 = vld [vmem:[#allocation196_spill] sm:$0xff] }
 0x835   : > { %v2138_v26 = vpop.permute.xlu0 %2137  ;;  %v2150_v13 = vmul.f32 %v6127_v6, %v6218_v57  ;;  %v2334_v54 = vadd.f32 %v6021_v37, %v2309_v12  ;;  %v1931_v25 = vadd.f32 %v6088_v38, %v1926_v0  ;;  %v2116_v35 = vmul.f32 %v6046_v21, %v8557_v41  ;;  %v8560_v12 = vld [vmem:[#allocation210_spill] sm:$0xff] }
 0x836   : > { %v2136_v11 = vpop.permute.xlu1 %2135  ;;  %2897 = vrot.lane.b32.xlu1 %v6316_v8, %s8541_s10  ;;  %v2933_v56 = vmul.f32 %v6319_v40, %v6316_v8  ;;  %v2212_v32 = vadd.f32 %v6192_v24, %v2203_v34  ;;  %v2046_v50 = vadd.f32 %v5835_v1, %v2021_v17  ;;  %v2211_v19 = vadd.f32 %v6174_v39, %v2202_v7  ;;  %v8562_v34 = vld [vmem:[#allocation215_spill] sm:$0xff]  ;;  %v8563_v17 = vld [vmem:[#allocation164_spill] sm:$0xff] }
 0x837   : > { %v2392_v29 = vadd.f32 %v5891_v58, %v2367_v33  ;;  %v1800_v53 = vadd.f32 %v8558_v55, %v1775_v5  ;;  %v1964_v37 = vadd.f32 %v1960_v20, %v1955_v45  ;;  %v2145_v36 = vadd.f32 %v2136_v11, %v2120_v60  ;;  %v8564_v33 = vld [vmem:[#allocation172_spill] sm:$0xff]  ;;  %v8565_v45 = vld [vmem:[#allocation165_spill] sm:$0xff] }
 0x838   : > { %2942 = vrot.lane.b32.xlu0 %v2933_v56, %s8549_s2  ;;  %v6351_v18 = vmul.f32 %v8559_v28, %v5343_v43  ;;  %v2266_v24 = vmul.f32 %v8560_v12, %v6196_v49  ;;  %v1797_v1 = vadd.f32 %v8561_v44, %v1772_v16  ;;  %v1774_v39 = vadd.f32 %v6262_v3, %v1765_v59  ;;  %v8566_v11 = vld [vmem:[#allocation213_spill] sm:$0xff]  ;;  %v8567_v56 = vld [vmem:[#allocation171_spill] sm:$0xff]  ;;  %v8571_v44 = vld [vmem:[#allocation132_spill] sm:$0xff] }
 0x839   : > { %v6347_v6 = vpop.permute.xlu0 %2171  ;;  %v2267_v58 = vmul.f32 %v8560_v12, %v6110_v62  ;;  %v2341_v4 = vmul.f32 %v6142_v46, %v6214_v14  ;;  %v2343_v20 = vadd.f32 %v6248_v27, %v2334_v54  ;;  %v1956_v42 = vadd.f32 %v8562_v34, %v1931_v25  ;;  %v8568_v54 = vld [vmem:[#allocation133_spill] sm:$0xff]  ;;  %v8569_v25 = vld [vmem:[#allocation154_spill] sm:$0xff] }
 0x83a   : > { %v2170_v38 = vpop.permute.xlu1 %2169  ;;  %v2121_v0 = vadd.f32 %v6145_v22, %v2116_v35  ;;  %v2237_v7 = vadd.f32 %v8563_v17, %v2212_v32  ;;  %v2071_v5 = vadd.f32 %v8564_v33, %v2046_v50  ;;  %v2236_v60 = vadd.f32 %v8565_v45, %v2211_v19  ;;  %v8570_v32 = vld [vmem:[#allocation204_spill] sm:$0xff] }
 0x83b   : > { %v2401_v3 = vadd.f32 %v8566_v11, %v2392_v29  ;;  %v1825_v16 = vadd.f32 %v8567_v56, %v1800_v53  ;;  %v1989_v41 = vadd.f32 %v6250_v48, %v1964_v37  ;;  %v2154_v14 = vadd.f32 %v2150_v13, %v2145_v36  ;;  %v8572_v53 = vld [vmem:[#allocation188_spill] sm:$0xff]  ;;  %v8573_v36 = vld [vmem:[#allocation175_spill] sm:$0xff] }
 0x83c   : > { %v2306_v22 = vmul.f32 %v6046_v21, %v8568_v54  ;;  %v1822_v35 = vadd.f32 %v8569_v25, %v1797_v1  ;;  %v1799_v50 = vadd.f32 %v8570_v32, %v1774_v39  ;;  %v2305_v19 = vmul.f32 %v6046_v21, %v8571_v44  ;;  %v8575_v1 = vld [vmem:[#allocation216_spill] sm:$0xff] }
 0x83d   : > { %v2252_v59 = vpop.permute.xlu0 %2251  ;;  %v2340_v29 = vmul.f32 %v6142_v46, %v6218_v57  ;;  %v2368_v34 = vadd.f32 %v8572_v53, %v2343_v20  ;;  %v1965_v48 = vadd.f32 %v6294_v31, %v1956_v42  ;;  %v2146_v13 = vadd.f32 %v2138_v26, %v2121_v0  ;;  %v8576_v56 = vld [vmem:[#allocation184_spill] sm:$0xff]  ;;  %v8578_v26 = vld [vmem:[#allocation181_spill] sm:$0xff] }
 0x83e   : > { %v2262_v55 = vadd.f32 %v2252_v59, %v2237_v7  ;;  %v6370_v27 = vpop.permute.xlu1 %2253  ;;  %v2261_v17 = vadd.f32 %v8573_v36, %v2236_v60  ;;  %v8574_v7 = vld [vmem:[#allocation168_spill] sm:$0xff]  ;;  %v1834_v45 = vadd.f32 %v8575_v1, %v1825_v16  ;;  %v2080_v39 = vadd.f32 %v2076_v51, %v2071_v5  ;;  %v8579_v60 = vld [vmem:[#allocation166_spill] sm:$0xff] }
 0x83f   : > { %v2426_v33 = vadd.f32 %v8574_v7, %v2401_v3  ;;  %v2014_v21 = vadd.f32 %v8576_v56, %v1989_v41  ;;  %v2179_v59 = vadd.f32 %v2170_v38, %v2154_v14  ;;  %v2311_v46 = vadd.f32 %v6226_v30, %v2306_v22  ;;  %v8577_v31 = vld [vmem:[#allocation212_spill] sm:$0xff]  ;;  %v8580_v38 = vld [vmem:[#allocation178_spill] sm:$0xff]  ;;  %v8581_v14 = vld [vmem:[#allocation173_spill] sm:$0xff] }
 0x840   : > { %v2271_v37 = vadd.f32 %v2267_v58, %v2262_v55  ;;  %v1831_v20 = vadd.f32 %v8577_v31, %v1822_v35  ;;  %v1824_v58 = vadd.f32 %v8578_v26, %v1799_v50  ;;  %v2310_v42 = vadd.f32 %v6226_v30, %v2305_v19  ;;  %v8582_v22 = vld [vmem:[#allocation174_spill] sm:$0xff]  ;;  %v8583_v30 = vld [vmem:[#allocation187_spill] sm:$0xff] }
 0x841   : > { %v2286_v11 = vpop.permute.xlu0 %2285  ;;  %v6393_v0 = vstv %s5114_s26  ;;  %v2393_v3 = vadd.f32 %v8579_v60, %v2368_v34  ;;  %v1990_v51 = vadd.f32 %v6234_v23, %v1965_v48  ;;  %v2155_v5 = vadd.f32 %v2151_v47, %v2146_v13  ;;  %v8584_v47 = vld [vmem:[#allocation155_spill] sm:$0xff]  ;;  %v8585_v48 = vld [vmem:[#allocation217_spill] sm:$0xff]  ;;  %v8588_v1 = vld [vmem:[#allocation218_spill] sm:$0xff] }
 0x842   : > { %v2296_v54 = vadd.f32 %v2286_v11, %v2271_v37  ;;  %v6386_v57 = vpop.permute.xlu1 %2287  ;;  %v2451_v41 = vadd.f32 %v8580_v38, %v2426_v33  ;;  %v1859_v55 = vadd.f32 %v8581_v14, %v1834_v45  ;;  %v2105_v25 = vadd.f32 %v8582_v22, %v2080_v39  ;;  %v8589_v39 = vld [vmem:[#allocation194_spill] sm:$0xff]  ;;  %v8595_v38 = vld [vmem:[#allocation183_spill] sm:$0xff] }
 0x843   : > { %v2270_v35 = vadd.f32 %v2266_v24, %v2261_v17  ;;  %v2023_v50 = vadd.f32 %v6311_v52, %v2014_v21  ;;  %v2204_v44 = vadd.f32 %v8583_v30, %v2179_v59  ;;  %v1856_v34 = vadd.f32 %v8584_v47, %v1831_v20  ;;  %v8586_v24 = vld [vmem:[#allocation211_spill] sm:$0xff]  ;;  %v8587_v17 = vld [vmem:[#allocation177_spill] sm:$0xff]  ;;  %v8591_v20 = vld [vmem:[#allocation176_spill] sm:$0xff] }
 0x844   : > { %v6397_v16 = vmax.f32 %v2296_v54, 0.0  ;;  %v1833_v13 = vadd.f32 %v8585_v48, %v1824_v58  ;;  %v2456_v36 = vmul.f32 %v8586_v24, %v6196_v49  ;;  %v2015_v52 = vadd.f32 %v8587_v17, %v1990_v51  ;;  %v8593_v60 = vld [vmem:[#allocation182_spill] sm:$0xff]  ;;  %v8598_v30 = vld [vmem:[#allocation180_spill] sm:$0xff] }
 0x845   : > { %v2328_v32 = vpop.permute.xlu0 %2327  ;;  %v2180_v7 = vadd.f32 %v6347_v6, %v2155_v5  ;;  %v2402_v45 = vadd.f32 %v8588_v1, %v2393_v3  ;;  %v1884_v11 = vadd.f32 %v8589_v39, %v1859_v55  ;;  %v2210_v56 = vmul.f32 %v5331_v61, %v8559_v28  ;;  %v8594_v5 = vld [vmem:[#allocation208_spill] sm:$0xff] }
 0x846   : > { %v2336_v19 = vadd.f32 %v2328_v32, %v2311_v46  ;;  %v2326_v53 = vpop.permute.xlu1 %2325  ;;  %3194 = vrot.lane.b32.xlu1 %v6397_v16, %s8541_s10  ;;  %v3230_v23 = vmul.f32 %v6393_v0, %v6397_v16  ;;  %v2460_v54 = vadd.f32 %v2456_v36, %v2451_v41  ;;  %v8590_v46 = vld [vmem:[#allocation186_spill] sm:$0xff]  ;;  %v2213_v49 = vadd.f32 %v6351_v18, %v2204_v44  ;;  %v8596_v18 = vld [vmem:[#allocation167_spill] sm:$0xff] }
 0x847   : > { %v2335_v37 = vadd.f32 %v2326_v53, %v2310_v42  ;;  %v2048_v31 = vadd.f32 %v8590_v46, %v2023_v50  ;;  %v2295_v26 = vadd.f32 %v8591_v20, %v2270_v35  ;;  %v6422_v58 = vmax.f32 %v2105_v25, 0.0  ;;  %v8597_v25 = vld [vmem:[#allocation191_spill] sm:$0xff] }
 0x848   : > { %3239 = vrot.lane.b32.xlu0 %v3230_v23, %s8549_s2  ;;  %v2345_v33 = vadd.f32 %v2341_v4, %v2336_v19  ;;  %v8592_v4 = vld [vmem:[#allocation169_spill] sm:$0xff]  ;;  %v1858_v3 = vadd.f32 %v8593_v60, %v1833_v13  ;;  %v2399_v28 = vmul.f32 %v8594_v5, %v5343_v43  ;;  %v2205_v41 = vadd.f32 %v8595_v38, %v2180_v7  ;;  %v8601_v13 = vld [vmem:[#allocation222_spill] sm:$0xff] }
 0x849   : > { %v2362_v21 = vpop.permute.xlu0 %2361  ;;  %v2344_v59 = vadd.f32 %v2340_v29, %v2335_v37  ;;  %v1881_v42 = vadd.f32 %v8592_v4, %v1856_v34  ;;  %v2024_v29 = vadd.f32 %v6290_v63, %v2015_v52  ;;  %v2427_v55 = vadd.f32 %v8596_v18, %v2402_v45  ;;  %v8599_v19 = vld [vmem:[#allocation189_spill] sm:$0xff]  ;;  %v8600_v34 = vld [vmem:[#allocation206_spill] sm:$0xff]  ;;  %v8603_v52 = vld [vmem:[#allocation179_spill] sm:$0xff] }
 0x84a   : > { %v2360_v6 = vpop.permute.xlu1 %2359  ;;  %v2370_v14 = vadd.f32 %v2362_v21, %v2345_v33  ;;  %v1893_v22 = vadd.f32 %v6285_v10, %v1884_v11  ;;  %v2457_v50 = vmul.f32 %v8586_v24, %v6110_v62  ;;  %v2485_v44 = vadd.f32 %v8598_v30, %v2460_v54  ;;  %v8602_v10 = vld [vmem:[#allocation221_spill] sm:$0xff]  ;;  %v8604_v33 = vld [vmem:[#allocation190_spill] sm:$0xff]  ;;  %v8605_v45 = vld [vmem:[#allocation195_spill] sm:$0xff] }
 0x84b   : > { %v2369_v51 = vadd.f32 %v2360_v6, %v2344_v59  ;;  %v2073_v63 = vadd.f32 %v6274_v2, %v2048_v31  ;;  %v2238_v53 = vadd.f32 %v8599_v19, %v2213_v49  ;;  %v6440_v47 = vmax.f32 %v2295_v26, 0.0  ;;  %v8606_v11 = vld [vmem:[#allocation205_spill] sm:$0xff]  ;;  %v8609_v6 = vld [vmem:[#allocation170_spill] sm:$0xff]  ;;  %v8615_v19 = vld [vmem:[#allocation192_spill] sm:$0xff] }
 0x84c   : > { %2894 = vrot.lane.b32.xlu0 %v6422_v58, %s8541_s10  ;;  %v1883_v48 = vadd.f32 %v8600_v34, %v1858_v3  ;;  %v1890_v37 = vadd.f32 %v8601_v13, %v1881_v42  ;;  %v2078_v36 = vmul.f32 %v6151_v15, %v8602_v10  ;;  %v2049_v7 = vadd.f32 %v8603_v52, %v2024_v29  ;;  %v8608_v49 = vld [vmem:[#allocation193_spill] sm:$0xff] }
 0x84d   : > { %v2394_v35 = vadd.f32 %v8597_v25, %v2369_v51  ;;  %v2442_v32 = vpop.permute.xlu0 %2441  ;;  %v2214_v62 = vadd.f32 %v2210_v56, %v2205_v41  ;;  %v2395_v1 = vadd.f32 %v8604_v33, %v2370_v14  ;;  %v1918_v39 = vadd.f32 %v8605_v45, %v1893_v22  ;;  %v8610_v3 = vld [vmem:[#allocation197_spill] sm:$0xff]  ;;  %v8619_v33 = vld [vmem:[#allocation200_spill] sm:$0xff] }
 0x84e   : > { %v2452_v23 = vadd.f32 %v2442_v32, %v2427_v55  ;;  %v1888_v21 = vmul.f32 %v8606_v11, %v8602_v10  ;;  %v2400_v59 = vmul.f32 %v5331_v61, %v8594_v5  ;;  %v6455_v46 = vmax.f32 %v2485_v44, 0.0  ;;  %v2444_v14 = vpop.permute.xlu1 %2443  ;;  %v8621_v11 = vld [vmem:[#allocation214_spill] sm:$0xff] }
 0x84f   : > { %v2403_v17 = vadd.f32 %v2399_v28, %v2394_v35  ;;  %v2082_v31 = vadd.f32 %v2078_v36, %v2073_v63  ;;  %v2263_v56 = vadd.f32 %v6370_v27, %v2238_v53  ;;  %v1915_v4 = vadd.f32 %v8609_v6, %v1890_v37  ;;  %v8611_v28 = vld [vmem:[#allocation185_spill] sm:$0xff]  ;;  %v8612_v27 = vld [vmem:[#allocation220_spill] sm:$0xff]  ;;  %v8614_v63 = vld [vmem:[#allocation199_spill] sm:$0xff] }
 0x850   : > { %3191 = vrot.lane.b32.xlu0 %v6440_v47, %s8541_s10  ;;  %v2461_v2 = vadd.f32 %v2457_v50, %v2452_v23  ;;  %8607 = vst [vmem:[#allocation203_spill] sm:$0xff] %v6455_v46  ;;  %v1892_v42 = vadd.f32 %v1888_v21, %v1883_v48  ;;  %v2268_v60 = vmul.f32 %v8560_v12, %v8602_v10  ;;  %v6473_v25 = vmax.f32 %v1918_v39, 0.0  ;;  %v8613_v50 = vld [vmem:[#allocation209_spill] sm:$0xff]  ;;  %v8616_v37 = vld [vmem:[#allocation198_spill] sm:$0xff] }
 0x851   : > { %v2476_v54 = vpop.permute.xlu0 %2475  ;;  %v2428_v20 = vadd.f32 %v8608_v49, %v2403_v17  ;;  %v2074_v51 = vadd.f32 %v8610_v3, %v2049_v7  ;;  %v2239_v29 = vadd.f32 %v8611_v28, %v2214_v62  ;;  %v2404_v5 = vadd.f32 %v2400_v59, %v2395_v1  ;;  %v8617_v17 = vld [vmem:[#allocation201_spill] sm:$0xff] }
 0x852   : > { %v2486_v26 = vadd.f32 %v2476_v54, %v2461_v2  ;;  %v2079_v41 = vmul.f32 %v6151_v15, %v8612_v27  ;;  %v2107_v18 = vadd.f32 %v6302_v9, %v2082_v31  ;;  %v2272_v55 = vadd.f32 %v2268_v60, %v2263_v56  ;;  %v2478_v7 = vpop.permute.xlu1 %2477  ;;  %v8652_v56 = vld [vmem:[#allocation75_spill] sm:$0xff] }
 0x853   : > { %v2453_v22 = vadd.f32 %v2444_v14, %v2428_v20  ;;  %v2458_v35 = vmul.f32 %v8586_v24, %v8602_v10  ;;  %v6477_v32 = vmax.f32 %v1915_v4, 0.0  ;;  %v1917_v30 = vadd.f32 %v8613_v50, %v1892_v42 }
 0x854   : > { %v6464_v38 = vmax.f32 %v2486_v26, 0.0  ;;  %3488 = vrot.lane.b32.xlu0 %v6455_v46, %s8541_s10  ;;  %v2083_v44 = vadd.f32 %v2079_v41, %v2074_v51  ;;  %v2264_v15 = vadd.f32 %v8614_v63, %v2239_v29  ;;  %v2429_v53 = vadd.f32 %v8615_v19, %v2404_v5  ;;  %v8624_v26 = vld [vmem:[#allocation219_spill] sm:$0xff] }
 0x855   : > { %v6484_v9 = vmax.f32 %v2107_v18, 0.0  ;;  %v2269_v23 = vmul.f32 %v8560_v12, %v8612_v27  ;;  %v2297_v34 = vadd.f32 %v6386_v57, %v2272_v55  ;;  %v2462_v48 = vadd.f32 %v2458_v35, %v2453_v22 }
 0x856   : > { %3491 = vrot.lane.b32.xlu1 %v6464_v38, %s8541_s10  ;;  %v6491_v13 = vmax.f32 %v1917_v30, 0.0  ;;  %v2108_v10 = vadd.f32 %v8616_v37, %v2083_v44  ;;  %v2454_v52 = vadd.f32 %v8617_v17, %v2429_v53  ;;  %v2459_v12 = vmul.f32 %v8586_v24, %v8612_v27  ;;  %v8622_v24 = vld [vmem:[#allocation202_spill] sm:$0xff] }
 0x857   : > { %v2273_v36 = vadd.f32 %v2269_v23, %v2264_v15  ;;  %v6497_v62 = vmax.f32 %v2297_v34, 0.0  ;;  %v2487_v57 = vadd.f32 %v2478_v7, %v2462_v48  ;;  %v2495_v21 = vrot.slane %v8621_v11, 7 }
 0x858   : > { %2606 = vrot.lane.b32.xlu0 %v6473_v25, %s8541_s10  ;;  %v2463_v2 = vadd.f32 %v2459_v12, %v2454_v52  ;;  %v6506_v45 = vmax.f32 %v2108_v10, 0.0  ;;  %v2494_v31 = vrot.slane %v6477_v32, 7  ;;  %v2638_v6 = vmul.f32 %v8624_v26, %v6473_v25 }
 0x859   : > { %8618 = vst [vmem:[#allocation207_spill] sm:$0xff] %v6497_v62  ;;  %v2298_v1 = vadd.f32 %v8619_v33, %v2273_v36  ;;  %v6508_v39 = vmax.f32 %v2487_v57, 0.0  ;;  %v2792_v4 = vrot.slane %v6316_v8, 7  ;;  %v2635_v42 = vmul.f32 %v8624_v26, %v6477_v32 }
 0x85a   : > { %2597 = vrot.lane.b32.xlu1 %v6477_v32, %s8541_s10  ;;  %v2488_v59 = vadd.f32 %v8622_v24, %v2463_v2  ;;  %v6527_v49 = vsel %vm1517_vm12, %v2494_v31, %v2495_v21  ;;  %v2791_v60 = vrot.slane %v6422_v58, 7  ;;  %v2986_v51 = vrot.slane %v6316_v8, 1 }
 0x85b   : > { %8620 = vst [vmem:[#allocation210_spill] sm:$0xff] %v6508_v39  ;;  %v6516_v54 = vmax.f32 %v2298_v1, 0.0  ;;  %v2932_v28 = vmul.f32 %v6319_v40, %v6422_v58  ;;  %v2985_v29 = vrot.slane %v6422_v58, 1  ;;  %v3283_v27 = vrot.slane %v6397_v16, 1 }
 0x85c   : > { %2900 = vrot.lane.b32.xlu0 %v6484_v9, %s8541_s10  ;;  %v6531_v20 = vmax.f32 %v2488_v59, 0.0  ;;  %v6549_v3 = vsel %vm1517_vm12, %v2791_v60, %v2792_v4  ;;  %v3229_v41 = vmul.f32 %v6393_v0, %v6440_v47  ;;  %v3282_v14 = vrot.slane %v6440_v47, 1 }
 0x85d   : > { %v6564_v5 = vsel %vm1659_vm13, %v2985_v29, %v2986_v51  ;;  %v8170_v55 = vrot.slane %v6464_v38, 1  ;;  %v2637_v22 = vmul.f32 %v8624_v26, %v6491_v13  ;;  %v8169_v35 = vrot.slane %v6455_v46, 1 }
 0x85e   : > { %2603 = vrot.lane.b32.xlu1 %v6491_v13, %s8541_s10  ;;  %8625 = vst [vmem:[#allocation196_spill] sm:$0xff] %v6564_v5  ;;  %v6579_v18 = vsel %vm1659_vm13, %v3282_v14, %v3283_v27  ;;  %v2689_v50 = vrot.slane %v8621_v11, 1  ;;  %v2688_v44 = vrot.slane %v6477_v32, 1  ;;  %v3089_v15 = vrot.slane %v6397_v16, 7 }
 0x85f   : > { %8626 = vst [vmem:[#allocation215_spill] sm:$0xff] %v6579_v18  ;;  %v6595_v30 = vsel %vm1659_vm13, %v8169_v35, %v8170_v55  ;;  %v2935_v19 = vmul.f32 %v6319_v40, %v6506_v45  ;;  %v3088_v53 = vrot.slane %v6440_v47, 7  ;;  %v3386_v34 = vrot.slane %v6464_v38, 7 }
 0x860   : > { %3197 = vrot.lane.b32.xlu0 %v6497_v62, %s8541_s10  ;;  %8627 = vst [vmem:[#allocation164_spill] sm:$0xff] %v6595_v30  ;;  %v6602_v63 = vsel %vm1659_vm13, %v2688_v44, %v2689_v50  ;;  %v3232_v48 = vmul.f32 %v6393_v0, %v6516_v54  ;;  %v3385_v37 = vrot.slane %v6455_v46, 7  ;;  %v2496_v10 = vrot.slane %v6491_v13, 7 }
 0x861   : > { %8628 = vst [vmem:[#allocation172_spill] sm:$0xff] %v6602_v63  ;;  %v6613_v23 = vsel %vm1517_vm12, %v3088_v53, %v3089_v15  ;;  %v2497_v36 = vrot.slane %v6473_v25, 7  ;;  %v2690_v7 = vrot.slane %v6491_v13, 1  ;;  %v2934_v12 = vmul.f32 %v6319_v40, %v6484_v9 }
 0x862   : > { %2903 = vrot.lane.b32.xlu1 %v6506_v45, %s8541_s10  ;;  %8629 = vst [vmem:[#allocation165_spill] sm:$0xff] %v6613_v23  ;;  %v6626_v17 = vsel %vm1517_vm12, %v3385_v37, %v3386_v34  ;;  %v2691_v33 = vrot.slane %v6473_v25, 1  ;;  %v3231_v1 = vmul.f32 %v6393_v0, %v6497_v62  ;;  %v2793_v40 = vrot.slane %v6484_v9, 7 }
 0x863   : > { %8630 = vst [vmem:[#allocation213_spill] sm:$0xff] %v6626_v17  ;;  %v6632_v52 = vsel %vm1517_vm12, %v2496_v10, %v2497_v36  ;;  %v6642_v57 = vsel %vm1659_vm13, %v2689_v50, %v2690_v7  ;;  %v2794_v24 = vrot.slane %v6506_v45, 7  ;;  %v6662_v59 = vsel %vm1517_vm12, %v2497_v36, %v2494_v31 }
 0x864   : > { %3494 = vrot.lane.b32.xlu0 %v6508_v39, %s8541_s10  ;;  %8631 = vst [vmem:[#allocation171_spill] sm:$0xff] %v6632_v52  ;;  %8632 = vst [vmem:[#allocation154_spill] sm:$0xff] %v6642_v57  ;;  %v6652_v2 = vsel %vm1659_vm13, %v2691_v33, %v2688_v44  ;;  %v2987_v26 = vrot.slane %v6484_v9, 1  ;;  %v6678_v31 = vsel %vm1517_vm12, %v2495_v21, %v2496_v10  ;;  %v3387_v36 = vrot.slane %v6508_v39, 7 }
 0x865   : > { %8633 = vst [vmem:[#allocation204_spill] sm:$0xff] %v6652_v2  ;;  %8634 = vst [vmem:[#allocation188_spill] sm:$0xff] %v6662_v59  ;;  %v6668_v0 = vsel %vm1517_vm12, %v2793_v40, %v2794_v24  ;;  %v6706_v50 = vsel %vm1517_vm12, %v2794_v24, %v2791_v60  ;;  %v6722_v60 = vsel %vm1517_vm12, %v2792_v4, %v2793_v40  ;;  %v6779_v24 = vstv %s8640_s3  ;;  %s8737_s3 = sld [smem:[#allocation116_spill]] }
 0x866   : > { %3200 = vrot.lane.b32.xlu1 %v6516_v54, %s8541_s10  ;;  %8635 = vst [vmem:[#allocation175_spill] sm:$0xff] %v6668_v0  ;;  %8636 = vst [vmem:[#allocation168_spill] sm:$0xff] %v6678_v31  ;;  %v6737_v10 = vsel %vm1659_vm13, %v2986_v51, %v2987_v26  ;;  %v6758_v51 = vsel %vm1517_vm12, %v3386_v34, %v3387_v36  ;;  %v6797_v35 = vstv %s5070_s16  ;;  %v6814_v43 = vstv %s5106_s9 }
 0x867   : > { %8638 = vst [vmem:[#allocation184_spill] sm:$0xff] %v6706_v50  ;;  %8639 = vst [vmem:[#allocation212_spill] sm:$0xff] %v6737_v10 }
 0x868   : > { %2505 = vrot.lane.b32.xlu0 %v6527_v49, %s8541_s10 }
 0x86a   : > { %3497 = vrot.lane.b32.xlu1 %v6531_v20, %s8541_s10 }
 0x86c   : > { %2649 = vrot.lane.b32.xlu0 %v2638_v6, %s8549_s2  ;;  %v2988_v6 = vrot.slane %v6506_v45, 1 }
 0x86e   : > { %2643 = vrot.lane.b32.xlu1 %v2635_v42, %s8549_s2  ;;  %v6684_v42 = vsel %vm1659_vm13, %v2987_v26, %v2988_v6 }
 0x870   : > { %2802 = vrot.lane.b32.xlu0 %v6549_v3, %s8541_s10 }
 0x872   : > { %2940 = vrot.lane.b32.xlu1 %v2932_v28, %s8549_s2  ;;  %v3091_v28 = vrot.slane %v6516_v54, 7 }
 0x874   : > { %2993 = vrot.lane.b32.xlu0 %v6564_v5, %s8541_s10  ;;  %v6697_v21 = vsel %vm1517_vm12, %v3091_v28, %v3088_v53  ;;  %v3285_v53 = vrot.slane %v6516_v54, 1 }
 0x876   : > { %3237 = vrot.lane.b32.xlu1 %v3229_v41, %s8549_s2  ;;  %v6691_v41 = vsel %vm1659_vm13, %v2690_v7, %v2691_v33  ;;  %v6752_v7 = vsel %vm1659_vm13, %v2988_v6, %v2985_v29 }
 0x877   : > { %8637 = vst [vmem:[#allocation216_spill] sm:$0xff] %v6691_v41  ;;  %8641 = vst [vmem:[#allocation181_spill] sm:$0xff] %v6752_v7 }
 0x878   : > { %3290 = vrot.lane.b32.xlu0 %v6579_v18, %s8541_s10 }
 0x87a   : > { %2647 = vrot.lane.b32.xlu1 %v2637_v22, %s8549_s2  ;;  %v3090_v22 = vrot.slane %v6497_v62, 7 }
 0x87c   : > { %3587 = vrot.lane.b32.xlu0 %v6595_v30, %s8541_s10  ;;  %v6712_v44 = vsel %vm1517_vm12, %v3089_v15, %v3090_v22  ;;  %v6768_v29 = vsel %vm1517_vm12, %v3090_v22, %v3091_v28 }
 0x87e   : > { %2696 = vrot.lane.b32.xlu1 %v6602_v63, %s8541_s10 }
 0x880   : > { %2946 = vrot.lane.b32.xlu0 %v2935_v19, %s8549_s2  ;;  %v3284_v19 = vrot.slane %v6497_v62, 1 }
 0x882   : > { %3099 = vrot.lane.b32.xlu1 %v6613_v23, %s8541_s10  ;;  %v6728_v15 = vsel %vm1659_vm13, %v3284_v19, %v3285_v53  ;;  %v6787_v26 = vsel %vm1659_vm13, %v3283_v27, %v3284_v19  ;;  %v6804_v27 = vsel %vm1659_vm13, %v3285_v53, %v3282_v14 }
 0x884   : > { %3243 = vrot.lane.b32.xlu0 %v3232_v48, %s8549_s2  ;;  %v3388_v48 = vrot.slane %v6531_v20, 7 }
 0x886   : > { %3396 = vrot.lane.b32.xlu1 %v6626_v17, %s8541_s10  ;;  %v6743_v4 = vsel %vm1517_vm12, %v3388_v48, %v3385_v37  ;;  %v3581_v37 = vrot.slane %v6508_v39, 1 }
 0x888   : > { %2511 = vrot.lane.b32.xlu0 %v6632_v52, %s8541_s10 }
 0x88a   : > { %2944 = vrot.lane.b32.xlu1 %v2934_v12, %s8549_s2  ;;  %v3582_v12 = vrot.slane %v6531_v20, 1 }
 0x88c   : > { %2699 = vrot.lane.b32.xlu0 %v6642_v57, %s8541_s10  ;;  %v6776_v34 = vsel %vm1659_vm13, %v3581_v37, %v3582_v12 }
 0x88d   : > { %8643 = vst [vmem:[#allocation166_spill] sm:$0xff] %v6776_v34 }
 0x88e   : > { %3241 = vrot.lane.b32.xlu1 %v3231_v1, %s8549_s2  ;;  %v8642_v1 = vld [vmem:[#allocation55_spill] sm:$0xff] }
 0x88f   : > { %v2540_v40 = vmul.f32 %v8642_v1, %v6527_v49  ;;  %v2837_v6 = vmul.f32 %v8642_v1, %v6549_v3  ;;  %v3134_v19 = vmul.f32 %v8642_v1, %v6613_v23  ;;  %v3431_v14 = vmul.f32 %v8642_v1, %v6626_v17 }
 0x890   : > { %2705 = vrot.lane.b32.xlu0 %v6652_v2, %s8541_s10 }
 0x891   : > { %v2545_v22 = vmul.f32 %v6779_v24, %v2540_v40  ;;  %v2842_v40 = vmul.f32 %v6797_v35, %v2837_v6  ;;  %v3139_v61 = vmul.f32 %v6814_v43, %v3134_v19  ;;  %v6829_v6 = vstv %s5134_s18 }
 0x892   : > { %2502 = vrot.lane.b32.xlu1 %v6662_v59, %s8541_s10  ;;  %v3436_v19 = vmul.f32 %v6829_v6, %v3431_v14 }
 0x894   : > { %2808 = vrot.lane.b32.xlu0 %v6668_v0, %s8541_s10 }
 0x896   : > { %2508 = vrot.lane.b32.xlu1 %v6678_v31, %s8541_s10 }
 0x898   : > { %2999 = vrot.lane.b32.xlu0 %v6684_v42, %s8541_s10  ;;  %v6762_v33 = vpop.permute.xlu0 %2600 }
 0x89a   : > { %2702 = vrot.lane.b32.xlu1 %v6691_v41, %s8541_s10 }
 0x89c   : > { %3096 = vrot.lane.b32.xlu0 %v6697_v21, %s8541_s10  ;;  %v6791_v28 = vpop.permute.xlu0 %2645 }
 0x89d   : > { %8644 = vst [vmem:[#allocation178_spill] sm:$0xff] %v6791_v28  ;;  %v2737_v28 = vstv %s5064_s17 }
 0x89e   : > { %2799 = vrot.lane.b32.xlu1 %v6706_v50, %s8541_s10 }
 0x8a0   : > { %3102 = vrot.lane.b32.xlu0 %v6712_v44, %s8541_s10 }
 0x8a2   : > { %2805 = vrot.lane.b32.xlu1 %v6722_v60, %s8541_s10 }
 0x8a4   : > { %3296 = vrot.lane.b32.xlu0 %v6728_v15, %s8541_s10 }
 0x8a6   : > { %2996 = vrot.lane.b32.xlu1 %v6737_v10, %s8541_s10 }
 0x8a8   : > { %3393 = vrot.lane.b32.xlu0 %v6743_v4, %s8541_s10 }
 0x8aa   : > { %3002 = vrot.lane.b32.xlu1 %v6752_v7, %s8541_s10  ;;  %v6808_v55 = vpop.permute.xlu0 %2942 }
 0x8ab   : > { %8645 = vst [vmem:[#allocation173_spill] sm:$0xff] %v6808_v55 }
 0x8ac   : > { %3399 = vrot.lane.b32.xlu0 %v6758_v51, %s8541_s10 }
 0x8ae   : > { %3105 = vrot.lane.b32.xlu1 %v6768_v29, %s8541_s10 }
 0x8b0   : > { %3593 = vrot.lane.b32.xlu0 %v6776_v34, %s8541_s10  ;;  %v8651_v34 = vld [vmem:[#allocation74_spill] sm:$0xff] }
 0x8b1   : > { %v2734_v30 = vmul.f32 %v8651_v34, %v6642_v57  ;;  %v2736_v57 = vmul.f32 %v8652_v56, %v6652_v2 }
 0x8b2   : > { %3293 = vrot.lane.b32.xlu1 %v6787_v26, %s8541_s10 }
 0x8b4   : > { %2554 = vrot.lane.b32.xlu0 %v2545_v22, %s8549_s2  ;;  %v6819_v22 = vsel %vm1517_vm12, %v3387_v36, %v3388_v48  ;;  %v2542_v36 = vmul.f32 %v8642_v1, %v6632_v52 }
 0x8b6   : > { %3299 = vrot.lane.b32.xlu1 %v6804_v27, %s8541_s10  ;;  %v2547_v14 = vmul.f32 %v6779_v24, %v2542_v36  ;;  %v3327_v36 = vmul.f32 %v8642_v1, %v6579_v18 }
 0x8b8   : > { %2851 = vrot.lane.b32.xlu0 %v2842_v40, %s8549_s2  ;;  %v8647_v40 = vrot.slane %v6464_v38, 1 }
 0x8ba   : > { %v6823_v53 = vpop.permute.xlu0 %3239  ;;  %3402 = vrot.lane.b32.xlu1 %v6819_v22, %s8541_s10  ;;  %v6836_v48 = vsel %vm1659_vm13, %v8647_v40, %v3581_v37  ;;  %v8649_v37 = vrot.slane %v6455_v46, 1 }
 0x8bb   : > { %8646 = vst [vmem:[#allocation174_spill] sm:$0xff] %v6823_v53  ;;  %8648 = vst [vmem:[#allocation187_spill] sm:$0xff] %v6836_v48  ;;  %v6847_v53 = vpop.permute.xlu1 %2897 }
 0x8bc   : > { %3148 = vrot.lane.b32.xlu0 %v3139_v61, %s8549_s2  ;;  %v2733_v61 = vmul.f32 %v8642_v1, %v6602_v63  ;;  %v6854_v40 = vsel %vm1659_vm13, %v3582_v12, %v8649_v37  ;;  %v6870_v37 = vstv %s5094_s7 }
 0x8bd   : > { %8650 = vst [vmem:[#allocation155_spill] sm:$0xff] %v6854_v40 }
 0x8be   : > { %v6840_v55 = vpop.permute.xlu0 %2894  ;;  %3590 = vrot.lane.b32.xlu1 %v6836_v48, %s8541_s10  ;;  %v2738_v12 = vmul.f32 %v2737_v28, %v2733_v61  ;;  %v6884_v61 = vstv %s5125_s6 }
 0x8bf   : > { %v6866_v63 = vpop.permute.xlu1 %3194 }
 0x8c0   : > { %3445 = vrot.lane.b32.xlu0 %v3436_v19, %s8549_s2  ;;  %v3030_v19 = vmul.f32 %v8642_v1, %v6564_v5  ;;  %v2839_v5 = vmul.f32 %v8642_v1, %v6668_v0 }
 0x8c2   : > { %v6859_v48 = vpop.permute.xlu0 %3191  ;;  %3596 = vrot.lane.b32.xlu1 %v6854_v40, %s8541_s10  ;;  %v2739_v40 = vmul.f32 %v2737_v28, %v2734_v30  ;;  %v8653_v30 = vld [vmem:[#allocation59_spill] sm:$0xff]  ;;  %v2844_v0 = vmul.f32 %v6797_v35, %v2839_v5  ;;  %v2735_v5 = vmul.f32 %v8642_v1, %v6691_v41 }
 0x8c3   : > { %v2539_v17 = vmul.f32 %v8653_v30, %v6662_v59 }
 0x8c4   : > { %2558 = vrot.lane.b32.xlu0 %v2547_v14, %s8549_s2  ;;  %v3035_v14 = vmul.f32 %v6870_v37, %v3030_v19  ;;  %v3031_v19 = vmul.f32 %v8651_v34, %v6737_v10  ;;  %v2740_v41 = vmul.f32 %v2737_v28, %v2735_v5 }
 0x8c6   : > { %v6874_v52 = vpop.permute.xlu0 %3488  ;;  %2746 = vrot.lane.b32.xlu1 %v2738_v12, %s8549_s2  ;;  %v2741_v12 = vmul.f32 %v2737_v28, %v2736_v57  ;;  %v8654_v57 = vld [vmem:[#allocation60_spill] sm:$0xff]  ;;  %v3330_v28 = vmul.f32 %v8652_v56, %v6804_v27 }
 0x8c8   : > { %v6879_v39 = vpop.permute.xlu1 %3491  ;;  %2748 = vrot.lane.b32.xlu0 %v2739_v40, %s8549_s2  ;;  %v3332_v40 = vmul.f32 %v6884_v61, %v3327_v36  ;;  %v3033_v36 = vmul.f32 %v8652_v56, %v6752_v7  ;;  %v8676_v56 = vld [vmem:[#allocation164_spill] sm:$0xff] }
 0x8ca   : > { %v6888_v2 = vpop.permute.xlu0 %2606  ;;  %3043 = vrot.lane.b32.xlu1 %v3035_v14, %s8549_s2  ;;  %v2541_v14 = vmul.f32 %v8654_v57, %v6678_v31 }
 0x8cc   : > { %v6893_v18 = vpop.permute.xlu1 %2597  ;;  %2752 = vrot.lane.b32.xlu0 %v2741_v12, %s8549_s2  ;;  %v2544_v12 = vmul.f32 %v6779_v24, %v2539_v17  ;;  %v3136_v17 = vmul.f32 %v8642_v1, %v6768_v29 }
 0x8ce   : > { %v6899_v62 = vpop.permute.xlu0 %2900  ;;  %3340 = vrot.lane.b32.xlu1 %v3332_v40, %s8549_s2  ;;  %v3036_v40 = vmul.f32 %v6870_v37, %v3031_v19  ;;  %v2836_v19 = vmul.f32 %v8653_v30, %v6706_v50 }
 0x8d0   : > { %v6905_v23 = vpop.permute.xlu1 %2603  ;;  %2855 = vrot.lane.b32.xlu0 %v2844_v0, %s8549_s2  ;;  %v2546_v0 = vmul.f32 %v6779_v24, %v2541_v14  ;;  %v3328_v24 = vmul.f32 %v8651_v34, %v6787_v26  ;;  %v2841_v50 = vmul.f32 %v6797_v35, %v2836_v19  ;;  %v3433_v19 = vmul.f32 %v8642_v1, %v6819_v22 }
 0x8d2   : > { %v6911_v59 = vpop.permute.xlu0 %3197  ;;  %2552 = vrot.lane.b32.xlu1 %v2544_v12, %s8549_s2  ;;  %v3038_v12 = vmul.f32 %v6870_v37, %v3033_v36  ;;  %v2838_v36 = vmul.f32 %v8654_v57, %v6722_v60 }
 0x8d4   : > { %v6917_v10 = vpop.permute.xlu1 %2903  ;;  %3045 = vrot.lane.b32.xlu0 %v3036_v40, %s8549_s2  ;;  %v3141_v40 = vmul.f32 %v6814_v43, %v3136_v17  ;;  %v3032_v17 = vmul.f32 %v8642_v1, %v6684_v42 }
 0x8d6   : > { %v6923_v31 = vpop.permute.xlu0 %3494  ;;  %2556 = vrot.lane.b32.xlu1 %v2546_v0, %s8549_s2 }
 0x8d8   : > { %v6929_v7 = vpop.permute.xlu1 %3200  ;;  %3049 = vrot.lane.b32.xlu0 %v3038_v12, %s8549_s2 }
 0x8da   : > { %v6934_v14 = vpop.permute.xlu0 %2505  ;;  %2750 = vrot.lane.b32.xlu1 %v2740_v41, %s8549_s2  ;;  %v3333_v41 = vmul.f32 %v6884_v61, %v3328_v24  ;;  %v3133_v24 = vmul.f32 %v8653_v30, %v6697_v21 }
 0x8dc   : > { %v6940_v0 = vpop.permute.xlu1 %3497  ;;  %3152 = vrot.lane.b32.xlu0 %v3141_v40, %s8549_s2  ;;  %v2843_v40 = vmul.f32 %v6797_v35, %v2838_v36  ;;  %v3438_v35 = vmul.f32 %v6829_v6, %v3433_v19  ;;  %v3135_v36 = vmul.f32 %v8654_v57, %v6712_v44 }
 0x8de   : > { %v6946_v5 = vpop.permute.xlu0 %2649  ;;  %2849 = vrot.lane.b32.xlu1 %v2841_v50, %s8549_s2  ;;  %v3335_v50 = vmul.f32 %v6884_v61, %v3330_v28  ;;  %v3138_v28 = vmul.f32 %v6814_v43, %v3133_v24  ;;  %v2899_v24 = vsel %vm1522_vm14, %v6847_v53, %v6316_v8  ;;  %v3432_v53 = vmul.f32 %v8654_v57, %v6758_v51  ;;  %v8667_v57 = vld [vmem:[#allocation210_spill] sm:$0xff] }
 0x8df   : > { %8655 = vst [vmem:[#allocation217_spill] sm:$0xff] %v6946_v5 }
 0x8e0   : > { %v6952_v12 = vpop.permute.xlu1 %2643  ;;  %3342 = vrot.lane.b32.xlu0 %v3333_v41, %s8549_s2  ;;  %v3037_v41 = vmul.f32 %v6870_v37, %v3032_v17  ;;  %v2602_v37 = vsel %vm1522_vm14, %v6762_v33, %v8621_v11  ;;  %v3329_v17 = vmul.f32 %v8642_v1, %v6728_v15  ;;  %v3430_v33 = vmul.f32 %v8653_v30, %v6743_v4  ;;  %v8675_v1 = vld [vmem:[#allocation175_spill] sm:$0xff] }
 0x8e1   : > { %8656 = vst [vmem:[#allocation211_spill] sm:$0xff] %v6952_v12 }
 0x8e2   : > { %v6958_v34 = vpop.permute.xlu0 %2802  ;;  %2853 = vrot.lane.b32.xlu1 %v2843_v40, %s8549_s2 }
 0x8e4   : > { %v6964_v5 = vpop.permute.xlu1 %2940  ;;  %3346 = vrot.lane.b32.xlu0 %v3335_v50, %s8549_s2  ;;  %v3140_v50 = vmul.f32 %v6814_v43, %v3135_v36  ;;  %v3196_v43 = vsel %vm1522_vm14, %v6866_v63, %v6397_v16  ;;  %v3437_v63 = vmul.f32 %v6829_v6, %v3432_v53 }
 0x8e5   : > { %8657 = vst [vmem:[#allocation177_spill] sm:$0xff] %v6964_v5 }
 0x8e6   : > { %v6968_v12 = vpop.permute.xlu0 %2993  ;;  %3047 = vrot.lane.b32.xlu1 %v3037_v41, %s8549_s2 }
 0x8e8   : > { %v6974_v40 = vpop.permute.xlu1 %3237  ;;  %3449 = vrot.lane.b32.xlu0 %v3438_v35, %s8549_s2 }
 0x8e9   : > { %8658 = vst [vmem:[#allocation218_spill] sm:$0xff] %v6974_v40  ;;  %v8669_v40 = vld [vmem:[#allocation172_spill] sm:$0xff] }
 0x8ea   : > { %v6978_v5 = vpop.permute.xlu0 %3290  ;;  %3146 = vrot.lane.b32.xlu1 %v3138_v28, %s8549_s2  ;;  %v3334_v28 = vmul.f32 %v6884_v61, %v3329_v17  ;;  %v3493_v61 = vsel %vm1522_vm14, %v6879_v39, %v6464_v38  ;;  %v2599_v39 = vsel %vm1522_vm14, %v6893_v18, %v6477_v32  ;;  %v3202_v18 = vsel %vm1522_vm14, %v6929_v7, %v6516_v54 }
 0x8eb   : > { %v3490_v7 = vsel %vm1522_vm14, %v6874_v52, %v6455_v46  ;;  %v2804_v52 = vsel %vm1522_vm14, %v6958_v34, %v6549_v3  ;;  %v8665_v34 = vld [vmem:[#allocation207_spill] sm:$0xff]  ;;  %v8681_v46 = vld [vmem:[#allocation181_spill] sm:$0xff] }
 0x8ec   : > { %v6986_v19 = vpop.permute.xlu1 %2647  ;;  %2611 = vrot.lane.b32.xlu0 %v2602_v37, %s8541_s10 }
 0x8ed   : > { %8659 = vst [vmem:[#allocation194_spill] sm:$0xff] %v6986_v19  ;;  %v8672_v19 = vld [vmem:[#allocation204_spill] sm:$0xff] }
 0x8ee   : > { %v6990_v41 = vpop.permute.xlu0 %3587  ;;  %3150 = vrot.lane.b32.xlu1 %v3140_v50, %s8549_s2  ;;  %v3435_v50 = vmul.f32 %v6829_v6, %v3430_v33  ;;  %v2608_v33 = vsel %vm1522_vm14, %v6888_v2, %v6473_v25  ;;  %v2905_v6 = vsel %vm1522_vm14, %v6917_v10, %v6506_v45  ;;  %v2896_v2 = vsel %vm1522_vm14, %v6840_v55, %v6422_v58 }
 0x8ef   : > { %v3193_v10 = vsel %vm1522_vm14, %v6859_v48, %v6440_v47  ;;  %v3499_v55 = vsel %vm1522_vm14, %v6940_v0, %v6531_v20  ;;  %v2507_v48 = vsel %vm1522_vm14, %v6934_v14, %v6527_v49  ;;  %v2605_v0 = vsel %vm1522_vm14, %v6905_v23, %v6491_v13  ;;  %v8664_v23 = vld [vmem:[#allocation165_spill] sm:$0xff] }
 0x8f0   : > { %v6998_v35 = vpop.permute.xlu1 %2696  ;;  %2908 = vrot.lane.b32.xlu0 %v2899_v24, %s8541_s10  ;;  %v2902_v14 = vsel %vm1522_vm14, %v6899_v62, %v6484_v9  ;;  %v8666_v62 = vld [vmem:[#allocation213_spill] sm:$0xff] }
 0x8f2   : > { %v7002_v37 = vpop.permute.xlu0 %2946  ;;  %3344 = vrot.lane.b32.xlu1 %v3334_v28, %s8549_s2 }
 0x8f3   : > { %8660 = vst [vmem:[#allocation186_spill] sm:$0xff] %v7002_v37  ;;  %v8673_v37 = vld [vmem:[#allocation215_spill] sm:$0xff] }
 0x8f4   : > { %v3100_v36 = vpop.permute.xlu1 %3099  ;;  %3205 = vrot.lane.b32.xlu0 %v3196_v43, %s8541_s10 }
 0x8f6   : > { %v7012_v30 = vpop.permute.xlu0 %3243  ;;  %3443 = vrot.lane.b32.xlu1 %v3435_v50, %s8549_s2 }
 0x8f7   : > { %8661 = vst [vmem:[#allocation176_spill] sm:$0xff] %v7012_v30  ;;  %v8671_v30 = vld [vmem:[#allocation196_spill] sm:$0xff] }
 0x8f8   : > { %v3397_v17 = vpop.permute.xlu1 %3396  ;;  %3502 = vrot.lane.b32.xlu0 %v3493_v61, %s8541_s10 }
 0x8fa   : > { %3447 = vrot.lane.b32.xlu1 %v3437_v63, %s8549_s2  ;;  %v2512_v24 = vpop.permute.xlu0 %2511 }
 0x8fc   : > { %v7024_v28 = vpop.permute.xlu1 %2944  ;;  %2615 = vrot.lane.b32.xlu0 %v2608_v33, %s8541_s10 }
 0x8fd   : > { %8662 = vst [vmem:[#allocation169_spill] sm:$0xff] %v7024_v28  ;;  %v8670_v28 = vld [vmem:[#allocation154_spill] sm:$0xff] }
 0x8fe   : > { %2609 = vrot.lane.b32.xlu1 %v2599_v39, %s8541_s10  ;;  %v2700_v43 = vpop.permute.xlu0 %2699 }
 0x900   : > { %v7034_v53 = vpop.permute.xlu1 %3241  ;;  %2912 = vrot.lane.b32.xlu0 %v2905_v6, %s8541_s10 }
 0x901   : > { %8663 = vst [vmem:[#allocation182_spill] sm:$0xff] %v7034_v53  ;;  %v8668_v53 = vld [vmem:[#allocation171_spill] sm:$0xff] }
 0x902   : > { %2906 = vrot.lane.b32.xlu1 %v2896_v2, %s8541_s10  ;;  %v2706_v50 = vpop.permute.xlu0 %2705 }
 0x904   : > { %v7044_v61 = vpop.permute.xlu1 %2502  ;;  %3209 = vrot.lane.b32.xlu0 %v3202_v18, %s8541_s10 }
 0x906   : > { %3203 = vrot.lane.b32.xlu1 %v3193_v10, %s8541_s10  ;;  %v2809_v63 = vpop.permute.xlu0 %2808 }
 0x908   : > { %v7054_v33 = vpop.permute.xlu1 %2508  ;;  %3506 = vrot.lane.b32.xlu0 %v3499_v55, %s8541_s10  ;;  %v3101_v55 = vsel %vm1522_vm14, %v3100_v36, %v8664_v23  ;;  %v3496_v36 = vsel %vm1522_vm14, %v6923_v31, %v8667_v57  ;;  %v2701_v31 = vsel %vm1522_vm14, %v2700_v43, %v8670_v28  ;;  %v3292_v43 = vsel %vm1522_vm14, %v6978_v5, %v8673_v37  ;;  %v8678_v57 = vld [vmem:[#allocation212_spill] sm:$0xff] }
 0x90a   : > { %3500 = vrot.lane.b32.xlu1 %v3490_v7, %s8541_s10  ;;  %v7061_v39 = vpop.permute.xlu0 %2999 }
 0x90c   : > { %v7066_v6 = vpop.permute.xlu1 %2702  ;;  %2516 = vrot.lane.b32.xlu0 %v2507_v48, %s8541_s10  ;;  %v3199_v48 = vsel %vm1522_vm14, %v6911_v59, %v8665_v34  ;;  %v2513_v59 = vsel %vm1522_vm14, %v2512_v24, %v8668_v53  ;;  %v2995_v24 = vsel %vm1522_vm14, %v6968_v12, %v8671_v30  ;;  %v2810_v12 = vsel %vm1522_vm14, %v2809_v63, %v8675_v1 }
 0x90e   : > { %2613 = vrot.lane.b32.xlu1 %v2605_v0, %s8541_s10  ;;  %v7073_v2 = vpop.permute.xlu0 %3096 }
 0x910   : > { %v7078_v18 = vpop.permute.xlu1 %2799  ;;  %2813 = vrot.lane.b32.xlu0 %v2804_v52, %s8541_s10  ;;  %v3398_v52 = vsel %vm1522_vm14, %v3397_v17, %v8666_v62  ;;  %v2698_v17 = vsel %vm1522_vm14, %v6998_v35, %v8669_v40  ;;  %v2707_v35 = vsel %vm1522_vm14, %v2706_v50, %v8672_v19  ;;  %v3589_v50 = vsel %vm1522_vm14, %v6990_v41, %v8676_v56 }
 0x912   : > { %2910 = vrot.lane.b32.xlu1 %v2902_v14, %s8541_s10  ;;  %v7085_v10 = vpop.permute.xlu0 %3102 }
 0x914   : > { %v7089_v7 = vpop.permute.xlu1 %2805  ;;  %3110 = vrot.lane.b32.xlu0 %v3101_v55, %s8541_s10 }
 0x916   : > { %3207 = vrot.lane.b32.xlu1 %v3199_v48, %s8541_s10  ;;  %v7096_v0 = vpop.permute.xlu0 %3296 }
 0x918   : > { %v2997_v14 = vpop.permute.xlu1 %2996  ;;  %3407 = vrot.lane.b32.xlu0 %v3398_v52, %s8541_s10 }
 0x919   : > { %v2998_v5 = vsel %vm1522_vm14, %v2997_v14, %v8678_v57 }
 0x91a   : > { %3504 = vrot.lane.b32.xlu1 %v3496_v36, %s8541_s10  ;;  %v7105_v55 = vpop.permute.xlu0 %3393 }
 0x91c   : > { %v3003_v48 = vpop.permute.xlu1 %3002  ;;  %2520 = vrot.lane.b32.xlu0 %v2513_v59, %s8541_s10 }
 0x91d   : > { %v3004_v41 = vsel %vm1522_vm14, %v3003_v48, %v8681_v46 }
 0x91e   : > { %2708 = vrot.lane.b32.xlu1 %v2698_v17, %s8541_s10  ;;  %v7114_v52 = vpop.permute.xlu0 %3399 }
 0x920   : > { %v3106_v36 = vpop.permute.xlu1 %3105  ;;  %2710 = vrot.lane.b32.xlu0 %v2701_v31, %s8541_s10 }
 0x922   : > { %3005 = vrot.lane.b32.xlu1 %v2995_v24, %s8541_s10  ;;  %v7123_v59 = vpop.permute.xlu0 %3593 }
 0x924   : > { %v3294_v17 = vpop.permute.xlu1 %3293  ;;  %2714 = vrot.lane.b32.xlu0 %v2707_v35, %s8541_s10 }
 0x926   : > { %3302 = vrot.lane.b32.xlu1 %v3292_v43, %s8541_s10  ;;  %v7132_v31 = vpop.permute.xlu0 %2554 }
 0x927   : > { %8674 = vst [vmem:[#allocation208_spill] sm:$0xff] %v7132_v31  ;;  %v8679_v31 = vld [vmem:[#allocation188_spill] sm:$0xff] }
 0x928   : > { %v3300_v24 = vpop.permute.xlu1 %3299  ;;  %2817 = vrot.lane.b32.xlu0 %v2810_v12, %s8541_s10  ;;  %v2504_v63 = vsel %vm1522_vm14, %v7044_v61, %v8679_v31  ;;  %v3107_v61 = vsel %vm1522_vm14, %v3106_v36, %v6768_v29 }
 0x92a   : > { %3599 = vrot.lane.b32.xlu1 %v3589_v50, %s8541_s10  ;;  %v7141_v35 = vpop.permute.xlu0 %2851 }
 0x92b   : > { %8677 = vst [vmem:[#allocation183_spill] sm:$0xff] %v7141_v35  ;;  %v8682_v35 = vld [vmem:[#allocation168_spill] sm:$0xff] }
 0x92c   : > { %v3403_v43 = vpop.permute.xlu1 %3402  ;;  %3007 = vrot.lane.b32.xlu0 %v2998_v5, %s8541_s10  ;;  %v2510_v14 = vsel %vm1522_vm14, %v7054_v33, %v8682_v35  ;;  %v3295_v33 = vsel %vm1522_vm14, %v3294_v17, %v6787_v26  ;;  %v2807_v17 = vsel %vm1522_vm14, %v7089_v7, %v6722_v60  ;;  %v8692_v7 = vld [vmem:[#allocation187_spill] sm:$0xff] }
 0x92e   : > { %2514 = vrot.lane.b32.xlu1 %v2504_v63, %s8541_s10  ;;  %v7150_v12 = vpop.permute.xlu0 %3148 }
 0x92f   : > { %8680 = vst [vmem:[#allocation167_spill] sm:$0xff] %v7150_v12  ;;  %v8684_v12 = vld [vmem:[#allocation216_spill] sm:$0xff] }
 0x930   : > { %v3591_v50 = vpop.permute.xlu1 %3590  ;;  %3011 = vrot.lane.b32.xlu0 %v3004_v41, %s8541_s10  ;;  %v2704_v48 = vsel %vm1522_vm14, %v7066_v6, %v8684_v12  ;;  %v3301_v6 = vsel %vm1522_vm14, %v3300_v24, %v6804_v27  ;;  %v3001_v24 = vsel %vm1522_vm14, %v7061_v39, %v6684_v42  ;;  %v8695_v39 = vld [vmem:[#allocation155_spill] sm:$0xff] }
 0x932   : > { %2518 = vrot.lane.b32.xlu1 %v2510_v14, %s8541_s10  ;;  %v7159_v5 = vpop.permute.xlu0 %3445 }
 0x933   : > { %8683 = vst [vmem:[#allocation191_spill] sm:$0xff] %v7159_v5  ;;  %v8686_v5 = vld [vmem:[#allocation184_spill] sm:$0xff] }
 0x934   : > { %v3597_v63 = vpop.permute.xlu1 %3596  ;;  %3114 = vrot.lane.b32.xlu0 %v3107_v61, %s8541_s10  ;;  %v2801_v36 = vsel %vm1522_vm14, %v7078_v18, %v8686_v5  ;;  %v3404_v18 = vsel %vm1522_vm14, %v3403_v43, %v6819_v22  ;;  %v3098_v43 = vsel %vm1522_vm14, %v7073_v2, %v6697_v21 }
 0x936   : > { %2712 = vrot.lane.b32.xlu1 %v2704_v48, %s8541_s10  ;;  %v7168_v41 = vpop.permute.xlu0 %2558 }
 0x938   : > { %v7172_v14 = vpop.permute.xlu1 %2746  ;;  %3304 = vrot.lane.b32.xlu0 %v3295_v33, %s8541_s10 }
 0x939   : > { %8685 = vst [vmem:[#allocation180_spill] sm:$0xff] %v7172_v14  ;;  %v7272_v14 = vstv %s8704_s14  ;;  %s8742_s14 = sld [smem:[#allocation121_spill]] }
 0x93a   : > { %2811 = vrot.lane.b32.xlu1 %v2801_v36, %s8541_s10  ;;  %v7179_v61 = vpop.permute.xlu0 %2748 }
 0x93b   : > { %8687 = vst [vmem:[#allocation189_spill] sm:$0xff] %v7179_v61 }
 0x93c   : > { %v7183_v48 = vpop.permute.xlu1 %3043  ;;  %3308 = vrot.lane.b32.xlu0 %v3301_v6, %s8541_s10 }
 0x93d   : > { %8688 = vst [vmem:[#allocation206_spill] sm:$0xff] %v7183_v48 }
 0x93e   : > { %2815 = vrot.lane.b32.xlu1 %v2807_v17, %s8541_s10  ;;  %v7190_v33 = vpop.permute.xlu0 %2752  ;;  %v3592_v17 = vsel %vm1522_vm14, %v3591_v50, %v8692_v7  ;;  %v3104_v50 = vsel %vm1522_vm14, %v7085_v10, %v6712_v44  ;;  %v3395_v10 = vsel %vm1522_vm14, %v7105_v55, %v6743_v4 }
 0x93f   : > { %8689 = vst [vmem:[#allocation222_spill] sm:$0xff] %v7190_v33 }
 0x940   : > { %v7194_v36 = vpop.permute.xlu1 %3340  ;;  %3411 = vrot.lane.b32.xlu0 %v3404_v18, %s8541_s10 }
 0x941   : > { %8690 = vst [vmem:[#allocation221_spill] sm:$0xff] %v7194_v36 }
 0x942   : > { %3009 = vrot.lane.b32.xlu1 %v3001_v24, %s8541_s10  ;;  %v7201_v6 = vpop.permute.xlu0 %2855  ;;  %v3598_v24 = vsel %vm1522_vm14, %v3597_v63, %v8695_v39 }
 0x943   : > { %8691 = vst [vmem:[#allocation179_spill] sm:$0xff] %v7201_v6 }
 0x944   : > { %v7205_v48 = vpop.permute.xlu1 %2552  ;;  %3601 = vrot.lane.b32.xlu0 %v3592_v17, %s8541_s10 }
 0x945   : > { %8693 = vst [vmem:[#allocation190_spill] sm:$0xff] %v7205_v48 }
 0x946   : > { %3108 = vrot.lane.b32.xlu1 %v3098_v43, %s8541_s10  ;;  %v7212_v18 = vpop.permute.xlu0 %3045  ;;  %v3298_v43 = vsel %vm1522_vm14, %v7096_v0, %v6728_v15  ;;  %v3401_v0 = vsel %vm1522_vm14, %v7114_v52, %v6758_v51 }
 0x947   : > { %8694 = vst [vmem:[#allocation195_spill] sm:$0xff] %v7212_v18 }
 0x948   : > { %v7216_v36 = vpop.permute.xlu1 %2556  ;;  %3605 = vrot.lane.b32.xlu0 %v3598_v24, %s8541_s10 }
 0x949   : > { %8696 = vst [vmem:[#allocation205_spill] sm:$0xff] %v7216_v36 }
 0x94a   : > { %3112 = vrot.lane.b32.xlu1 %v3104_v50, %s8541_s10  ;;  %v7223_v17 = vpop.permute.xlu0 %3049 }
 0x94b   : > { %8697 = vst [vmem:[#allocation193_spill] sm:$0xff] %v7223_v17  ;;  %v7260_v17 = vstv %s8699_s0  ;;  %s8738_s0 = sld [smem:[#allocation125_spill]] }
 0x94c   : > { %v7225_v2 = vpop.permute.xlu1 %2750 }
 0x94d   : > { %8698 = vst [vmem:[#allocation170_spill] sm:$0xff] %v7225_v2 }
 0x94e   : > { %3306 = vrot.lane.b32.xlu1 %v3298_v43, %s8541_s10  ;;  %v7231_v63 = vpop.permute.xlu0 %3152 }
 0x94f   : > { %8700 = vst [vmem:[#allocation197_spill] sm:$0xff] %v7231_v63  ;;  %v8707_v63 = vld [vmem:[#allocation166_spill] sm:$0xff] }
 0x950   : > { %v7233_v24 = vpop.permute.xlu1 %2849  ;;  %v3595_v55 = vsel %vm1522_vm14, %v7123_v59, %v8707_v63 }
 0x951   : > { %8701 = vst [vmem:[#allocation185_spill] sm:$0xff] %v7233_v24 }
 0x952   : > { %3405 = vrot.lane.b32.xlu1 %v3395_v10, %s8541_s10  ;;  %v7239_v50 = vpop.permute.xlu0 %3342 }
 0x953   : > { %8702 = vst [vmem:[#allocation220_spill] sm:$0xff] %v7239_v50 }
 0x954   : > { %v7241_v2 = vpop.permute.xlu1 %2853 }
 0x955   : > { %8703 = vst [vmem:[#allocation209_spill] sm:$0xff] %v7241_v2 }
 0x956   : > { %3409 = vrot.lane.b32.xlu1 %v3401_v0, %s8541_s10  ;;  %v7247_v43 = vpop.permute.xlu0 %3346  ;;  %v8710_v0 = vld [vmem:[#allocation140_spill] sm:$0xff] }
 0x957   : > { %8705 = vst [vmem:[#allocation199_spill] sm:$0xff] %v7247_v43 }
 0x958   : > { %v7249_v24 = vpop.permute.xlu1 %3047 }
 0x959   : > { %8706 = vst [vmem:[#allocation192_spill] sm:$0xff] %v7249_v24 }
 0x95a   : > { %3603 = vrot.lane.b32.xlu1 %v3595_v55, %s8541_s10  ;;  %v7255_v10 = vpop.permute.xlu0 %3449  ;;  %s8735_s10 = sld [smem:[#allocation106_spill]] }
 0x95b   : > { %8708 = vst [vmem:[#allocation198_spill] sm:$0xff] %v7255_v10 }
 0x95c   : > { %v7257_v50 = vpop.permute.xlu1 %3146 }
 0x95d   : > { %8709 = vst [vmem:[#allocation201_spill] sm:$0xff] %v7257_v50 }
 0x95e   : > { %v2612_v2 = vpop.permute.xlu0 %2611 }
 0x95f   : > { %v7264_v52 = vsel %vm1522_vm14, %v2612_v2, %v8621_v11 }
 0x960   : > { %v2660_v24 = vmul.f32 %v8710_v0, %v7264_v52  ;;  %v7268_v43 = vpop.permute.xlu1 %3150 }
 0x961   : > { %8711 = vst [vmem:[#allocation200_spill] sm:$0xff] %v7268_v43  ;;  %v7285_v43 = vstv %s5119_s5 }
 0x962   : > { %v2665_v59 = vmul.f32 %v7260_v17, %v2660_v24  ;;  %v2909_v55 = vpop.permute.xlu0 %2908 }
 0x963   : > { %v7276_v10 = vsel %vm1522_vm14, %v2909_v55, %v6316_v8 }
 0x964   : > { %8712 = vst [vmem:[#allocation214_spill] sm:$0xff] %v7276_v10  ;;  %v2957_v50 = vmul.f32 %v8710_v0, %v7276_v10  ;;  %v7280_v18 = vpop.permute.xlu1 %3344  ;;  %2674 = vrot.lane.b32.xlu0 %v2665_v59, %s4406_s15 }
 0x965   : > { %8713 = vst [vmem:[#allocation202_spill] sm:$0xff] %v7280_v18 }
 0x966   : > { %v2962_v11 = vmul.f32 %v7272_v14, %v2957_v50  ;;  %v3206_v2 = vpop.permute.xlu0 %3205 }
 0x967   : > { %v7289_v24 = vsel %vm1522_vm14, %v3206_v2, %v6397_v16  ;;  %v8717_v2 = vld [vmem:[#allocation145_spill] sm:$0xff] }
 0x968   : > { %8714 = vst [vmem:[#allocation219_spill] sm:$0xff] %v7289_v24  ;;  %v3254_v8 = vmul.f32 %v8710_v0, %v7289_v24  ;;  %v7293_v55 = vpop.permute.xlu1 %3443  ;;  %2971 = vrot.lane.b32.xlu0 %v2962_v11, %s4406_s15 }
 0x969   : > { %8715 = vst [vmem:[#allocation165_spill] sm:$0xff] %v7293_v55  ;;  %v8719_v55 = vld [vmem:[#allocation141_spill] sm:$0xff] }
 0x96a   : > { %v3259_v18 = vmul.f32 %v7285_v43, %v3254_v8  ;;  %v7297_v36 = vpop.permute.xlu0 %3502 }
 0x96c   : > { %v7299_v59 = vpop.permute.xlu1 %3447  ;;  %3268 = vrot.lane.b32.xlu0 %v3259_v18, %s4406_s15 }
 0x96d   : > { %8716 = vst [vmem:[#allocation207_spill] sm:$0xff] %v7299_v59 }
 0x96e   : > { %v2616_v50 = vpop.permute.xlu0 %2615 }
 0x96f   : > { %v7304_v16 = vsel %vm1522_vm14, %v2616_v50, %v6473_v25 }
 0x970   : > { %v2662_v24 = vmul.f32 %v8717_v2, %v7304_v16  ;;  %v2610_v6 = vpop.permute.xlu1 %2609 }
 0x971   : > { %v7310_v11 = vsel %vm1522_vm14, %v2610_v6, %v6477_v32 }
 0x972   : > { %8718 = vst [vmem:[#allocation213_spill] sm:$0xff] %v7310_v11  ;;  %v2667_v8 = vmul.f32 %v7260_v17, %v2662_v24  ;;  %v2659_v59 = vmul.f32 %v8719_v55, %v7310_v11  ;;  %v2913_v48 = vpop.permute.xlu0 %2912 }
 0x973   : > { %v7317_v18 = vsel %vm1522_vm14, %v2913_v48, %v6506_v45 }
 0x974   : > { %8720 = vst [vmem:[#allocation171_spill] sm:$0xff] %v7317_v18  ;;  %v2664_v25 = vmul.f32 %v7260_v17, %v2659_v59  ;;  %v2959_v50 = vmul.f32 %v8717_v2, %v7317_v18  ;;  %v2907_v33 = vpop.permute.xlu1 %2906  ;;  %2678 = vrot.lane.b32.xlu0 %v2667_v8, %s4406_s15  ;;  %v7371_v18 = vstv %s8725_s29  ;;  %s8768_s29 = sld [smem:[#allocation102_spill]] }
 0x975   : > { %v7325_v32 = vsel %vm1522_vm14, %v2907_v33, %v6422_v58 }
 0x976   : > { %8721 = vst [vmem:[#allocation172_spill] sm:$0xff] %v7325_v32  ;;  %v2964_v6 = vmul.f32 %v7272_v14, %v2959_v50  ;;  %v2956_v24 = vmul.f32 %v8719_v55, %v7325_v32  ;;  %2672 = vrot.lane.b32.xlu1 %v2664_v25, %s4406_s15  ;;  %v3210_v45 = vpop.permute.xlu0 %3209 }
 0x977   : > { %v7333_v48 = vsel %vm1522_vm14, %v3210_v45, %v6516_v54 }
 0x978   : > { %8723 = vst [vmem:[#allocation154_spill] sm:$0xff] %v7333_v48  ;;  %v2961_v59 = vmul.f32 %v7272_v14, %v2956_v24  ;;  %v3256_v8 = vmul.f32 %v8717_v2, %v7333_v48  ;;  %v3204_v58 = vpop.permute.xlu1 %3203  ;;  %2975 = vrot.lane.b32.xlu0 %v2964_v6, %s4406_s15  ;;  %v7355_v6 = vstv %s8722_s4  ;;  %s8765_s4 = sld [smem:[#allocation99_spill]] }
 0x979   : > { %v7341_v33 = vsel %vm1522_vm14, %v3204_v58, %v6440_v47  ;;  %v8726_v58 = vld [vmem:[#allocation148_spill] sm:$0xff] }
 0x97a   : > { %8724 = vst [vmem:[#allocation196_spill] sm:$0xff] %v7341_v33  ;;  %v3261_v25 = vmul.f32 %v7285_v43, %v3256_v8  ;;  %v3253_v50 = vmul.f32 %v8719_v55, %v7341_v33  ;;  %2969 = vrot.lane.b32.xlu1 %v2961_v59, %s4406_s15  ;;  %v7347_v54 = vpop.permute.xlu0 %3506 }
 0x97c   : > { %v3258_v24 = vmul.f32 %v7285_v43, %v3253_v50  ;;  %v7350_v45 = vpop.permute.xlu1 %3500  ;;  %3272 = vrot.lane.b32.xlu0 %v3261_v25, %s4406_s15 }
 0x97e   : > { %3266 = vrot.lane.b32.xlu1 %v3258_v24, %s4406_s15  ;;  %v2517_v47 = vpop.permute.xlu0 %2516  ;;  %v8729_v24 = vld [vmem:[#allocation143_spill] sm:$0xff] }
 0x97f   : > { %v7359_v8 = vsel %vm1522_vm14, %v2517_v47, %v6527_v49 }
 0x980   : > { %v2569_v59 = vmul.f32 %v8726_v58, %v7359_v8  ;;  %v2614_v33 = vpop.permute.xlu1 %2613 }
 0x981   : > { %v7365_v50 = vsel %vm1522_vm14, %v2614_v33, %v6491_v13 }
 0x982   : > { %8728 = vst [vmem:[#allocation204_spill] sm:$0xff] %v7365_v50  ;;  %v2574_v25 = vmul.f32 %v7355_v6, %v2569_v59  ;;  %v2661_v48 = vmul.f32 %v8729_v24, %v7365_v50  ;;  %v2814_v32 = vpop.permute.xlu0 %2813 }
 0x983   : > { %v7375_v49 = vsel %vm1522_vm14, %v2814_v32, %v6549_v3 }
 0x984   : > { %8730 = vst [vmem:[#allocation215_spill] sm:$0xff] %v7375_v49  ;;  %v2666_v47 = vmul.f32 %v7260_v17, %v2661_v48  ;;  %v2866_v11 = vmul.f32 %v8726_v58, %v7375_v49  ;;  %v2911_v10 = vpop.permute.xlu1 %2910  ;;  %2583 = vrot.lane.b32.xlu0 %v2574_v25, %s4406_s15  ;;  %v7390_v17 = vstv %s8727_s11  ;;  %s8835_s11 = sld [smem:[#allocation124_spill]] }
 0x985   : > { %v7383_v13 = vsel %vm1522_vm14, %v2911_v10, %v6484_v9 }
 0x986   : > { %8731 = vst [vmem:[#allocation175_spill] sm:$0xff] %v7383_v13  ;;  %v2871_v33 = vmul.f32 %v7371_v18, %v2866_v11  ;;  %v2958_v59 = vmul.f32 %v8729_v24, %v7383_v13  ;;  %2676 = vrot.lane.b32.xlu1 %v2666_v47, %s4406_s15  ;;  %v3111_v3 = vpop.permute.xlu0 %3110 }
 0x987   : > { %v7394_v32 = vsel %vm1522_vm14, %v3111_v3, %v8664_v23 }
 0x988   : > { %8733 = vst [vmem:[#allocation164_spill] sm:$0xff] %v7394_v32  ;;  %v2963_v48 = vmul.f32 %v7272_v14, %v2958_v59  ;;  %v3163_v9 = vmul.f32 %v8726_v58, %v7394_v32  ;;  %v3208_v10 = vpop.permute.xlu1 %3207  ;;  %2880 = vrot.lane.b32.xlu0 %v2871_v33, %s4406_s15  ;;  %v7409_v14 = vstv %s8732_s1  ;;  %s8770_s1 = sld [smem:[#allocation223_spill]] }
 0x989   : > { %v7402_v11 = vsel %vm1522_vm14, %v3208_v10, %v8665_v34 }
 0x98a   : > { %8734 = vst [vmem:[#allocation212_spill] sm:$0xff] %v7402_v11  ;;  %v3168_v25 = vmul.f32 %v7390_v17, %v3163_v9  ;;  %v3255_v47 = vmul.f32 %v8729_v24, %v7402_v11  ;;  %2973 = vrot.lane.b32.xlu1 %v2963_v48, %s4406_s15  ;;  %v3408_v23 = vpop.permute.xlu0 %3407 }
 0x98b   : > { %v7413_v59 = vsel %vm1522_vm14, %v3408_v23, %v8666_v62 }
 0x98c   : > { %8736 = vst [vmem:[#allocation188_spill] sm:$0xff] %v7413_v59  ;;  %v3260_v33 = vmul.f32 %v7285_v43, %v3255_v47  ;;  %v3460_v34 = vmul.f32 %v8726_v58, %v7413_v59  ;;  %v7418_v3 = vpop.permute.xlu1 %3504  ;;  %3177 = vrot.lane.b32.xlu0 %v3168_v25, %s4406_s15  ;;  %v8739_v43 = vld [vmem:[#allocation158_spill] sm:$0xff]  ;;  %v7431_v58 = vstv %s8735_s10  ;;  %v7447_v59 = vstv %s8737_s3  ;;  %s8771_s10 = sld [smem:[#allocation105_spill]]  ;;  %s8788_s3 = sld [smem:[#allocation109_spill]] }
 0x98e   : > { %v3465_v9 = vmul.f32 %v7409_v14, %v3460_v34  ;;  %3270 = vrot.lane.b32.xlu1 %v3260_v33, %s4406_s15  ;;  %v2521_v48 = vpop.permute.xlu0 %2520  ;;  %v8741_v33 = vld [vmem:[#allocation149_spill] sm:$0xff] }
 0x98f   : > { %v7425_v62 = vsel %vm1522_vm14, %v2521_v48, %v8668_v53 }
 0x990   : > { %v2571_v10 = vmul.f32 %v8739_v43, %v7425_v62  ;;  %v2709_v47 = vpop.permute.xlu1 %2708  ;;  %3474 = vrot.lane.b32.xlu0 %v3465_v9, %s4406_s15 }
 0x991   : > { %v7435_v25 = vsel %vm1522_vm14, %v2709_v47, %v8669_v40  ;;  %v8744_v47 = vld [vmem:[#allocation162_spill] sm:$0xff] }
 0x992   : > { %8740 = vst [vmem:[#allocation181_spill] sm:$0xff] %v7435_v25  ;;  %v2576_v23 = vmul.f32 %v7355_v6, %v2571_v10  ;;  %v2762_v34 = vmul.f32 %v8741_v33, %v7435_v25  ;;  %v2711_v11 = vpop.permute.xlu0 %2710  ;;  %v3525_v10 = vstv %s8738_s0  ;;  %s8795_s0 = sld [smem:[#allocation115_spill]] }
 0x993   : > { %v7442_v53 = vsel %vm1522_vm14, %v2711_v11, %v8670_v28 }
 0x994   : > { %v2767_v48 = vmul.f32 %v7431_v58, %v2762_v34  ;;  %v3006_v9 = vpop.permute.xlu1 %3005  ;;  %2587 = vrot.lane.b32.xlu0 %v2576_v23, %s4406_s15  ;;  %v2763_v13 = vmul.f32 %v8744_v47, %v7442_v53  ;;  %v3527_v34 = vmul.f32 %v3525_v10, %v6464_v38 }
 0x995   : > { %v7451_v40 = vsel %vm1522_vm14, %v3006_v9, %v8671_v30  ;;  %v7467_v9 = vstv %s8742_s14  ;;  %s8808_s14 = sld [smem:[#allocation117_spill]] }
 0x996   : > { %8743 = vst [vmem:[#allocation168_spill] sm:$0xff] %v7451_v40  ;;  %v3059_v28 = vmul.f32 %v8741_v33, %v7451_v40  ;;  %2775 = vrot.lane.b32.xlu1 %v2767_v48, %s4406_s15  ;;  %v2715_v11 = vpop.permute.xlu0 %2714  ;;  %v2768_v48 = vmul.f32 %v7431_v58, %v2763_v13  ;;  %v8746_v40 = vld [vmem:[#allocation152_spill] sm:$0xff] }
 0x997   : > { %v7462_v23 = vsel %vm1522_vm14, %v2715_v11, %v8672_v19 }
 0x998   : > { %v3064_v32 = vmul.f32 %v7447_v59, %v3059_v28  ;;  %v3303_v30 = vpop.permute.xlu1 %3302  ;;  %3536 = vrot.lane.b32.xlu0 %v3527_v34, %s8549_s2  ;;  %v2765_v50 = vmul.f32 %v8746_v40, %v7462_v23 }
 0x999   : > { %v7471_v25 = vsel %vm1522_vm14, %v3303_v30, %v8673_v37 }
 0x99a   : > { %8745 = vst [vmem:[#allocation216_spill] sm:$0xff] %v7471_v25  ;;  %v3356_v19 = vmul.f32 %v8741_v33, %v7471_v25  ;;  %3072 = vrot.lane.b32.xlu1 %v3064_v32, %s4406_s15  ;;  %v2818_v28 = vpop.permute.xlu0 %2817  ;;  %v2770_v37 = vmul.f32 %v7431_v58, %v2765_v50  ;;  %v8749_v50 = vld [vmem:[#allocation153_spill] sm:$0xff] }
 0x99b   : > { %v7487_v13 = vsel %vm1522_vm14, %v2818_v28, %v8675_v1  ;;  %v7502_v1 = vsel %vm1522_vm14, %v7297_v36, %v6464_v38  ;;  %v7517_v38 = vstv %s5147_s19 }
 0x99c   : > { %v3361_v11 = vmul.f32 %v7467_v9, %v3356_v19  ;;  %v7480_v34 = vpop.permute.xlu1 %3599  ;;  %2777 = vrot.lane.b32.xlu0 %v2768_v48, %s4406_s15  ;;  %8747 = vst [vmem:[#allocation184_spill] sm:$0xff] %v7487_v13  ;;  %v2868_v48 = vmul.f32 %v8739_v43, %v7487_v13  ;;  %8750 = vst [vmem:[#allocation155_spill] sm:$0xff] %v7502_v1 }
 0x99e   : > { %3369 = vrot.lane.b32.xlu1 %v3361_v11, %s4406_s15  ;;  %v3008_v30 = vpop.permute.xlu0 %3007  ;;  %v3529_v11 = vmul.f32 %v3525_v10, %v6531_v20  ;;  %v2873_v25 = vmul.f32 %v7371_v18, %v2868_v48 }
 0x99f   : > { %v7521_v36 = vsel %vm1522_vm14, %v3008_v30, %v8678_v57  ;;  %v8752_v57 = vld [vmem:[#allocation203_spill] sm:$0xff] }
 0x9a0   : > { %v2515_v61 = vpop.permute.xlu1 %2514  ;;  %2781 = vrot.lane.b32.xlu0 %v2770_v37, %s4406_s15  ;;  %v3060_v48 = vmul.f32 %v8744_v47, %v7521_v36 }
 0x9a1   : > { %v7492_v32 = vsel %vm1522_vm14, %v2515_v61, %v8679_v31  ;;  %v3551_v61 = vmul.f32 %v8710_v0, %v7502_v1 }
 0x9a2   : > { %8748 = vst [vmem:[#allocation187_spill] sm:$0xff] %v7492_v32  ;;  %v2568_v19 = vmul.f32 %v8749_v50, %v7492_v32  ;;  %v3012_v13 = vpop.permute.xlu0 %3011  ;;  %v8751_v32 = vld [vmem:[#allocation159_spill] sm:$0xff] }
 0x9a3   : > { %v3556_v0 = vmul.f32 %v7517_v38, %v3551_v61 }
 0x9a4   : > { %v2573_v28 = vmul.f32 %v7355_v6, %v2568_v19  ;;  %v2519_v37 = vpop.permute.xlu1 %2518  ;;  %3540 = vrot.lane.b32.xlu0 %v3529_v11, %s8549_s2  ;;  %v7531_v11 = vsel %vm1522_vm14, %v3012_v13, %v8681_v46  ;;  %v8753_v13 = vld [vmem:[#allocation163_spill] sm:$0xff] }
 0x9a5   : > { %v7508_v31 = vsel %vm1522_vm14, %v2519_v37, %v8682_v35  ;;  %v3062_v30 = vmul.f32 %v8746_v40, %v7531_v11 }
 0x9a6   : > { %v2570_v49 = vmul.f32 %v8751_v32, %v7508_v31  ;;  %2581 = vrot.lane.b32.xlu1 %v2573_v28, %s4406_s15  ;;  %v3115_v28 = vpop.permute.xlu0 %3114 }
 0x9a7   : > { %v7545_v46 = vsel %vm1522_vm14, %v3115_v28, %v6768_v29  ;;  %v7562_v29 = vsel %vm1522_vm14, %v7347_v54, %v6531_v20 }
 0x9a8   : > { %v2575_v35 = vmul.f32 %v7355_v6, %v2570_v49  ;;  %v2713_v19 = vpop.permute.xlu1 %2712  ;;  %2884 = vrot.lane.b32.xlu0 %v2873_v25, %s4406_s15  ;;  %v3526_v6 = vmul.f32 %v3525_v10, %v8752_v57  ;;  %v3065_v25 = vmul.f32 %v7447_v59, %v3060_v48  ;;  %v3067_v48 = vmul.f32 %v7447_v59, %v3062_v30 }
 0x9a9   : > { %v7537_v49 = vsel %vm1522_vm14, %v2713_v19, %v8684_v12 }
 0x9aa   : > { %2585 = vrot.lane.b32.xlu1 %v2575_v35, %s4406_s15  ;;  %v2764_v61 = vmul.f32 %v8753_v13, %v7537_v49  ;;  %v3305_v1 = vpop.permute.xlu0 %3304 }
 0x9ab   : > { %v7578_v20 = vsel %vm1522_vm14, %v3305_v1, %v6787_v26 }
 0x9ac   : > { %v2812_v37 = vpop.permute.xlu1 %2811  ;;  %3565 = vrot.lane.b32.xlu0 %v3556_v0, %s4406_s15  ;;  %v8754_v0 = vld [vmem:[#allocation210_spill] sm:$0xff]  ;;  %v2769_v28 = vmul.f32 %v7431_v58, %v2764_v61 }
 0x9ad   : > { %v3528_v12 = vmul.f32 %v3525_v10, %v8754_v0  ;;  %v7553_v19 = vsel %vm1522_vm14, %v2812_v37, %v8686_v5  ;;  %v3553_v37 = vmul.f32 %v8717_v2, %v7562_v29 }
 0x9ae   : > { %3534 = vrot.lane.b32.xlu1 %v3526_v6, %s8549_s2  ;;  %v3165_v6 = vmul.f32 %v8739_v43, %v7545_v46  ;;  %v2865_v10 = vmul.f32 %v8749_v50, %v7553_v19  ;;  %v3309_v58 = vpop.permute.xlu0 %3308 }
 0x9af   : > { %v3558_v2 = vmul.f32 %v7517_v38, %v3553_v37  ;;  %v7595_v26 = vsel %vm1522_vm14, %v3309_v58, %v6804_v27 }
 0x9b0   : > { %v2816_v35 = vpop.permute.xlu1 %2815  ;;  %3074 = vrot.lane.b32.xlu0 %v3065_v25, %s4406_s15  ;;  %v3170_v25 = vmul.f32 %v7390_v17, %v3165_v6  ;;  %v2870_v54 = vmul.f32 %v7371_v18, %v2865_v10  ;;  %v3359_v6 = vmul.f32 %v8746_v40, %v7595_v26 }
 0x9b1   : > { %v7570_v5 = vsel %vm1522_vm14, %v2816_v35, %v6722_v60  ;;  %v7587_v60 = vsel %vm1522_vm14, %v7350_v45, %v8752_v57  ;;  %v3357_v35 = vmul.f32 %v8744_v47, %v7578_v20 }
 0x9b2   : > { %3538 = vrot.lane.b32.xlu1 %v3528_v12, %s8549_s2  ;;  %v2867_v61 = vmul.f32 %v8751_v32, %v7570_v5  ;;  %8755 = vst [vmem:[#allocation166_spill] sm:$0xff] %v7587_v60  ;;  %v3550_v1 = vmul.f32 %v8719_v55, %v7587_v60  ;;  %v3412_v55 = vpop.permute.xlu0 %3411  ;;  %v3364_v37 = vmul.f32 %v7467_v9, %v3359_v6 }
 0x9b3   : > { %v3362_v57 = vmul.f32 %v7467_v9, %v3357_v35 }
 0x9b4   : > { %3078 = vrot.lane.b32.xlu0 %v3067_v48, %s4406_s15  ;;  %v3010_v30 = vpop.permute.xlu1 %3009  ;;  %v2872_v12 = vmul.f32 %v7371_v18, %v2867_v61  ;;  %v3555_v27 = vmul.f32 %v7517_v38, %v3550_v1  ;;  %v3628_v61 = vstv %s5152_s13 }
 0x9b5   : > { %v7603_v45 = vsel %vm1522_vm14, %v3010_v30, %v6684_v42  ;;  %v7623_v30 = vsel %vm1522_vm14, %v3412_v55, %v6819_v22 }
 0x9b6   : > { %2779 = vrot.lane.b32.xlu1 %v2769_v28, %s4406_s15  ;;  %v3061_v18 = vmul.f32 %v8753_v13, %v7603_v45  ;;  %v8756_v28 = vld [vmem:[#allocation74_spill] sm:$0xff]  ;;  %v3602_v35 = vpop.permute.xlu0 %3601 }
 0x9b7   : > { %v3625_v10 = vmul.f32 %v8756_v28, %v8692_v7  ;;  %v7652_v6 = vsel %vm1522_vm14, %v3602_v35, %v8692_v7  ;;  %v8761_v7 = vld [vmem:[#allocation55_spill] sm:$0xff] }
 0x9b8   : > { %3181 = vrot.lane.b32.xlu0 %v3170_v25, %s4406_s15  ;;  %v3109_v48 = vpop.permute.xlu1 %3108  ;;  %8759 = vst [vmem:[#allocation145_spill] sm:$0xff] %v7652_v6 }
 0x9b9   : > { %v7615_v42 = vsel %vm1522_vm14, %v3109_v48, %v6697_v21  ;;  %v3630_v22 = vmul.f32 %v3628_v61, %v3625_v10  ;;  %v3624_v10 = vmul.f32 %v8761_v7, %v8676_v56 }
 0x9ba   : > { %2878 = vrot.lane.b32.xlu1 %v2870_v54, %s4406_s15  ;;  %v3066_v54 = vmul.f32 %v7447_v59, %v3061_v18  ;;  %v3162_v58 = vmul.f32 %v8749_v50, %v7615_v42  ;;  %v3606_v55 = vpop.permute.xlu0 %3605 }
 0x9bb   : > { %v7663_v28 = vsel %vm1522_vm14, %v3606_v55, %v8695_v39 }
 0x9bc   : > { %3569 = vrot.lane.b32.xlu0 %v3558_v2, %s4406_s15  ;;  %v3113_v25 = vpop.permute.xlu1 %3112  ;;  %v3462_v2 = vmul.f32 %v8739_v43, %v7623_v30  ;;  %v3167_v1 = vmul.f32 %v7390_v17, %v3162_v58  ;;  %8760 = vst [vmem:[#allocation141_spill] sm:$0xff] %v7663_v28 }
 0x9bd   : > { %v7631_v21 = vsel %vm1522_vm14, %v3113_v25, %v6712_v44  ;;  %v7644_v44 = vsel %vm1522_vm14, %v7418_v3, %v8754_v0  ;;  %v3654_v0 = vmul.f32 %v8744_v47, %v7652_v6 }
 0x9be   : > { %2882 = vrot.lane.b32.xlu1 %v2872_v12, %s4406_s15  ;;  %v3164_v59 = vmul.f32 %v8751_v32, %v7631_v21  ;;  %8757 = vst [vmem:[#allocation140_spill] sm:$0xff] %v7644_v44  ;;  %v8758_v12 = vld [vmem:[#allocation75_spill] sm:$0xff]  ;;  %v3467_v43 = vmul.f32 %v7409_v14, %v3462_v2 }
 0x9bf   : > { %v3627_v48 = vmul.f32 %v8758_v12, %v8695_v39 }
 0x9c0   : > { %3371 = vrot.lane.b32.xlu0 %v3362_v57, %s4406_s15  ;;  %v3307_v57 = vpop.permute.xlu1 %3306  ;;  %v3169_v3 = vmul.f32 %v7390_v17, %v3164_v59  ;;  %v3657_v17 = vstv %s5159_s24 }
 0x9c1   : > { %v3632_v18 = vmul.f32 %v3628_v61, %v3627_v48  ;;  %v7672_v25 = vsel %vm1522_vm14, %v3307_v57, %v6728_v15  ;;  %v3659_v47 = vmul.f32 %v3657_v17, %v3654_v0 }
 0x9c2   : > { %3563 = vrot.lane.b32.xlu1 %v3555_v27, %s4406_s15  ;;  %v3552_v27 = vmul.f32 %v8729_v24, %v7644_v44  ;;  %8762 = vst [vmem:[#allocation148_spill] sm:$0xff] %v7672_v25  ;;  %v3358_v39 = vmul.f32 %v8753_v13, %v7672_v25  ;;  %v8794_v25 = vld [vmem:[#allocation183_spill] sm:$0xff] }
 0x9c4   : > { %3375 = vrot.lane.b32.xlu0 %v3364_v37, %s4406_s15  ;;  %v3557_v24 = vmul.f32 %v7517_v38, %v3552_v27  ;;  %v3406_v37 = vpop.permute.xlu1 %3405  ;;  %v3629_v38 = vmul.f32 %v3628_v61, %v3624_v10 }
 0x9c5   : > { %v7682_v58 = vsel %vm1522_vm14, %v3406_v37, %v6743_v4 }
 0x9c6   : > { %3076 = vrot.lane.b32.xlu1 %v3066_v54, %s4406_s15  ;;  %v3656_v54 = vmul.f32 %v8746_v40, %v7663_v28  ;;  %8763 = vst [vmem:[#allocation143_spill] sm:$0xff] %v7682_v58  ;;  %v3459_v40 = vmul.f32 %v8749_v50, %v7682_v58 }
 0x9c8   : > { %3639 = vrot.lane.b32.xlu0 %v3630_v22, %s8549_s2  ;;  %v3661_v2 = vmul.f32 %v3657_v17, %v3656_v54  ;;  %v3410_v35 = vpop.permute.xlu1 %3409  ;;  %v3363_v22 = vmul.f32 %v7467_v9, %v3358_v39  ;;  %v3464_v4 = vmul.f32 %v7409_v14, %v3459_v40  ;;  %v3626_v9 = vmul.f32 %v8761_v7, %v8707_v63  ;;  %v8774_v54 = vld [vmem:[#allocation208_spill] sm:$0xff] }
 0x9c9   : > { %v8775_v40 = vld [vmem:[#allocation156_spill] sm:$0xff] }
 0x9ca   : > { %3175 = vrot.lane.b32.xlu1 %v3167_v1, %s4406_s15  ;;  %v7691_v1 = vsel %vm1522_vm14, %v3410_v35, %v6758_v51  ;;  %v7706_v51 = vsel %vm1522_vm14, %v7480_v34, %v8676_v56  ;;  %v3631_v57 = vmul.f32 %v3628_v61, %v3626_v9 }
 0x9cb   : > { %8764 = vst [vmem:[#allocation158_spill] sm:$0xff] %v7691_v1  ;;  %v3461_v59 = vmul.f32 %v8751_v32, %v7691_v1  ;;  %8766 = vst [vmem:[#allocation149_spill] sm:$0xff] %v7706_v51  ;;  %v3653_v32 = vmul.f32 %v8741_v33, %v7706_v51  ;;  %v8791_v1 = vld [vmem:[#allocation157_spill] sm:$0xff] }
 0x9cc   : > { %3478 = vrot.lane.b32.xlu0 %v3467_v43, %s4406_s15  ;;  %v3604_v48 = vpop.permute.xlu1 %3603 }
 0x9cd   : > { %v3466_v50 = vmul.f32 %v7409_v14, %v3461_v59  ;;  %v7715_v27 = vsel %vm1522_vm14, %v3604_v48, %v8707_v63  ;;  %v3658_v55 = vmul.f32 %v3657_v17, %v3653_v32  ;;  %v8776_v59 = vld [vmem:[#allocation160_spill] sm:$0xff]  ;;  %v8777_v48 = vld [vmem:[#allocation178_spill] sm:$0xff] }
 0x9ce   : > { %3179 = vrot.lane.b32.xlu1 %v3169_v3, %s4406_s15  ;;  %8767 = vst [vmem:[#allocation162_spill] sm:$0xff] %v7715_v27  ;;  %v3655_v56 = vmul.f32 %v8753_v13, %v7715_v27  ;;  %v8769_v3 = vld [vmem:[#allocation146_spill] sm:$0xff]  ;;  %v7737_v13 = vstv %s8770_s1  ;;  %v2721_v9 = vmul.f32 %v8776_v59, %v7442_v53  ;;  %s8859_s1 = smov 113  }
 0x9cf   : > { %v2527_v0 = vmul.f32 %v8769_v3, %v7359_v8 }
 0x9d0   : > { %3643 = vrot.lane.b32.xlu0 %v3632_v18, %s8549_s2  ;;  %v7725_v18 = vstv %s8765_s4  ;;  %v3660_v33 = vmul.f32 %v3657_v17, %v3655_v56  ;;  %s8814_s4 = sld [smem:[#allocation119_spill]] }
 0x9d1   : > { %v2532_v61 = vmul.f32 %v7725_v18, %v2527_v0 }
 0x9d2   : > { %3567 = vrot.lane.b32.xlu1 %v3557_v24, %s4406_s15  ;;  %v8772_v24 = vld [vmem:[#allocation138_spill] sm:$0xff] }
 0x9d3   : > { %v2536_v8 = vadd.f32 %v2532_v61, %v7737_v13  ;;  %v2622_v37 = vmul.f32 %v8772_v24, %v7264_v52 }
 0x9d4   : > { %3668 = vrot.lane.b32.xlu0 %v3659_v47, %s4406_s15  ;;  %v7747_v47 = vstv %s8768_s29  ;;  %s8822_s29 = sld [smem:[#allocation120_spill]] }
 0x9d5   : > { %v2565_v39 = vadd.f32 %v8774_v54, %v2536_v8 }
 0x9d6   : > { %3637 = vrot.lane.b32.xlu1 %v3629_v38, %s8549_s2  ;;  %v2675_v15 = vpop.permute.xlu0 %2674 }
 0x9d8   : > { %3672 = vrot.lane.b32.xlu0 %v3661_v2, %s4406_s15  ;;  %v2627_v2 = vmul.f32 %v7747_v47, %v2622_v37  ;;  %v8780_v37 = vld [vmem:[#allocation144_spill] sm:$0xff] }
 0x9d9   : > { %v2624_v54 = vmul.f32 %v8780_v37, %v7304_v16  ;;  %v8785_v16 = vld [vmem:[#allocation187_spill] sm:$0xff] }
 0x9da   : > { %3373 = vrot.lane.b32.xlu1 %v3363_v22, %s4406_s15  ;;  %v7697_v12 = vpop.permute.xlu0 %2971 }
 0x9de   : > { %3472 = vrot.lane.b32.xlu1 %v3464_v4, %s4406_s15  ;;  %v7708_v43 = vpop.permute.xlu0 %3268  ;;  %v2529_v4 = vmul.f32 %v8775_v40, %v7425_v62 }
 0x9e2   : > { %3476 = vrot.lane.b32.xlu1 %v3466_v50, %s4406_s15 }
 0x9e6   : > { %3641 = vrot.lane.b32.xlu1 %v3631_v57, %s8549_s2  ;;  %v2679_v14 = vpop.permute.xlu0 %2678  ;;  %v7759_v57 = vstv %s8771_s10  ;;  %s8828_s2 = sld [smem:[#allocation122_spill]] }
 0x9e7   : > { %v2726_v56 = vmul.f32 %v7759_v57, %v2721_v9  ;;  %v8782_v9 = vld [vmem:[#allocation150_spill] sm:$0xff] }
 0x9e8   : > { %v7720_v34 = vpop.permute.xlu1 %2672 }
 0x9ea   : > { %3666 = vrot.lane.b32.xlu1 %v3658_v55, %s4406_s15  ;;  %v7728_v63 = vpop.permute.xlu0 %2975  ;;  %v2534_v55 = vmul.f32 %v7725_v18, %v2529_v4 }
 0x9ec   : > { %v7731_v7 = vpop.permute.xlu1 %2969  ;;  %v2538_v8 = vadd.f32 %v2534_v55, %v7737_v13 }
 0x9ee   : > { %3670 = vrot.lane.b32.xlu1 %v3660_v33, %s4406_s15  ;;  %v7740_v10 = vpop.permute.xlu0 %3272  ;;  %s8778_s15 = sld [smem:[#allocation107_spill]] }
 0x9f0   : > { %v7744_v17 = vpop.permute.xlu1 %3266 }
 0x9f1   : > { %8773 = vst [vmem:[#allocation152_spill] sm:$0xff] %v7744_v17 }
 0x9f4   : > { %v7787_v51 = vstv %s8778_s15 }
 0x9f6   : > { %v2584_v38 = vpop.permute.xlu0 %2583 }
 0x9f7   : > { %v2594_v35 = vadd.f32 %v2584_v38, %v2565_v39  ;;  %v2567_v38 = vadd.f32 %v7168_v41, %v2538_v8  ;;  %v8787_v41 = vld [vmem:[#allocation217_spill] sm:$0xff] }
 0x9f8   : > { %v7751_v22 = vpop.permute.xlu1 %2676 }
 0x9f9   : > { %v2631_v50 = vadd.f32 %v2627_v2, %v2594_v35 }
 0x9fa   : > { %v2881_v52 = vpop.permute.xlu0 %2880 }
 0x9fb   : > { %v2656_v32 = vadd.f32 %v8777_v48, %v2631_v50  ;;  %v2723_v50 = vmul.f32 %v8782_v9, %v7462_v23  ;;  %v8790_v23 = vld [vmem:[#allocation184_spill] sm:$0xff] }
 0x9fc   : > { %v7763_v33 = vpop.permute.xlu1 %2973 }
 0x9fd   : > { %v2685_v0 = vadd.f32 %v2675_v15, %v2656_v32  ;;  %v2629_v15 = vmul.f32 %v7747_v47, %v2624_v54  ;;  %v8783_v32 = vld [vmem:[#allocation215_spill] sm:$0xff]  ;;  %v2728_v54 = vmul.f32 %v7759_v57, %v2723_v50 }
 0x9fe   : > { %v7765_v61 = vpop.permute.xlu0 %3177  ;;  %v2824_v55 = vmul.f32 %v8769_v3, %v8783_v32 }
 0x9ff   : > { %v2730_v62 = vadd.f32 %v2726_v56, %v2685_v0  ;;  %v8786_v0 = vld [vmem:[#allocation151_spill] sm:$0xff] }
 0xa00   : > { %v7772_v39 = vpop.permute.xlu1 %3270  ;;  %v2526_v27 = vmul.f32 %v8786_v0, %v8785_v16  ;;  %v2829_v32 = vmul.f32 %v7787_v51, %v2824_v55 }
 0xa01   : > { %8781 = vst [vmem:[#allocation159_spill] sm:$0xff] %v7772_v39  ;;  %v2528_v39 = vmul.f32 %v8791_v1, %v7508_v31 }
 0xa02   : > { %v7768_v53 = vpop.permute.xlu0 %3474  ;;  %v2531_v16 = vmul.f32 %v7725_v18, %v2526_v27 }
 0xa03   : > { %8779 = vst [vmem:[#allocation153_spill] sm:$0xff] %v7768_v53  ;;  %v2533_v55 = vmul.f32 %v7725_v18, %v2528_v39  ;;  %v3018_v18 = vmul.f32 %v8776_v59, %v7521_v36  ;;  %v8811_v53 = vld [vmem:[#allocation164_spill] sm:$0xff] }
 0xa04   : > { %v2535_v31 = vadd.f32 %v2531_v16, %v7737_v13 }
 0xa06   : > { %v2588_v2 = vpop.permute.xlu0 %2587 }
 0xa07   : > { %v2596_v35 = vadd.f32 %v2588_v2, %v2567_v38  ;;  %v8789_v38 = vld [vmem:[#allocation189_spill] sm:$0xff] }
 0xa08   : > { %v7776_v4 = vpop.permute.xlu1 %2775  ;;  %v2759_v2 = vadd.f32 %v8789_v38, %v2730_v62  ;;  %v7804_v38 = vstv %s8788_s3  ;;  %s8879_s3 = sld [smem:[#allocation224_spill]] (%p857_p1) }
 0xa09   : > { %v2633_v48 = vadd.f32 %v2629_v15, %v2596_v35  ;;  %v2826_v15 = vmul.f32 %v8775_v40, %v8790_v23 }
 0xa0a   : > { %v7782_v56 = vpop.permute.xlu0 %3536 }
 0xa0b   : > { %8784 = vst [vmem:[#allocation203_spill] sm:$0xff] %v7782_v56  ;;  %v2658_v8 = vadd.f32 %v8787_v41, %v2633_v48  ;;  %v8792_v41 = vld [vmem:[#allocation214_spill] sm:$0xff]  ;;  %v2831_v23 = vmul.f32 %v7787_v51, %v2826_v15  ;;  %v8806_v56 = vld [vmem:[#allocation181_spill] sm:$0xff] }
 0xa0c   : > { %v7794_v35 = vpop.permute.xlu1 %3072  ;;  %v2919_v50 = vmul.f32 %v8772_v24, %v8792_v41  ;;  %v8799_v41 = vld [vmem:[#allocation171_spill] sm:$0xff] }
 0xa0d   : > { %v2687_v44 = vadd.f32 %v2679_v14, %v2658_v8  ;;  %v8793_v14 = vld [vmem:[#allocation222_spill] sm:$0xff]  ;;  %v2921_v15 = vmul.f32 %v8780_v37, %v8799_v41  ;;  %v8805_v41 = vld [vmem:[#allocation173_spill] sm:$0xff] }
 0xa0e   : > { %v2778_v60 = vpop.permute.xlu0 %2777 }
 0xa0f   : > { %v2788_v58 = vadd.f32 %v2778_v60, %v2759_v2  ;;  %v2732_v48 = vadd.f32 %v2728_v54, %v2687_v44  ;;  %v2924_v44 = vmul.f32 %v7804_v38, %v2919_v50  ;;  %v8798_v54 = vld [vmem:[#allocation139_spill] sm:$0xff]  ;;  %v8803_v50 = vld [vmem:[#allocation142_spill] sm:$0xff] }
 0xa10   : > { %v7810_v60 = vpop.permute.xlu1 %3369 }
 0xa11   : > { %v2833_v62 = vadd.f32 %v2829_v32, %v2788_v58  ;;  %v2761_v8 = vadd.f32 %v8793_v14, %v2732_v48  ;;  %8796 = vst [vmem:[#allocation163_spill] sm:$0xff] %v7810_v60  ;;  %v8797_v58 = vld [vmem:[#allocation213_spill] sm:$0xff]  ;;  %v8802_v14 = vld [vmem:[#allocation204_spill] sm:$0xff]  ;;  %v7826_v60 = vstv %s8795_s0 }
 0xa12   : > { %v2782_v17 = vpop.permute.xlu0 %2781  ;;  %v2621_v2 = vmul.f32 %v8798_v54, %v8797_v58 }
 0xa13   : > { %v2862_v27 = vadd.f32 %v8794_v25, %v2833_v62  ;;  %v2790_v28 = vadd.f32 %v2782_v17, %v2761_v8  ;;  %v8801_v17 = vld [vmem:[#allocation190_spill] sm:$0xff]  ;;  %v2537_v62 = vadd.f32 %v2533_v55, %v7737_v13  ;;  %v2623_v8 = vmul.f32 %v8803_v50, %v8802_v14  ;;  %v8809_v14 = vld [vmem:[#allocation205_spill] sm:$0xff] }
 0xa14   : > { %v2564_v16 = vadd.f32 %v8801_v17, %v2535_v31  ;;  %v3023_v31 = vmul.f32 %v7826_v60, %v3018_v18  ;;  %v2926_v13 = vmul.f32 %v7804_v38, %v2921_v15  ;;  %v3121_v15 = vmul.f32 %v8769_v3, %v8811_v53 }
 0xa15   : > { %v2891_v32 = vadd.f32 %v2881_v52, %v2862_v27  ;;  %v2835_v48 = vadd.f32 %v2831_v23, %v2790_v28  ;;  %v2626_v28 = vmul.f32 %v7747_v47, %v2621_v2  ;;  %v8804_v27 = vld [vmem:[#allocation179_spill] sm:$0xff]  ;;  %v2566_v6 = vadd.f32 %v8809_v14, %v2537_v62 }
 0xa16   : > { %v7819_v39 = vpop.permute.xlu0 %3540  ;;  %v7846_v62 = vstv %s8808_s14  ;;  %v2823_v53 = vmul.f32 %v8786_v0, %v7553_v19 }
 0xa17   : > { %8800 = vst [vmem:[#allocation210_spill] sm:$0xff] %v7819_v39  ;;  %v2928_v25 = vadd.f32 %v2924_v44, %v2891_v32  ;;  %v2864_v58 = vadd.f32 %v8804_v27, %v2835_v48  ;;  %v8807_v39 = vld [vmem:[#allocation147_spill] sm:$0xff]  ;;  %v3020_v48 = vmul.f32 %v8782_v9, %v7531_v11 }
 0xa18   : > { %v2582_v52 = vpop.permute.xlu1 %2581  ;;  %v2720_v44 = vmul.f32 %v8807_v39, %v8806_v56 }
 0xa19   : > { %v2593_v23 = vadd.f32 %v2582_v52, %v2564_v16  ;;  %v2953_v36 = vadd.f32 %v8805_v41, %v2928_v25  ;;  %v2628_v25 = vmul.f32 %v7747_v47, %v2623_v8  ;;  %v8810_v52 = vld [vmem:[#allocation211_spill] sm:$0xff]  ;;  %v8813_v8 = vld [vmem:[#allocation186_spill] sm:$0xff] }
 0xa1a   : > { %v2885_v55 = vpop.permute.xlu0 %2884  ;;  %v2725_v11 = vmul.f32 %v7759_v57, %v2720_v44 }
 0xa1b   : > { %v2630_v32 = vadd.f32 %v2626_v28, %v2593_v23  ;;  %v2893_v17 = vadd.f32 %v2885_v55, %v2864_v58  ;;  %v2982_v2 = vadd.f32 %v7697_v12, %v2953_v36  ;;  %v8812_v28 = vld [vmem:[#allocation161_spill] sm:$0xff] }
 0xa1c   : > { %v2586_v16 = vpop.permute.xlu1 %2585  ;;  %v2722_v23 = vmul.f32 %v8812_v28, %v7537_v49 }
 0xa1d   : > { %v2655_v56 = vadd.f32 %v8810_v52, %v2630_v32  ;;  %v2930_v27 = vadd.f32 %v2926_v13, %v2893_v17  ;;  %v2595_v18 = vadd.f32 %v2586_v16, %v2566_v6  ;;  %v3027_v41 = vadd.f32 %v3023_v31, %v2982_v2  ;;  %v8815_v13 = vld [vmem:[#allocation194_spill] sm:$0xff]  ;;  %v8816_v32 = vld [vmem:[#allocation195_spill] sm:$0xff]  ;;  %v8817_v52 = vld [vmem:[#allocation180_spill] sm:$0xff] }
 0xa1e   : > { %v7848_v12 = vpop.permute.xlu0 %3565  ;;  %v3025_v6 = vmul.f32 %v7826_v60, %v3020_v48  ;;  %v2727_v14 = vmul.f32 %v7759_v57, %v2722_v23  ;;  %v3126_v2 = vmul.f32 %v7846_v62, %v3121_v15  ;;  %v8819_v23 = vld [vmem:[#allocation193_spill] sm:$0xff] }
 0xa1f   : > { %v2684_v47 = vadd.f32 %v7720_v34, %v2655_v56  ;;  %v2955_v58 = vadd.f32 %v8813_v8, %v2930_v27  ;;  %v2632_v36 = vadd.f32 %v2628_v25, %v2595_v18  ;;  %v3056_v17 = vadd.f32 %v8816_v32, %v3027_v41  ;;  %v8818_v18 = vld [vmem:[#allocation219_spill] sm:$0xff]  ;;  %v8823_v32 = vld [vmem:[#allocation172_spill] sm:$0xff] }
 0xa20   : > { %v7856_v31 = vpop.permute.xlu1 %3534  ;;  %v3123_v34 = vmul.f32 %v8775_v40, %v7545_v46  ;;  %v7868_v27 = vstv %s8814_s4  ;;  %v3216_v41 = vmul.f32 %v8772_v24, %v8818_v18  ;;  %v2825_v46 = vmul.f32 %v8791_v1, %v7570_v5  ;;  %v8825_v18 = vld [vmem:[#allocation197_spill] sm:$0xff] }
 0xa21   : > { %v2729_v49 = vadd.f32 %v2725_v11, %v2684_v47  ;;  %v2657_v55 = vadd.f32 %v8815_v13, %v2632_v36  ;;  %v2984_v44 = vadd.f32 %v7728_v63, %v2955_v58  ;;  %v2828_v63 = vmul.f32 %v7787_v51, %v2823_v53  ;;  %v8820_v36 = vld [vmem:[#allocation167_spill] sm:$0xff]  ;;  %v8821_v13 = vld [vmem:[#allocation170_spill] sm:$0xff] }
 0xa22   : > { %v3075_v48 = vpop.permute.xlu0 %3074  ;;  %v3128_v8 = vmul.f32 %v7846_v62, %v3123_v34  ;;  %v3221_v5 = vmul.f32 %v7868_v27, %v3216_v41 }
 0xa23   : > { %v3085_v25 = vadd.f32 %v3075_v48, %v3056_v17  ;;  %v3029_v16 = vadd.f32 %v3025_v6, %v2984_v44  ;;  %v2686_v19 = vadd.f32 %v7751_v22, %v2657_v55  ;;  %v2758_v56 = vadd.f32 %v8817_v52, %v2729_v49  ;;  %v8824_v44 = vld [vmem:[#allocation154_spill] sm:$0xff] }
 0xa24   : > { %v7875_v57 = vpop.permute.xlu1 %3538  ;;  %v2918_v17 = vmul.f32 %v8798_v54, %v8823_v32  ;;  %v2830_v48 = vmul.f32 %v7787_v51, %v2825_v46  ;;  %v8831_v32 = vld [vmem:[#allocation209_spill] sm:$0xff] }
 0xa25   : > { %v3130_v15 = vadd.f32 %v3126_v2, %v3085_v25  ;;  %v3058_v11 = vadd.f32 %v8819_v23, %v3029_v16  ;;  %v2731_v47 = vadd.f32 %v2727_v14, %v2686_v19  ;;  %v2787_v22 = vadd.f32 %v7776_v4, %v2758_v56  ;;  %v8827_v23 = vld [vmem:[#allocation175_spill] sm:$0xff] }
 0xa26   : > { %v3079_v58 = vpop.permute.xlu0 %3078  ;;  %v3218_v14 = vmul.f32 %v8780_v37, %v8824_v44  ;;  %v3315_v16 = vmul.f32 %v8776_v59, %v7578_v20 }
 0xa27   : > { %v3159_v6 = vadd.f32 %v8820_v36, %v3130_v15  ;;  %v3087_v49 = vadd.f32 %v3079_v58, %v3058_v11  ;;  %v2760_v55 = vadd.f32 %v8821_v13, %v2731_v47  ;;  %v2832_v53 = vadd.f32 %v2828_v63, %v2787_v22  ;;  %v8826_v63 = vld [vmem:[#allocation185_spill] sm:$0xff]  ;;  %v8830_v36 = vld [vmem:[#allocation168_spill] sm:$0xff] }
 0xa28   : > { %v2780_v2 = vpop.permute.xlu1 %2779  ;;  %v2920_v11 = vmul.f32 %v8803_v50, %v8827_v23  ;;  %v7896_v47 = vstv %s8822_s29  ;;  %v3223_v46 = vmul.f32 %v7868_v27, %v3218_v14  ;;  %v3317_v13 = vmul.f32 %v8782_v9, %v7595_v26  ;;  %v8832_v14 = vld [vmem:[#allocation188_spill] sm:$0xff] }
 0xa29   : > { %v3188_v4 = vadd.f32 %v7765_v61, %v3159_v6  ;;  %v3132_v34 = vadd.f32 %v3128_v8, %v3087_v49  ;;  %v2789_v25 = vadd.f32 %v2780_v2, %v2760_v55  ;;  %v2861_v15 = vadd.f32 %v8826_v63, %v2832_v53  ;;  %v8829_v8 = vld [vmem:[#allocation174_spill] sm:$0xff] }
 0xa2a   : > { %v3182_v19 = vpop.permute.xlu0 %3181  ;;  %v2923_v61 = vmul.f32 %v7804_v38, %v2918_v17  ;;  %v3017_v6 = vmul.f32 %v8807_v39, %v8830_v36  ;;  %v3320_v49 = vmul.f32 %v7896_v47, %v3315_v16  ;;  %v3418_v2 = vmul.f32 %v8769_v3, %v8832_v14 }
 0xa2b   : > { %v3225_v52 = vadd.f32 %v3221_v5, %v3188_v4  ;;  %v2834_v56 = vadd.f32 %v2830_v48, %v2789_v25  ;;  %v3161_v41 = vadd.f32 %v8825_v18, %v3132_v34  ;;  %v7913_v4 = vstv %s8828_s2  ;;  %v8833_v25 = vld [vmem:[#allocation176_spill] sm:$0xff] }
 0xa2c   : > { %v2879_v51 = vpop.permute.xlu1 %2878  ;;  %v2925_v34 = vmul.f32 %v7804_v38, %v2920_v11  ;;  %v8836_v38 = vld [vmem:[#allocation220_spill] sm:$0xff]  ;;  %v7934_v36 = vstv %s8835_s11 }
 0xa2d   : > { %v3190_v22 = vadd.f32 %v3182_v19, %v3161_v41  ;;  %v2890_v20 = vadd.f32 %v2879_v51, %v2861_v15  ;;  %v3250_v58 = vadd.f32 %v8829_v8, %v3225_v52  ;;  %v2863_v17 = vadd.f32 %v8831_v32, %v2834_v56  ;;  %v8834_v19 = vld [vmem:[#allocation177_spill] sm:$0xff] }
 0xa2e   : > { %v7906_v55 = vpop.permute.xlu0 %3569  ;;  %v3022_v41 = vmul.f32 %v7826_v60, %v3017_v6  ;;  %v3322_v56 = vmul.f32 %v7896_v47, %v3317_v13  ;;  %v3120_v51 = vmul.f32 %v8786_v0, %v7615_v42  ;;  %v8838_v6 = vld [vmem:[#allocation155_spill] sm:$0xff] }
 0xa2f   : > { %v3227_v53 = vadd.f32 %v3223_v46, %v3190_v22  ;;  %v2927_v5 = vadd.f32 %v2923_v61, %v2890_v20  ;;  %v3279_v44 = vadd.f32 %v7708_v43, %v3250_v58  ;;  %v3019_v43 = vmul.f32 %v8812_v28, %v7603_v45  ;;  %v8837_v45 = vld [vmem:[#allocation169_spill] sm:$0xff]  ;;  %v8839_v13 = vld [vmem:[#allocation199_spill] sm:$0xff] }
 0xa30   : > { %v2883_v48 = vpop.permute.xlu1 %2882  ;;  %v3420_v61 = vmul.f32 %v8775_v40, %v7623_v30  ;;  %v3423_v46 = vmul.f32 %v7913_v4, %v3418_v2 }
 0xa31   : > { %v3252_v16 = vadd.f32 %v8833_v25, %v3227_v53  ;;  %v2952_v26 = vadd.f32 %v8834_v19, %v2927_v5  ;;  %v2892_v52 = vadd.f32 %v2883_v48, %v2863_v17  ;;  %v3324_v18 = vadd.f32 %v3320_v49, %v3279_v44  ;;  %v8840_v5 = vld [vmem:[#allocation206_spill] sm:$0xff]  ;;  %v8842_v19 = vld [vmem:[#allocation196_spill] sm:$0xff] }
 0xa32   : > { %v3372_v3 = vpop.permute.xlu0 %3371  ;;  %v3024_v49 = vmul.f32 %v7826_v60, %v3019_v43  ;;  %v3125_v17 = vmul.f32 %v7846_v62, %v3120_v51  ;;  %v3122_v44 = vmul.f32 %v8791_v1, %v7631_v21  ;;  %v3425_v14 = vmul.f32 %v7913_v4, %v3420_v61  ;;  %v8843_v21 = vld [vmem:[#allocation153_spill] sm:$0xff] }
 0xa33   : > { %v2981_v63 = vadd.f32 %v7731_v7, %v2952_v26  ;;  %v2929_v15 = vadd.f32 %v2925_v34, %v2892_v52  ;;  %v3353_v23 = vadd.f32 %v8836_v38, %v3324_v18  ;;  %v3281_v11 = vadd.f32 %v7740_v10, %v3252_v16  ;;  %v8841_v34 = vld [vmem:[#allocation191_spill] sm:$0xff]  ;;  %v8846_v61 = vld [vmem:[#allocation201_spill] sm:$0xff] }
 0xa34   : > { %v7930_v22 = vpop.permute.xlu1 %3563  ;;  %v3513_v10 = vmul.f32 %v8772_v24, %v8838_v6  ;;  %v3515_v26 = vmul.f32 %v8780_v37, %v7562_v29  ;;  %v8848_v29 = vld [vmem:[#allocation212_spill] sm:$0xff]  ;;  %v8849_v6 = vld [vmem:[#allocation203_spill] sm:$0xff] }
 0xa35   : > { %v3026_v20 = vadd.f32 %v3022_v41, %v2981_v63  ;;  %v2954_v8 = vadd.f32 %v8837_v45, %v2929_v15  ;;  %v3382_v58 = vadd.f32 %v3372_v3, %v3353_v23  ;;  %v3326_v7 = vadd.f32 %v3322_v56, %v3281_v11  ;;  %v8844_v56 = vld [vmem:[#allocation192_spill] sm:$0xff]  ;;  %v8845_v63 = vld [vmem:[#allocation145_spill] sm:$0xff] }
 0xa36   : > { %v3376_v30 = vpop.permute.xlu0 %3375  ;;  %v3518_v16 = vmul.f32 %v7934_v36, %v3513_v10  ;;  %v3612_v15 = vmul.f32 %v8776_v59, %v8845_v63  ;;  %v3217_v37 = vmul.f32 %v8803_v50, %v8848_v29  ;;  %v7963_v45 = vstv %s5150_s8  ;;  %v8857_v63 = vld [vmem:[#allocation143_spill] sm:$0xff] }
 0xa37   : > { %v3427_v40 = vadd.f32 %v3423_v46, %v3382_v58  ;;  %v3355_v42 = vadd.f32 %v8839_v13, %v3326_v7  ;;  %v2983_v53 = vadd.f32 %v7763_v33, %v2954_v8  ;;  %v3055_v32 = vadd.f32 %v8840_v5, %v3026_v20  ;;  %v8847_v46 = vld [vmem:[#allocation198_spill] sm:$0xff]  ;;  %v8851_v13 = vld [vmem:[#allocation141_spill] sm:$0xff] }
 0xa38   : > { %v3077_v2 = vpop.permute.xlu1 %3076  ;;  %v3215_v33 = vmul.f32 %v8798_v54, %v8842_v19  ;;  %v3520_v58 = vmul.f32 %v7934_v36, %v3515_v26  ;;  %v8855_v26 = vld [vmem:[#allocation148_spill] sm:$0xff] }
 0xa39   : > { %v3456_v24 = vadd.f32 %v8841_v34, %v3427_v40  ;;  %v3384_v48 = vadd.f32 %v3376_v30, %v3355_v42  ;;  %v3028_v60 = vadd.f32 %v3024_v49, %v2983_v53  ;;  %v3084_v25 = vadd.f32 %v7794_v35, %v3055_v32  ;;  %v8850_v30 = vld [vmem:[#allocation216_spill] sm:$0xff] }
 0xa3a   : > { %v3640_v52 = vpop.permute.xlu0 %3639  ;;  %v3127_v35 = vmul.f32 %v7846_v62, %v3122_v44  ;;  %v3220_v8 = vmul.f32 %v7868_v27, %v3215_v33  ;;  %v3314_v40 = vmul.f32 %v8807_v39, %v8850_v30  ;;  %v3614_v42 = vmul.f32 %v8782_v9, %v8851_v13  ;;  %v8865_v13 = vld [vmem:[#allocation202_spill] sm:$0xff] }
 0xa3b   : > { %v3485_v18 = vadd.f32 %v8843_v21, %v3456_v24  ;;  %v3429_v41 = vadd.f32 %v3425_v14, %v3384_v48  ;;  %v3057_v43 = vadd.f32 %v8844_v56, %v3028_v60  ;;  %v3129_v3 = vadd.f32 %v3125_v17, %v3084_v25  ;;  %v8852_v14 = vld [vmem:[#allocation200_spill] sm:$0xff]  ;;  %v8853_v60 = vld [vmem:[#allocation218_spill] sm:$0xff] }
 0xa3c   : > { %v3176_v38 = vpop.permute.xlu1 %3175  ;;  %v3617_v53 = vmul.f32 %v7963_v45, %v3612_v15  ;;  %v3222_v34 = vmul.f32 %v7868_v27, %v3217_v37  ;;  %v3319_v9 = vmul.f32 %v7896_v47, %v3314_v40  ;;  %v3316_v21 = vmul.f32 %v8812_v28, %v8855_v26  ;;  %v8856_v56 = vld [vmem:[#allocation152_spill] sm:$0xff]  ;;  %v8864_v40 = vld [vmem:[#allocation166_spill] sm:$0xff] }
 0xa3d   : > { %v3086_v23 = vadd.f32 %v3077_v2, %v3057_v43  ;;  %v3522_v11 = vadd.f32 %v3518_v16, %v3485_v18  ;;  %v3158_v51 = vadd.f32 %v8846_v61, %v3129_v3  ;;  %v3458_v20 = vadd.f32 %v8847_v46, %v3429_v41  ;;  %v8854_v16 = vld [vmem:[#allocation210_spill] sm:$0xff] }
 0xa3e   : > { %v3479_v7 = vpop.permute.xlu0 %3478  ;;  %v3417_v15 = vmul.f32 %v8786_v0, %v8857_v63  ;;  %v8862_v0 = vld [vmem:[#allocation158_spill] sm:$0xff] }
 0xa3f   : > { %v3131_v59 = vadd.f32 %v3127_v35, %v3086_v23  ;;  %v3547_v62 = vadd.f32 %v8849_v6, %v3522_v11  ;;  %v3187_v10 = vadd.f32 %v3176_v38, %v3158_v51  ;;  %v3487_v49 = vadd.f32 %v3479_v7, %v3458_v20  ;;  %v8858_v23 = vld [vmem:[#allocation182_spill] sm:$0xff] }
 0xa40   : > { %v3180_v5 = vpop.permute.xlu1 %3179  ;;  %v3321_v20 = vmul.f32 %v7896_v47, %v3316_v21  ;;  %v3512_v47 = vmul.f32 %v8798_v54, %v8864_v40 }
 0xa41   : > { %v3576_v32 = vadd.f32 %v7848_v12, %v3547_v62  ;;  %v3224_v17 = vadd.f32 %v3220_v8, %v3187_v10  ;;  %v3524_v44 = vadd.f32 %v3520_v58, %v3487_v49  ;;  %v3160_v2 = vadd.f32 %v8852_v14, %v3131_v59  ;;  %v8861_v8 = vld [vmem:[#allocation221_spill] sm:$0xff]  ;;  %v8863_v10 = vld [vmem:[#allocation163_spill] sm:$0xff] }
 0xa42   : > { %v3644_v24 = vpop.permute.xlu0 %3643  ;;  %v3619_v12 = vmul.f32 %v7963_v45, %v3614_v42  ;;  %v3419_v59 = vmul.f32 %v8791_v1, %v8862_v0  ;;  %v8867_v1 = vld [vmem:[#allocation140_spill] sm:$0xff] }
 0xa43   : > { %v3621_v48 = vadd.f32 %v3617_v53, %v3576_v32  ;;  %v3249_v25 = vadd.f32 %v8853_v60, %v3224_v17  ;;  %v3549_v19 = vadd.f32 %v8854_v16, %v3524_v44  ;;  %v3189_v33 = vadd.f32 %v3180_v5, %v3160_v2  ;;  %v8866_v17 = vld [vmem:[#allocation165_spill] sm:$0xff]  ;;  %v8869_v16 = vld [vmem:[#allocation207_spill] sm:$0xff] }
 0xa44   : > { %v3568_v18 = vpop.permute.xlu1 %3567  ;;  %v3424_v5 = vmul.f32 %v7913_v4, %v3419_v59  ;;  %v3514_v2 = vmul.f32 %v8803_v50, %v8867_v1  ;;  %v8868_v60 = vld [vmem:[#allocation149_spill] sm:$0xff] }
 0xa45   : > { %v3650_v41 = vadd.f32 %v3640_v52, %v3621_v48  ;;  %v3278_v43 = vadd.f32 %v8856_v56, %v3249_v25  ;;  %v3226_v3 = vadd.f32 %v3222_v34, %v3189_v33  ;;  %v3578_v27 = vadd.f32 %v7906_v55, %v3549_v19  ;;  %v8860_v52 = vld [vmem:[#allocation159_spill] sm:$0xff] }
 0xa46   : > { %v3669_v35 = vpop.permute.xlu0 %3668  ;;  %v3422_v55 = vmul.f32 %v7913_v4, %v3417_v15  ;;  %v3611_v54 = vmul.f32 %v8807_v39, %v8868_v60 }
 0xa47   : > { %v3323_v38 = vadd.f32 %v3319_v9, %v3278_v43  ;;  %v3251_v11 = vadd.f32 %v8858_v23, %v3226_v3  ;;  %v3623_v61 = vadd.f32 %v3619_v12, %v3578_v27  ;;  %v3679_v51 = vadd.f32 %v3669_v35, %v3650_v41  ;;  %v8870_v12 = vld [vmem:[#allocation162_spill] sm:$0xff] }
 0xa48   : > { %v3638_v46 = vpop.permute.xlu1 %3637  ;;  %v3519_v9 = vmul.f32 %v7934_v36, %v3514_v2  ;;  %v3616_v21 = vmul.f32 %v7963_v45, %v3611_v54  ;;  %v3613_v50 = vmul.f32 %v8812_v28, %v8870_v12 }
 0xa49   : > { %v3652_v29 = vadd.f32 %v3644_v24, %v3623_v61  ;;  %3688 = vrot.lane.b32.xlu0 %v3679_v51, %s8859_s1  ;;  %v3280_v37 = vadd.f32 %v8860_v52, %v3251_v11  ;;  %v3352_v58 = vadd.f32 %v8861_v8, %v3323_v38  ;;  %v3517_v24 = vmul.f32 %v7934_v36, %v3512_v47  ;;  %v8874_v52 = vld [vmem:[#allocation137_spill] sm:$0xff] }
 0xa4a   : > { %v3673_v7 = vpop.permute.xlu0 %3672  ;;  %v3618_v63 = vmul.f32 %v7963_v45, %v3613_v50 }
 0xa4b   : > { %v3681_v6 = vadd.f32 %v3673_v7, %v3652_v29  ;;  %v3325_v62 = vadd.f32 %v3321_v20, %v3280_v37  ;;  %v3381_v49 = vadd.f32 %v8863_v10, %v3352_v58  ;;  %v8873_v29 = vld [vmem:[#allocation135_spill] sm:$0xff] }
 0xa4c   : > { %v3374_v30 = vpop.permute.xlu1 %3373 }
 0xa4d   : > { %v3354_v42 = vadd.f32 %v8865_v13, %v3325_v62  ;;  %3692 = vrot.lane.b32.xlu0 %v3681_v6, %s8859_s1  ;;  %v3426_v53 = vadd.f32 %v3422_v55, %v3381_v49 }
 0xa4f   : > { %v3383_v32 = vadd.f32 %v3374_v30, %v3354_v42  ;;  %v3455_v44 = vadd.f32 %v8866_v17, %v3426_v53 }
 0xa50   : > { %v3473_v14 = vpop.permute.xlu1 %3472 }
 0xa51   : > { %v3428_v34 = vadd.f32 %v3424_v5, %v3383_v32  ;;  %v3484_v48 = vadd.f32 %v3473_v14, %v3455_v44 }
 0xa53   : > { %v3521_v25 = vadd.f32 %v3517_v24, %v3484_v48  ;;  %v3457_v19 = vadd.f32 %v8869_v16, %v3428_v34 }
 0xa54   : > { %v3477_v33 = vpop.permute.xlu1 %3476 }
 0xa55   : > { %v3546_v4 = vadd.f32 %v7856_v31, %v3521_v25  ;;  %v3486_v26 = vadd.f32 %v3477_v33, %v3457_v19 }
 0xa57   : > { %v3523_v41 = vadd.f32 %v3519_v9, %v3486_v26  ;;  %v3575_v56 = vadd.f32 %v7930_v22, %v3546_v4  ;;  %v8871_v22 = vld [vmem:[#allocation134_spill] sm:$0xff] }
 0xa58   : > { %v3642_v43 = vpop.permute.xlu1 %3641 }
 0xa59   : > { %v3548_v39 = vadd.f32 %v7875_v57, %v3523_v41  ;;  %v3620_v3 = vadd.f32 %v3616_v21, %v3575_v56  ;;  %v8872_v57 = vld [vmem:[#allocation136_spill] sm:$0xff] }
 0xa5b   : > { %v3577_v27 = vadd.f32 %v3568_v18, %v3548_v39  ;;  %v3649_v15 = vadd.f32 %v3638_v46, %v3620_v3 }
 0xa5c   : > { %v3667_v31 = vpop.permute.xlu1 %3666 }
 0xa5d   : > { %v3622_v35 = vadd.f32 %v3618_v63, %v3577_v27  ;;  %v3678_v36 = vadd.f32 %v3667_v31, %v3649_v15 }
 0xa5f   : > { %v3651_v38 = vadd.f32 %v3642_v43, %v3622_v35  ;;  %3686 = vrot.lane.b32.xlu1 %v3678_v36, %s8859_s1 }
 0xa60   : > { %v3671_v23 = vpop.permute.xlu1 %3670 }
 0xa61   : > { %v3680_v11 = vadd.f32 %v3671_v23, %v3651_v38 }
 0xa63   : > { %3690 = vrot.lane.b32.xlu1 %v3680_v11, %s8859_s1 }
 0xabb   : > { %v3689_v28 = vpop.permute.xlu0 %3688 }
 0xabc   : > { %v3699_v61 = vadd.f32 %v8871_v22, %v3689_v28  }
 0xabe   : > { %v8877_v34 = vmov %v3699_v61  ;;  %3704 = vst.msk [vmem:[%s8879_s3 + $0x8] sm:$0xff] (%p857_p1), %vm867_vm9, %v3699_v61 }
 0xabf   : > { %v3693_v51 = vpop.permute.xlu0 %3692 }
 0xac0   : > { %v3701_v20 = vadd.f32 %v8872_v57, %v3693_v51  }
 0xac2   : > { %v8875_v38 = vmov %v3701_v20  ;;  %3706 = vst.msk [vmem:[%s8879_s3 + $0x18] sm:$0xff] (%p857_p1), %vm867_vm9, %v3701_v20 }
 0xad1   : > { %v3687_v18 = vpop.permute.xlu1 %3686 }
 0xad2   : > { %v3698_v45 = vadd.f32 %v3687_v18, %v8873_v29   ;;  %859 = sbr.rel (!%p857_p1) target bundleno = 220 (0xdc), region = 111 }
 0xad4   : > { %v8878_v33 = vmov %v3698_v45  ;;  %3703 = vst.msk [vmem:[%s8879_s3] sm:$0xff] (%p857_p1), %vm867_vm9, %v3698_v45 }
 0xad5   : > { %v3691_v46 = vpop.permute.xlu1 %3690 }
 0xad6   : > { %v3700_v8 = vadd.f32 %v3691_v46, %v8874_v52  }
 0xad8   : > { %v8876_v37 = vmov %v3700_v8  ;;  %3705 = vst.msk [vmem:[%s8879_s3 + $0x10] sm:$0xff] (%p857_p1), %vm867_vm9, %v3700_v8 }
 0xad9   :  { %3711 = vsyncpa [#allocation4], 1 }
 0xada   :  { %3712 = vsyncpa [#allocation15], 1 }
 0xadb   :  { %3713 = vsyncpa [#allocation5], 1 }
 0xadc   :  { %3714 = vsyncpa [#allocation11], 1 }
 0xadd   :  { %3715 = vsyncpa [#allocation6], 1 }
 0xade   :  { %3716 = vsyncpa [#allocation8], 1 }

</bundles_post_ra>
